<compile_context>
chip_gen: v6e
topology: v6e:2x2x1
jax: 0.10.0
libtpu: 0.0.40
codegen_flags: <defaults>
</compile_context>

<pallas_src>
import jax
import jax.numpy as jnp
from jax.experimental import pallas as pl
from jax.experimental.pallas import tpu as pltpu

NEG = -1e30  # "-inf" for the running max


def hierarchical_lstm_kernel(
    emb_ref,      # (T*NP, E) f32  token embeddings, time-major; row = t*NP + s*BP + b
    mlens_ref,    # (NP, 1) int32  per-message #non-zero tokens (pack_padded lengths)
    mlmax_ref,    # (NP, 1) int32  per-conversation-step batch-max length (pad_packed len)
    w_ih_mf_ref,  # (E, 8*H2) f32  fwd input weights in fwd gate columns, zeros elsewhere
    w_ih_mb_ref,  # (E, 8*H2) f32  bwd input weights in bwd gate columns, zeros elsewhere
    w_hh_m_ref,   # (2*H2, 8*H2)   block-diagonal fused fwd/bwd recurrent weights
    b_m_ref,      # (1, 8*H2)      fused biases (b_ih + b_hh, both directions)
    clens_ref,    # (BP, 1) int32  conversation lengths (padded batch)
    gf_ref,       # (NP, G) f32    game features; row = s*BP + b
    w_ih_c_ref,   # (H, 4*H)
    w_hh_c_ref,   # (H, 4*H)
    b_c_ref,      # (1, 4*H)
    cls_wh_ref,   # (1, H)   classifier weights for conv output
    cls_wg_ref,   # (1, G)   classifier weights for game features
    cls_b_ref,    # (1, 1)
    out_ref,      # (NP, 1) f32 logits; row = s*BP + b
):
    NP = mlens_ref.shape[0]
    T = emb_ref.shape[0] // NP
    H2x2 = w_hh_m_ref.shape[0]          # 2*H2 = combined fwd|bwd hidden width
    H2 = H2x2 // 2
    BP = clens_ref.shape[0]
    S = NP // BP
    H = w_hh_c_ref.shape[0]

    # ---------------- stage 1: bidirectional message LSTM + token max-pool ------------
    # Hoisted input projections for ALL tokens (both directions occupy disjoint lane
    # groups of the 8*H2-wide gate layout: gate(i,f,g,o) x dir(fwd,bwd) x H2).
    emb = emb_ref[...]
    xp_f = jnp.dot(emb, w_ih_mf_ref[...],
                   preferred_element_type=jnp.float32) + b_m_ref[...]   # (T*NP, 8*H2)
    xp_b = jnp.dot(emb, w_ih_mb_ref[...],
                   preferred_element_type=jnp.float32)                  # (T*NP, 8*H2)

    mlens = mlens_ref[...]              # (NP, 1)
    mlmax = mlmax_ref[...]              # (NP, 1)
    w_hh_m = w_hh_m_ref[...]            # (2*H2, 8*H2)

    lane_h = jax.lax.broadcasted_iota(jnp.int32, (1, H2x2), 1)
    is_fwd_h = lane_h < H2              # (1, 2*H2): fwd half of the carry

    h = jnp.zeros((NP, H2x2), jnp.float32)       # [h_fwd | h_bwd]
    c = jnp.zeros((NP, H2x2), jnp.float32)
    m = jnp.full((NP, H2x2), NEG, jnp.float32)   # running max over token positions

    # Fully unrolled (T static, small). At step k the fwd direction consumes token k
    # and the bwd direction consumes token T-1-k -> one 128-lane recurrent matmul/step.
    for k in range(T):
        kf, kb = k, T - 1 - k
        x_g = xp_f[kf * NP:(kf + 1) * NP] + xp_b[kb * NP:(kb + 1) * NP]   # (NP, 8*H2)
        gates = x_g + jnp.dot(h, w_hh_m, preferred_element_type=jnp.float32)
        i_g = jax.nn.sigmoid(gates[:, 0 * H2x2:1 * H2x2])   # [i_f | i_b]
        f_g = jax.nn.sigmoid(gates[:, 1 * H2x2:2 * H2x2])
        g_g = jnp.tanh(gates[:, 2 * H2x2:3 * H2x2])
        o_g = jax.nn.sigmoid(gates[:, 3 * H2x2:4 * H2x2])
        c_new = f_g * c + i_g * g_g
        h_new = o_g * jnp.tanh(c_new)

        # per-lane token index: fwd half compares against kf, bwd half against kb
        t_vec = jnp.where(is_fwd_h, kf, kb).astype(jnp.int32)            # (1, 2*H2)
        valid = mlens > t_vec            # packed sequence only advances for t < len
        in_rng = mlmax > t_vec           # pad_packed length = batch-max length
        h = jnp.where(valid, h_new, h)
        c = jnp.where(valid, c_new, c)
        # pad_packed zero-pads len <= t < lmax; t >= lmax is excluded from the max.
        m = jnp.maximum(m, jnp.where(valid, h_new, jnp.where(in_rng, 0.0, NEG)))

    # m: (NP, H) encoded messages, cols = [fwd H2 | bwd H2]  (H = 2*H2)

    # ---------------- stage 2: conversation LSTM (length masked) ----------------------
    w_hh_c = w_hh_c_ref[...]
    clens = clens_ref[...]                                               # (BP, 1)
    xp_c = jnp.dot(m, w_ih_c_ref[...],
                   preferred_element_type=jnp.float32) + b_c_ref[...]    # (NP, 4*H)

    hc = jnp.zeros((BP, H), jnp.float32)
    cc = jnp.zeros((BP, H), jnp.float32)
    outs = []
    for s in range(S):                                                   # unrolled, S static
        gates = xp_c[s * BP:(s + 1) * BP] + jnp.dot(
            hc, w_hh_c, preferred_element_type=jnp.float32)              # (BP, 4*H)
        i_g = jax.nn.sigmoid(gates[:, 0 * H:1 * H])
        f_g = jax.nn.sigmoid(gates[:, 1 * H:2 * H])
        g_g = jnp.tanh(gates[:, 2 * H:3 * H])
        o_g = jax.nn.sigmoid(gates[:, 3 * H:4 * H])
        c_new = f_g * cc + i_g * g_g
        h_new = o_g * jnp.tanh(c_new)
        valid = clens > s
        hc = jnp.where(valid, h_new, hc)
        cc = jnp.where(valid, c_new, cc)
        outs.append(jnp.where(valid, h_new, 0.0))   # pad_packed_sequence zero-pads

    conv_out = jnp.concatenate(outs, axis=0)        # (NP, H), row = s*BP + b

    # ---------------- stage 3: classifier (single pass, single store) -----------------
    # TODO(synk): nn.Dropout(0.3) is identity in eval/inference mode; training-mode
    # stochastic dropout is not implemented here.
    logits = (jnp.sum(conv_out * cls_wh_ref[...], axis=-1, keepdims=True)
              + jnp.sum(gf_ref[...] * cls_wg_ref[...], axis=-1, keepdims=True)
              + cls_b_ref[...])                      # (NP, 1)
    out_ref[...] = logits


# ----------------------------------------------------------------------------
# Parameters (deterministic, synthetic) and the forward wrapper.
# ----------------------------------------------------------------------------
def init_params(key, vocab, emb_dim, hidden_dim, num_game_features):
    assert hidden_dim % 2 == 0
    H2 = hidden_dim // 2
    ks = jax.random.split(key, 16)
    n = lambda k, shp: (0.1 * jax.random.normal(k, shp)).astype(jnp.float32)
    return {
        "embedding": n(ks[0], (vocab, emb_dim)),
        # message encoder: bidirectional LSTM (PyTorch gate order i, f, g, o)
        "msg_w_ih_f": n(ks[1], (4 * H2, emb_dim)),
        "msg_w_hh_f": n(ks[2], (4 * H2, H2)),
        "msg_b_f":    n(ks[3], (4 * H2,)) + n(ks[4], (4 * H2,)),   # b_ih + b_hh
        "msg_w_ih_b": n(ks[5], (4 * H2, emb_dim)),
        "msg_w_hh_b": n(ks[6], (4 * H2, H2)),
        "msg_b_b":    n(ks[7], (4 * H2,)) + n(ks[8], (4 * H2,)),
        # conversation encoder: unidirectional LSTM
        "conv_w_ih": n(ks[9], (4 * hidden_dim, hidden_dim)),
        "conv_w_hh": n(ks[10], (4 * hidden_dim, hidden_dim)),
        "conv_b":    n(ks[11], (4 * hidden_dim,)) + n(ks[12], (4 * hidden_dim,)),
        # classifier
        "cls_w": n(ks[13], (1, hidden_dim + num_game_features)),
        "cls_b": n(ks[14], (1,)),
    }


@jax.jit
def hierarchical_lstm_forward(params, messages, game_features, conv_lengths):
    S, B, T = messages.shape
    E = params["embedding"].shape[1]
    H2 = params["msg_w_hh_f"].shape[1]
    H = 2 * H2
    G = game_features.shape[-1]
    BP = ((B + 7) // 8) * 8          # pad batch to a sublane multiple -> aligned slices
    NP = S * BP                      # flattened (conversation step, batch) rows

    # ---- glue: frozen-embedding gather + layout / padding (outside the kernel) ----
    emb = jnp.take(params["embedding"], messages, axis=0)            # (S,B,T,E)
    emb = jnp.transpose(emb, (2, 0, 1, 3))                           # (T,S,B,E) time-major
    emb = jnp.pad(emb, ((0, 0), (0, 0), (0, BP - B), (0, 0)))        # (T,S,BP,E)
    emb2d = emb.reshape(T * NP, E).astype(jnp.float32)

    # msg length = number of non-zero tokens (exactly what the torch code computes)
    msg_lens = (messages != 0).sum(-1).astype(jnp.int32)             # (S,B)
    lmax = msg_lens.max(axis=1, keepdims=True)                       # (S,1) pad_packed length
    col = jnp.arange(BP)[None, :]
    msg_lens_p = jnp.pad(msg_lens, ((0, 0), (0, BP - B))).reshape(NP, 1)
    lmax_p = jnp.where(col < B, jnp.broadcast_to(lmax, (S, BP)), T)  # pad rows encode to 0
    lmax_p = lmax_p.reshape(NP, 1).astype(jnp.int32)

    conv_lens = jnp.pad(conv_lengths.astype(jnp.int32), (0, BP - B)).reshape(BP, 1)
    gf = jnp.pad(game_features.astype(jnp.float32),
                 ((0, 0), (0, BP - B), (0, 0))).reshape(NP, G)

    # ---- fused fwd/bwd message-LSTM weights; columns = gate(i,f,g,o) x dir(f,b) x H2 ----
    wihf = params["msg_w_ih_f"].T.reshape(E, 4, H2)
    wihb = params["msg_w_ih_b"].T.reshape(E, 4, H2)
    w_ih_mf = jnp.zeros((E, 4, 2, H2), jnp.float32).at[:, :, 0, :].set(wihf).reshape(E, 8 * H2)
    w_ih_mb = jnp.zeros((E, 4, 2, H2), jnp.float32).at[:, :, 1, :].set(wihb).reshape(E, 8 * H2)
    whhf = params["msg_w_hh_f"].T.reshape(H2, 4, H2)
    whhb = params["msg_w_hh_b"].T.reshape(H2, 4, H2)
    w_hh_m = (jnp.zeros((2 * H2, 4, 2, H2), jnp.float32)
              .at[:H2, :, 0, :].set(whhf)
              .at[H2:, :, 1, :].set(whhb)
              .reshape(2 * H2, 8 * H2))
    b_m = jnp.stack([params["msg_b_f"].reshape(4, H2),
                     params["msg_b_b"].reshape(4, H2)], axis=1).reshape(1, 8 * H2)

    # conversation LSTM + classifier params
    w_ih_c = params["conv_w_ih"].T                                   # (H, 4H)
    w_hh_c = params["conv_w_hh"].T                                   # (H, 4H)
    b_c = params["conv_b"][None, :]                                  # (1, 4H)
    cls_wh = params["cls_w"][:, :H]                                  # (1, H)
    cls_wg = params["cls_w"][:, H:]                                  # (1, G)
    cls_b = params["cls_b"][None, :]                                 # (1, 1)

    vmem = pl.BlockSpec(memory_space=pltpu.MemorySpace.VMEM)
    out = pl.pallas_call(
        hierarchical_lstm_kernel,
        out_shape=jax.ShapeDtypeStruct((NP, 1), jnp.float32),
        in_specs=[vmem] * 15,
        out_specs=vmem,
    )(emb2d, msg_lens_p, lmax_p, w_ih_mf, w_ih_mb, w_hh_m, b_m,
      conv_lens, gf, w_ih_c, w_hh_c, b_c, cls_wh, cls_wg, cls_b)

    return out.reshape(S, BP)[:, :B]                                 # (S, B) logits


if __name__ == "__main__":
    VOCAB, EMB, HIDDEN, NUM_GF = 32, 16, 32, 4
    S, B, T = 6, 2, 8

    key = jax.random.PRNGKey(0)
    kp, km, kg = jax.random.split(key, 3)
    params = init_params(kp, VOCAB, EMB, HIDDEN, NUM_GF)

    messages = jax.random.randint(km, (S, B, T), 0, VOCAB, dtype=jnp.int32)
    # guarantee every message has at least one non-zero token (length >= 1)
    messages = messages.at[:, :, 0].set(jnp.clip(messages[:, :, 0], 1, VOCAB - 1))
    game_features = jax.random.normal(kg, (S, B, NUM_GF), dtype=jnp.float32)
    # max(conv_lengths) must equal S (the torch code concatenates pad_packed output
    # with seq_len-long game_features, which implicitly requires this).
    conv_lengths = jnp.array([S, S - 2], dtype=jnp.int32)

    logits = hierarchical_lstm_forward(params, messages, game_features, conv_lengths)
    jax.block_until_ready(logits)
    assert logits.shape == (S, B)
    print("KERNEL_OK")
</pallas_src>

<mosaic_0001>
module attributes {stable_mosaic.version = 11 : i64} {
  func.func @hierarchical_lstm_kernel(%arg0: memref<384x16xf32, #tpu.memory_space<vmem>>, %arg1: memref<48x1xi32, #tpu.memory_space<vmem>>, %arg2: memref<48x1xi32, #tpu.memory_space<vmem>>, %arg3: memref<16x128xf32, #tpu.memory_space<vmem>>, %arg4: memref<16x128xf32, #tpu.memory_space<vmem>>, %arg5: memref<32x128xf32, #tpu.memory_space<vmem>>, %arg6: memref<1x128xf32, #tpu.memory_space<vmem>>, %arg7: memref<8x1xi32, #tpu.memory_space<vmem>>, %arg8: memref<48x4xf32, #tpu.memory_space<vmem>>, %arg9: memref<32x128xf32, #tpu.memory_space<vmem>>, %arg10: memref<32x128xf32, #tpu.memory_space<vmem>>, %arg11: memref<1x128xf32, #tpu.memory_space<vmem>>, %arg12: memref<1x32xf32, #tpu.memory_space<vmem>>, %arg13: memref<1x4xf32, #tpu.memory_space<vmem>>, %arg14: memref<1x1xf32, #tpu.memory_space<vmem>>, %arg15: memref<48x1xf32, #tpu.memory_space<vmem>>) attributes {dimension_semantics = [], scalar_prefetch = 0 : i64, scratch_operands = 0 : i64, tpu.core_type = #tpu.core_type<tc>} {
    %c0 = arith.constant 0 : index
    %c0_0 = arith.constant 0 : index
    %0 = vector.load %arg0[%c0, %c0_0] : memref<384x16xf32, #tpu.memory_space<vmem>>, vector<384x16xf32>
    %c0_1 = arith.constant 0 : index
    %c0_2 = arith.constant 0 : index
    %1 = vector.load %arg3[%c0_1, %c0_2] : memref<16x128xf32, #tpu.memory_space<vmem>>, vector<16x128xf32>
    %cst = arith.constant dense<0.000000e+00> : vector<384x128xf32>
    %2 = tpu.matmul %0, %1, %cst {dimension_numbers = #tpu.dot_dimension_numbers<[1], [0], [0], [1], [0, 0, 1, 1], [], []>} : vector<384x16xf32>, vector<16x128xf32>, vector<384x128xf32> -> vector<384x128xf32>
    %c0_3 = arith.constant 0 : index
    %c0_4 = arith.constant 0 : index
    %3 = vector.load %arg6[%c0_3, %c0_4] : memref<1x128xf32, #tpu.memory_space<vmem>>, vector<1x128xf32>
    %4 = vector.broadcast %3 : vector<1x128xf32> to vector<384x128xf32>
    %5 = arith.addf %2, %4 : vector<384x128xf32>
    %c0_5 = arith.constant 0 : index
    %c0_6 = arith.constant 0 : index
    %6 = vector.load %arg4[%c0_5, %c0_6] : memref<16x128xf32, #tpu.memory_space<vmem>>, vector<16x128xf32>
    %cst_7 = arith.constant dense<0.000000e+00> : vector<384x128xf32>
    %7 = tpu.matmul %0, %6, %cst_7 {dimension_numbers = #tpu.dot_dimension_numbers<[1], [0], [0], [1], [0, 0, 1, 1], [], []>} : vector<384x16xf32>, vector<16x128xf32>, vector<384x128xf32> -> vector<384x128xf32>
    %c0_8 = arith.constant 0 : index
    %c0_9 = arith.constant 0 : index
    %8 = vector.load %arg1[%c0_8, %c0_9] : memref<48x1xi32, #tpu.memory_space<vmem>>, vector<48x1xi32>
    %c0_10 = arith.constant 0 : index
    %c0_11 = arith.constant 0 : index
    %9 = vector.load %arg2[%c0_10, %c0_11] : memref<48x1xi32, #tpu.memory_space<vmem>>, vector<48x1xi32>
    %c0_12 = arith.constant 0 : index
    %c0_13 = arith.constant 0 : index
    %10 = vector.load %arg5[%c0_12, %c0_13] : memref<32x128xf32, #tpu.memory_space<vmem>>, vector<32x128xf32>
    %11 = tpu.iota {dimensions = array<i32: 1>} : vector<1x32xi32>
    %c16_i32 = arith.constant 16 : i32
    %12 = vector.broadcast %c16_i32 : i32 to vector<1x32xi32>
    %13 = arith.cmpi slt, %11, %12 : vector<1x32xi32>
    %cst_14 = arith.constant 0.000000e+00 : f32
    %14 = vector.broadcast %cst_14 : f32 to vector<48x32xf32>
    %cst_15 = arith.constant 0.000000e+00 : f32
    %15 = vector.broadcast %cst_15 : f32 to vector<48x32xf32>
    %cst_16 = arith.constant -1.000000e+30 : f32
    %16 = vector.broadcast %cst_16 : f32 to vector<48x32xf32>
    %17 = vector.extract_strided_slice %5 {offsets = [0, 0], sizes = [48, 128], strides = [1, 1]} : vector<384x128xf32> to vector<48x128xf32>
    %18 = vector.extract_strided_slice %7 {offsets = [336, 0], sizes = [48, 128], strides = [1, 1]} : vector<384x128xf32> to vector<48x128xf32>
    %19 = arith.addf %17, %18 : vector<48x128xf32>
    %cst_17 = arith.constant dense<0.000000e+00> : vector<48x128xf32>
    %20 = tpu.matmul %14, %10, %cst_17 {dimension_numbers = #tpu.dot_dimension_numbers<[1], [0], [0], [1], [0, 0, 1, 1], [], []>} : vector<48x32xf32>, vector<32x128xf32>, vector<48x128xf32> -> vector<48x128xf32>
    %21 = arith.addf %19, %20 : vector<48x128xf32>
    %22 = vector.extract_strided_slice %21 {offsets = [0, 0], sizes = [48, 32], strides = [1, 1]} : vector<48x128xf32> to vector<48x32xf32>
    %23 = arith.negf %22 : vector<48x32xf32>
    %24 = math.exp %23 : vector<48x32xf32>
    %cst_18 = arith.constant 1.000000e+00 : f32
    %25 = vector.broadcast %cst_18 : f32 to vector<48x32xf32>
    %26 = arith.addf %25, %24 : vector<48x32xf32>
    %27 = arith.divf %25, %26 : vector<48x32xf32>
    %28 = vector.extract_strided_slice %21 {offsets = [0, 32], sizes = [48, 32], strides = [1, 1]} : vector<48x128xf32> to vector<48x32xf32>
    %29 = arith.negf %28 : vector<48x32xf32>
    %30 = math.exp %29 : vector<48x32xf32>
    %cst_19 = arith.constant 1.000000e+00 : f32
    %31 = vector.broadcast %cst_19 : f32 to vector<48x32xf32>
    %32 = arith.addf %31, %30 : vector<48x32xf32>
    %33 = arith.divf %31, %32 : vector<48x32xf32>
    %34 = vector.extract_strided_slice %21 {offsets = [0, 64], sizes = [48, 32], strides = [1, 1]} : vector<48x128xf32> to vector<48x32xf32>
    %35 = math.tanh %34 : vector<48x32xf32>
    %36 = vector.extract_strided_slice %21 {offsets = [0, 96], sizes = [48, 32], strides = [1, 1]} : vector<48x128xf32> to vector<48x32xf32>
    %37 = arith.negf %36 : vector<48x32xf32>
    %38 = math.exp %37 : vector<48x32xf32>
    %cst_20 = arith.constant 1.000000e+00 : f32
    %39 = vector.broadcast %cst_20 : f32 to vector<48x32xf32>
    %40 = arith.addf %39, %38 : vector<48x32xf32>
    %41 = arith.divf %39, %40 : vector<48x32xf32>
    %42 = arith.mulf %33, %15 : vector<48x32xf32>
    %43 = arith.mulf %27, %35 : vector<48x32xf32>
    %44 = arith.addf %42, %43 : vector<48x32xf32>
    %45 = math.tanh %44 : vector<48x32xf32>
    %46 = arith.mulf %41, %45 : vector<48x32xf32>
    %c0_i32 = arith.constant 0 : i32
    %c7_i32 = arith.constant 7 : i32
    %47 = vector.broadcast %c0_i32 : i32 to vector<1x32xi32>
    %48 = vector.broadcast %c7_i32 : i32 to vector<1x32xi32>
    %49 = arith.select %13, %47, %48 : vector<1x32xi1>, vector<1x32xi32>
    %50 = vector.broadcast %8 : vector<48x1xi32> to vector<48x32xi32>
    %51 = vector.broadcast %49 : vector<1x32xi32> to vector<48x32xi32>
    %52 = arith.cmpi sgt, %50, %51 : vector<48x32xi32>
    %53 = vector.broadcast %9 : vector<48x1xi32> to vector<48x32xi32>
    %54 = vector.broadcast %49 : vector<1x32xi32> to vector<48x32xi32>
    %55 = arith.cmpi sgt, %53, %54 : vector<48x32xi32>
    %56 = arith.select %52, %46, %14 : vector<48x32xi1>, vector<48x32xf32>
    %57 = arith.select %52, %44, %15 : vector<48x32xi1>, vector<48x32xf32>
    %cst_21 = arith.constant 0.000000e+00 : f32
    %cst_22 = arith.constant -1.000000e+30 : f32
    %58 = vector.broadcast %cst_21 : f32 to vector<48x32xf32>
    %59 = vector.broadcast %cst_22 : f32 to vector<48x32xf32>
    %60 = arith.select %55, %58, %59 : vector<48x32xi1>, vector<48x32xf32>
    %61 = arith.select %52, %46, %60 : vector<48x32xi1>, vector<48x32xf32>
    %62 = arith.maximumf %16, %61 : vector<48x32xf32>
    %63 = vector.extract_strided_slice %5 {offsets = [48, 0], sizes = [48, 128], strides = [1, 1]} : vector<384x128xf32> to vector<48x128xf32>
    %64 = vector.extract_strided_slice %7 {offsets = [288, 0], sizes = [48, 128], strides = [1, 1]} : vector<384x128xf32> to vector<48x128xf32>
    %65 = arith.addf %63, %64 : vector<48x128xf32>
    %cst_23 = arith.constant dense<0.000000e+00> : vector<48x128xf32>
    %66 = tpu.matmul %56, %10, %cst_23 {dimension_numbers = #tpu.dot_dimension_numbers<[1], [0], [0], [1], [0, 0, 1, 1], [], []>} : vector<48x32xf32>, vector<32x128xf32>, vector<48x128xf32> -> vector<48x128xf32>
    %67 = arith.addf %65, %66 : vector<48x128xf32>
    %68 = vector.extract_strided_slice %67 {offsets = [0, 0], sizes = [48, 32], strides = [1, 1]} : vector<48x128xf32> to vector<48x32xf32>
    %69 = arith.negf %68 : vector<48x32xf32>
    %70 = math.exp %69 : vector<48x32xf32>
    %cst_24 = arith.constant 1.000000e+00 : f32
    %71 = vector.broadcast %cst_24 : f32 to vector<48x32xf32>
    %72 = arith.addf %71, %70 : vector<48x32xf32>
    %73 = arith.divf %71, %72 : vector<48x32xf32>
    %74 = vector.extract_strided_slice %67 {offsets = [0, 32], sizes = [48, 32], strides = [1, 1]} : vector<48x128xf32> to vector<48x32xf32>
    %75 = arith.negf %74 : vector<48x32xf32>
    %76 = math.exp %75 : vector<48x32xf32>
    %cst_25 = arith.constant 1.000000e+00 : f32
    %77 = vector.broadcast %cst_25 : f32 to vector<48x32xf32>
    %78 = arith.addf %77, %76 : vector<48x32xf32>
    %79 = arith.divf %77, %78 : vector<48x32xf32>
    %80 = vector.extract_strided_slice %67 {offsets = [0, 64], sizes = [48, 32], strides = [1, 1]} : vector<48x128xf32> to vector<48x32xf32>
    %81 = math.tanh %80 : vector<48x32xf32>
    %82 = vector.extract_strided_slice %67 {offsets = [0, 96], sizes = [48, 32], strides = [1, 1]} : vector<48x128xf32> to vector<48x32xf32>
    %83 = arith.negf %82 : vector<48x32xf32>
    %84 = math.exp %83 : vector<48x32xf32>
    %cst_26 = arith.constant 1.000000e+00 : f32
    %85 = vector.broadcast %cst_26 : f32 to vector<48x32xf32>
    %86 = arith.addf %85, %84 : vector<48x32xf32>
    %87 = arith.divf %85, %86 : vector<48x32xf32>
    %88 = arith.mulf %79, %57 : vector<48x32xf32>
    %89 = arith.mulf %73, %81 : vector<48x32xf32>
    %90 = arith.addf %88, %89 : vector<48x32xf32>
    %91 = math.tanh %90 : vector<48x32xf32>
    %92 = arith.mulf %87, %91 : vector<48x32xf32>
    %c1_i32 = arith.constant 1 : i32
    %c6_i32 = arith.constant 6 : i32
    %93 = vector.broadcast %c1_i32 : i32 to vector<1x32xi32>
    %94 = vector.broadcast %c6_i32 : i32 to vector<1x32xi32>
    %95 = arith.select %13, %93, %94 : vector<1x32xi1>, vector<1x32xi32>
    %96 = vector.broadcast %8 : vector<48x1xi32> to vector<48x32xi32>
    %97 = vector.broadcast %95 : vector<1x32xi32> to vector<48x32xi32>
    %98 = arith.cmpi sgt, %96, %97 : vector<48x32xi32>
    %99 = vector.broadcast %9 : vector<48x1xi32> to vector<48x32xi32>
    %100 = vector.broadcast %95 : vector<1x32xi32> to vector<48x32xi32>
    %101 = arith.cmpi sgt, %99, %100 : vector<48x32xi32>
    %102 = arith.select %98, %92, %56 : vector<48x32xi1>, vector<48x32xf32>
    %103 = arith.select %98, %90, %57 : vector<48x32xi1>, vector<48x32xf32>
    %cst_27 = arith.constant 0.000000e+00 : f32
    %cst_28 = arith.constant -1.000000e+30 : f32
    %104 = vector.broadcast %cst_27 : f32 to vector<48x32xf32>
    %105 = vector.broadcast %cst_28 : f32 to vector<48x32xf32>
    %106 = arith.select %101, %104, %105 : vector<48x32xi1>, vector<48x32xf32>
    %107 = arith.select %98, %92, %106 : vector<48x32xi1>, vector<48x32xf32>
    %108 = arith.maximumf %62, %107 : vector<48x32xf32>
    %109 = vector.extract_strided_slice %5 {offsets = [96, 0], sizes = [48, 128], strides = [1, 1]} : vector<384x128xf32> to vector<48x128xf32>
    %110 = vector.extract_strided_slice %7 {offsets = [240, 0], sizes = [48, 128], strides = [1, 1]} : vector<384x128xf32> to vector<48x128xf32>
    %111 = arith.addf %109, %110 : vector<48x128xf32>
    %cst_29 = arith.constant dense<0.000000e+00> : vector<48x128xf32>
    %112 = tpu.matmul %102, %10, %cst_29 {dimension_numbers = #tpu.dot_dimension_numbers<[1], [0], [0], [1], [0, 0, 1, 1], [], []>} : vector<48x32xf32>, vector<32x128xf32>, vector<48x128xf32> -> vector<48x128xf32>
    %113 = arith.addf %111, %112 : vector<48x128xf32>
    %114 = vector.extract_strided_slice %113 {offsets = [0, 0], sizes = [48, 32], strides = [1, 1]} : vector<48x128xf32> to vector<48x32xf32>
    %115 = arith.negf %114 : vector<48x32xf32>
    %116 = math.exp %115 : vector<48x32xf32>
    %cst_30 = arith.constant 1.000000e+00 : f32
    %117 = vector.broadcast %cst_30 : f32 to vector<48x32xf32>
    %118 = arith.addf %117, %116 : vector<48x32xf32>
    %119 = arith.divf %117, %118 : vector<48x32xf32>
    %120 = vector.extract_strided_slice %113 {offsets = [0, 32], sizes = [48, 32], strides = [1, 1]} : vector<48x128xf32> to vector<48x32xf32>
    %121 = arith.negf %120 : vector<48x32xf32>
    %122 = math.exp %121 : vector<48x32xf32>
    %cst_31 = arith.constant 1.000000e+00 : f32
    %123 = vector.broadcast %cst_31 : f32 to vector<48x32xf32>
    %124 = arith.addf %123, %122 : vector<48x32xf32>
    %125 = arith.divf %123, %124 : vector<48x32xf32>
    %126 = vector.extract_strided_slice %113 {offsets = [0, 64], sizes = [48, 32], strides = [1, 1]} : vector<48x128xf32> to vector<48x32xf32>
    %127 = math.tanh %126 : vector<48x32xf32>
    %128 = vector.extract_strided_slice %113 {offsets = [0, 96], sizes = [48, 32], strides = [1, 1]} : vector<48x128xf32> to vector<48x32xf32>
    %129 = arith.negf %128 : vector<48x32xf32>
    %130 = math.exp %129 : vector<48x32xf32>
    %cst_32 = arith.constant 1.000000e+00 : f32
    %131 = vector.broadcast %cst_32 : f32 to vector<48x32xf32>
    %132 = arith.addf %131, %130 : vector<48x32xf32>
    %133 = arith.divf %131, %132 : vector<48x32xf32>
    %134 = arith.mulf %125, %103 : vector<48x32xf32>
    %135 = arith.mulf %119, %127 : vector<48x32xf32>
    %136 = arith.addf %134, %135 : vector<48x32xf32>
    %137 = math.tanh %136 : vector<48x32xf32>
    %138 = arith.mulf %133, %137 : vector<48x32xf32>
    %c2_i32 = arith.constant 2 : i32
    %c5_i32 = arith.constant 5 : i32
    %139 = vector.broadcast %c2_i32 : i32 to vector<1x32xi32>
    %140 = vector.broadcast %c5_i32 : i32 to vector<1x32xi32>
    %141 = arith.select %13, %139, %140 : vector<1x32xi1>, vector<1x32xi32>
    %142 = vector.broadcast %8 : vector<48x1xi32> to vector<48x32xi32>
    %143 = vector.broadcast %141 : vector<1x32xi32> to vector<48x32xi32>
    %144 = arith.cmpi sgt, %142, %143 : vector<48x32xi32>
    %145 = vector.broadcast %9 : vector<48x1xi32> to vector<48x32xi32>
    %146 = vector.broadcast %141 : vector<1x32xi32> to vector<48x32xi32>
    %147 = arith.cmpi sgt, %145, %146 : vector<48x32xi32>
    %148 = arith.select %144, %138, %102 : vector<48x32xi1>, vector<48x32xf32>
    %149 = arith.select %144, %136, %103 : vector<48x32xi1>, vector<48x32xf32>
    %cst_33 = arith.constant 0.000000e+00 : f32
    %cst_34 = arith.constant -1.000000e+30 : f32
    %150 = vector.broadcast %cst_33 : f32 to vector<48x32xf32>
    %151 = vector.broadcast %cst_34 : f32 to vector<48x32xf32>
    %152 = arith.select %147, %150, %151 : vector<48x32xi1>, vector<48x32xf32>
    %153 = arith.select %144, %138, %152 : vector<48x32xi1>, vector<48x32xf32>
    %154 = arith.maximumf %108, %153 : vector<48x32xf32>
    %155 = vector.extract_strided_slice %5 {offsets = [144, 0], sizes = [48, 128], strides = [1, 1]} : vector<384x128xf32> to vector<48x128xf32>
    %156 = vector.extract_strided_slice %7 {offsets = [192, 0], sizes = [48, 128], strides = [1, 1]} : vector<384x128xf32> to vector<48x128xf32>
    %157 = arith.addf %155, %156 : vector<48x128xf32>
    %cst_35 = arith.constant dense<0.000000e+00> : vector<48x128xf32>
    %158 = tpu.matmul %148, %10, %cst_35 {dimension_numbers = #tpu.dot_dimension_numbers<[1], [0], [0], [1], [0, 0, 1, 1], [], []>} : vector<48x32xf32>, vector<32x128xf32>, vector<48x128xf32> -> vector<48x128xf32>
    %159 = arith.addf %157, %158 : vector<48x128xf32>
    %160 = vector.extract_strided_slice %159 {offsets = [0, 0], sizes = [48, 32], strides = [1, 1]} : vector<48x128xf32> to vector<48x32xf32>
    %161 = arith.negf %160 : vector<48x32xf32>
    %162 = math.exp %161 : vector<48x32xf32>
    %cst_36 = arith.constant 1.000000e+00 : f32
    %163 = vector.broadcast %cst_36 : f32 to vector<48x32xf32>
    %164 = arith.addf %163, %162 : vector<48x32xf32>
    %165 = arith.divf %163, %164 : vector<48x32xf32>
    %166 = vector.extract_strided_slice %159 {offsets = [0, 32], sizes = [48, 32], strides = [1, 1]} : vector<48x128xf32> to vector<48x32xf32>
    %167 = arith.negf %166 : vector<48x32xf32>
    %168 = math.exp %167 : vector<48x32xf32>
    %cst_37 = arith.constant 1.000000e+00 : f32
    %169 = vector.broadcast %cst_37 : f32 to vector<48x32xf32>
    %170 = arith.addf %169, %168 : vector<48x32xf32>
    %171 = arith.divf %169, %170 : vector<48x32xf32>
    %172 = vector.extract_strided_slice %159 {offsets = [0, 64], sizes = [48, 32], strides = [1, 1]} : vector<48x128xf32> to vector<48x32xf32>
    %173 = math.tanh %172 : vector<48x32xf32>
    %174 = vector.extract_strided_slice %159 {offsets = [0, 96], sizes = [48, 32], strides = [1, 1]} : vector<48x128xf32> to vector<48x32xf32>
    %175 = arith.negf %174 : vector<48x32xf32>
    %176 = math.exp %175 : vector<48x32xf32>
    %cst_38 = arith.constant 1.000000e+00 : f32
    %177 = vector.broadcast %cst_38 : f32 to vector<48x32xf32>
    %178 = arith.addf %177, %176 : vector<48x32xf32>
    %179 = arith.divf %177, %178 : vector<48x32xf32>
    %180 = arith.mulf %171, %149 : vector<48x32xf32>
    %181 = arith.mulf %165, %173 : vector<48x32xf32>
    %182 = arith.addf %180, %181 : vector<48x32xf32>
    %183 = math.tanh %182 : vector<48x32xf32>
    %184 = arith.mulf %179, %183 : vector<48x32xf32>
    %c3_i32 = arith.constant 3 : i32
    %c4_i32 = arith.constant 4 : i32
    %185 = vector.broadcast %c3_i32 : i32 to vector<1x32xi32>
    %186 = vector.broadcast %c4_i32 : i32 to vector<1x32xi32>
    %187 = arith.select %13, %185, %186 : vector<1x32xi1>, vector<1x32xi32>
    %188 = vector.broadcast %8 : vector<48x1xi32> to vector<48x32xi32>
    %189 = vector.broadcast %187 : vector<1x32xi32> to vector<48x32xi32>
    %190 = arith.cmpi sgt, %188, %189 : vector<48x32xi32>
    %191 = vector.broadcast %9 : vector<48x1xi32> to vector<48x32xi32>
    %192 = vector.broadcast %187 : vector<1x32xi32> to vector<48x32xi32>
    %193 = arith.cmpi sgt, %191, %192 : vector<48x32xi32>
    %194 = arith.select %190, %184, %148 : vector<48x32xi1>, vector<48x32xf32>
    %195 = arith.select %190, %182, %149 : vector<48x32xi1>, vector<48x32xf32>
    %cst_39 = arith.constant 0.000000e+00 : f32
    %cst_40 = arith.constant -1.000000e+30 : f32
    %196 = vector.broadcast %cst_39 : f32 to vector<48x32xf32>
    %197 = vector.broadcast %cst_40 : f32 to vector<48x32xf32>
    %198 = arith.select %193, %196, %197 : vector<48x32xi1>, vector<48x32xf32>
    %199 = arith.select %190, %184, %198 : vector<48x32xi1>, vector<48x32xf32>
    %200 = arith.maximumf %154, %199 : vector<48x32xf32>
    %201 = vector.extract_strided_slice %5 {offsets = [192, 0], sizes = [48, 128], strides = [1, 1]} : vector<384x128xf32> to vector<48x128xf32>
    %202 = vector.extract_strided_slice %7 {offsets = [144, 0], sizes = [48, 128], strides = [1, 1]} : vector<384x128xf32> to vector<48x128xf32>
    %203 = arith.addf %201, %202 : vector<48x128xf32>
    %cst_41 = arith.constant dense<0.000000e+00> : vector<48x128xf32>
    %204 = tpu.matmul %194, %10, %cst_41 {dimension_numbers = #tpu.dot_dimension_numbers<[1], [0], [0], [1], [0, 0, 1, 1], [], []>} : vector<48x32xf32>, vector<32x128xf32>, vector<48x128xf32> -> vector<48x128xf32>
    %205 = arith.addf %203, %204 : vector<48x128xf32>
    %206 = vector.extract_strided_slice %205 {offsets = [0, 0], sizes = [48, 32], strides = [1, 1]} : vector<48x128xf32> to vector<48x32xf32>
    %207 = arith.negf %206 : vector<48x32xf32>
    %208 = math.exp %207 : vector<48x32xf32>
    %cst_42 = arith.constant 1.000000e+00 : f32
    %209 = vector.broadcast %cst_42 : f32 to vector<48x32xf32>
    %210 = arith.addf %209, %208 : vector<48x32xf32>
    %211 = arith.divf %209, %210 : vector<48x32xf32>
    %212 = vector.extract_strided_slice %205 {offsets = [0, 32], sizes = [48, 32], strides = [1, 1]} : vector<48x128xf32> to vector<48x32xf32>
    %213 = arith.negf %212 : vector<48x32xf32>
    %214 = math.exp %213 : vector<48x32xf32>
    %cst_43 = arith.constant 1.000000e+00 : f32
    %215 = vector.broadcast %cst_43 : f32 to vector<48x32xf32>
    %216 = arith.addf %215, %214 : vector<48x32xf32>
    %217 = arith.divf %215, %216 : vector<48x32xf32>
    %218 = vector.extract_strided_slice %205 {offsets = [0, 64], sizes = [48, 32], strides = [1, 1]} : vector<48x128xf32> to vector<48x32xf32>
    %219 = math.tanh %218 : vector<48x32xf32>
    %220 = vector.extract_strided_slice %205 {offsets = [0, 96], sizes = [48, 32], strides = [1, 1]} : vector<48x128xf32> to vector<48x32xf32>
    %221 = arith.negf %220 : vector<48x32xf32>
    %222 = math.exp %221 : vector<48x32xf32>
    %cst_44 = arith.constant 1.000000e+00 : f32
    %223 = vector.broadcast %cst_44 : f32 to vector<48x32xf32>
    %224 = arith.addf %223, %222 : vector<48x32xf32>
    %225 = arith.divf %223, %224 : vector<48x32xf32>
    %226 = arith.mulf %217, %195 : vector<48x32xf32>
    %227 = arith.mulf %211, %219 : vector<48x32xf32>
    %228 = arith.addf %226, %227 : vector<48x32xf32>
    %229 = math.tanh %228 : vector<48x32xf32>
    %230 = arith.mulf %225, %229 : vector<48x32xf32>
    %c4_i32_45 = arith.constant 4 : i32
    %c3_i32_46 = arith.constant 3 : i32
    %231 = vector.broadcast %c4_i32_45 : i32 to vector<1x32xi32>
    %232 = vector.broadcast %c3_i32_46 : i32 to vector<1x32xi32>
    %233 = arith.select %13, %231, %232 : vector<1x32xi1>, vector<1x32xi32>
    %234 = vector.broadcast %8 : vector<48x1xi32> to vector<48x32xi32>
    %235 = vector.broadcast %233 : vector<1x32xi32> to vector<48x32xi32>
    %236 = arith.cmpi sgt, %234, %235 : vector<48x32xi32>
    %237 = vector.broadcast %9 : vector<48x1xi32> to vector<48x32xi32>
    %238 = vector.broadcast %233 : vector<1x32xi32> to vector<48x32xi32>
    %239 = arith.cmpi sgt, %237, %238 : vector<48x32xi32>
    %240 = arith.select %236, %230, %194 : vector<48x32xi1>, vector<48x32xf32>
    %241 = arith.select %236, %228, %195 : vector<48x32xi1>, vector<48x32xf32>
    %cst_47 = arith.constant 0.000000e+00 : f32
    %cst_48 = arith.constant -1.000000e+30 : f32
    %242 = vector.broadcast %cst_47 : f32 to vector<48x32xf32>
    %243 = vector.broadcast %cst_48 : f32 to vector<48x32xf32>
    %244 = arith.select %239, %242, %243 : vector<48x32xi1>, vector<48x32xf32>
    %245 = arith.select %236, %230, %244 : vector<48x32xi1>, vector<48x32xf32>
    %246 = arith.maximumf %200, %245 : vector<48x32xf32>
    %247 = vector.extract_strided_slice %5 {offsets = [240, 0], sizes = [48, 128], strides = [1, 1]} : vector<384x128xf32> to vector<48x128xf32>
    %248 = vector.extract_strided_slice %7 {offsets = [96, 0], sizes = [48, 128], strides = [1, 1]} : vector<384x128xf32> to vector<48x128xf32>
    %249 = arith.addf %247, %248 : vector<48x128xf32>
    %cst_49 = arith.constant dense<0.000000e+00> : vector<48x128xf32>
    %250 = tpu.matmul %240, %10, %cst_49 {dimension_numbers = #tpu.dot_dimension_numbers<[1], [0], [0], [1], [0, 0, 1, 1], [], []>} : vector<48x32xf32>, vector<32x128xf32>, vector<48x128xf32> -> vector<48x128xf32>
    %251 = arith.addf %249, %250 : vector<48x128xf32>
    %252 = vector.extract_strided_slice %251 {offsets = [0, 0], sizes = [48, 32], strides = [1, 1]} : vector<48x128xf32> to vector<48x32xf32>
    %253 = arith.negf %252 : vector<48x32xf32>
    %254 = math.exp %253 : vector<48x32xf32>
    %cst_50 = arith.constant 1.000000e+00 : f32
    %255 = vector.broadcast %cst_50 : f32 to vector<48x32xf32>
    %256 = arith.addf %255, %254 : vector<48x32xf32>
    %257 = arith.divf %255, %256 : vector<48x32xf32>
    %258 = vector.extract_strided_slice %251 {offsets = [0, 32], sizes = [48, 32], strides = [1, 1]} : vector<48x128xf32> to vector<48x32xf32>
    %259 = arith.negf %258 : vector<48x32xf32>
    %260 = math.exp %259 : vector<48x32xf32>
    %cst_51 = arith.constant 1.000000e+00 : f32
    %261 = vector.broadcast %cst_51 : f32 to vector<48x32xf32>
    %262 = arith.addf %261, %260 : vector<48x32xf32>
    %263 = arith.divf %261, %262 : vector<48x32xf32>
    %264 = vector.extract_strided_slice %251 {offsets = [0, 64], sizes = [48, 32], strides = [1, 1]} : vector<48x128xf32> to vector<48x32xf32>
    %265 = math.tanh %264 : vector<48x32xf32>
    %266 = vector.extract_strided_slice %251 {offsets = [0, 96], sizes = [48, 32], strides = [1, 1]} : vector<48x128xf32> to vector<48x32xf32>
    %267 = arith.negf %266 : vector<48x32xf32>
    %268 = math.exp %267 : vector<48x32xf32>
    %cst_52 = arith.constant 1.000000e+00 : f32
    %269 = vector.broadcast %cst_52 : f32 to vector<48x32xf32>
    %270 = arith.addf %269, %268 : vector<48x32xf32>
    %271 = arith.divf %269, %270 : vector<48x32xf32>
    %272 = arith.mulf %263, %241 : vector<48x32xf32>
    %273 = arith.mulf %257, %265 : vector<48x32xf32>
    %274 = arith.addf %272, %273 : vector<48x32xf32>
    %275 = math.tanh %274 : vector<48x32xf32>
    %276 = arith.mulf %271, %275 : vector<48x32xf32>
    %c5_i32_53 = arith.constant 5 : i32
    %c2_i32_54 = arith.constant 2 : i32
    %277 = vector.broadcast %c5_i32_53 : i32 to vector<1x32xi32>
    %278 = vector.broadcast %c2_i32_54 : i32 to vector<1x32xi32>
    %279 = arith.select %13, %277, %278 : vector<1x32xi1>, vector<1x32xi32>
    %280 = vector.broadcast %8 : vector<48x1xi32> to vector<48x32xi32>
    %281 = vector.broadcast %279 : vector<1x32xi32> to vector<48x32xi32>
    %282 = arith.cmpi sgt, %280, %281 : vector<48x32xi32>
    %283 = vector.broadcast %9 : vector<48x1xi32> to vector<48x32xi32>
    %284 = vector.broadcast %279 : vector<1x32xi32> to vector<48x32xi32>
    %285 = arith.cmpi sgt, %283, %284 : vector<48x32xi32>
    %286 = arith.select %282, %276, %240 : vector<48x32xi1>, vector<48x32xf32>
    %287 = arith.select %282, %274, %241 : vector<48x32xi1>, vector<48x32xf32>
    %cst_55 = arith.constant 0.000000e+00 : f32
    %cst_56 = arith.constant -1.000000e+30 : f32
    %288 = vector.broadcast %cst_55 : f32 to vector<48x32xf32>
    %289 = vector.broadcast %cst_56 : f32 to vector<48x32xf32>
    %290 = arith.select %285, %288, %289 : vector<48x32xi1>, vector<48x32xf32>
    %291 = arith.select %282, %276, %290 : vector<48x32xi1>, vector<48x32xf32>
    %292 = arith.maximumf %246, %291 : vector<48x32xf32>
    %293 = vector.extract_strided_slice %5 {offsets = [288, 0], sizes = [48, 128], strides = [1, 1]} : vector<384x128xf32> to vector<48x128xf32>
    %294 = vector.extract_strided_slice %7 {offsets = [48, 0], sizes = [48, 128], strides = [1, 1]} : vector<384x128xf32> to vector<48x128xf32>
    %295 = arith.addf %293, %294 : vector<48x128xf32>
    %cst_57 = arith.constant dense<0.000000e+00> : vector<48x128xf32>
    %296 = tpu.matmul %286, %10, %cst_57 {dimension_numbers = #tpu.dot_dimension_numbers<[1], [0], [0], [1], [0, 0, 1, 1], [], []>} : vector<48x32xf32>, vector<32x128xf32>, vector<48x128xf32> -> vector<48x128xf32>
    %297 = arith.addf %295, %296 : vector<48x128xf32>
    %298 = vector.extract_strided_slice %297 {offsets = [0, 0], sizes = [48, 32], strides = [1, 1]} : vector<48x128xf32> to vector<48x32xf32>
    %299 = arith.negf %298 : vector<48x32xf32>
    %300 = math.exp %299 : vector<48x32xf32>
    %cst_58 = arith.constant 1.000000e+00 : f32
    %301 = vector.broadcast %cst_58 : f32 to vector<48x32xf32>
    %302 = arith.addf %301, %300 : vector<48x32xf32>
    %303 = arith.divf %301, %302 : vector<48x32xf32>
    %304 = vector.extract_strided_slice %297 {offsets = [0, 32], sizes = [48, 32], strides = [1, 1]} : vector<48x128xf32> to vector<48x32xf32>
    %305 = arith.negf %304 : vector<48x32xf32>
    %306 = math.exp %305 : vector<48x32xf32>
    %cst_59 = arith.constant 1.000000e+00 : f32
    %307 = vector.broadcast %cst_59 : f32 to vector<48x32xf32>
    %308 = arith.addf %307, %306 : vector<48x32xf32>
    %309 = arith.divf %307, %308 : vector<48x32xf32>
    %310 = vector.extract_strided_slice %297 {offsets = [0, 64], sizes = [48, 32], strides = [1, 1]} : vector<48x128xf32> to vector<48x32xf32>
    %311 = math.tanh %310 : vector<48x32xf32>
    %312 = vector.extract_strided_slice %297 {offsets = [0, 96], sizes = [48, 32], strides = [1, 1]} : vector<48x128xf32> to vector<48x32xf32>
    %313 = arith.negf %312 : vector<48x32xf32>
    %314 = math.exp %313 : vector<48x32xf32>
    %cst_60 = arith.constant 1.000000e+00 : f32
    %315 = vector.broadcast %cst_60 : f32 to vector<48x32xf32>
    %316 = arith.addf %315, %314 : vector<48x32xf32>
    %317 = arith.divf %315, %316 : vector<48x32xf32>
    %318 = arith.mulf %309, %287 : vector<48x32xf32>
    %319 = arith.mulf %303, %311 : vector<48x32xf32>
    %320 = arith.addf %318, %319 : vector<48x32xf32>
    %321 = math.tanh %320 : vector<48x32xf32>
    %322 = arith.mulf %317, %321 : vector<48x32xf32>
    %c6_i32_61 = arith.constant 6 : i32
    %c1_i32_62 = arith.constant 1 : i32
    %323 = vector.broadcast %c6_i32_61 : i32 to vector<1x32xi32>
    %324 = vector.broadcast %c1_i32_62 : i32 to vector<1x32xi32>
    %325 = arith.select %13, %323, %324 : vector<1x32xi1>, vector<1x32xi32>
    %326 = vector.broadcast %8 : vector<48x1xi32> to vector<48x32xi32>
    %327 = vector.broadcast %325 : vector<1x32xi32> to vector<48x32xi32>
    %328 = arith.cmpi sgt, %326, %327 : vector<48x32xi32>
    %329 = vector.broadcast %9 : vector<48x1xi32> to vector<48x32xi32>
    %330 = vector.broadcast %325 : vector<1x32xi32> to vector<48x32xi32>
    %331 = arith.cmpi sgt, %329, %330 : vector<48x32xi32>
    %332 = arith.select %328, %322, %286 : vector<48x32xi1>, vector<48x32xf32>
    %333 = arith.select %328, %320, %287 : vector<48x32xi1>, vector<48x32xf32>
    %cst_63 = arith.constant 0.000000e+00 : f32
    %cst_64 = arith.constant -1.000000e+30 : f32
    %334 = vector.broadcast %cst_63 : f32 to vector<48x32xf32>
    %335 = vector.broadcast %cst_64 : f32 to vector<48x32xf32>
    %336 = arith.select %331, %334, %335 : vector<48x32xi1>, vector<48x32xf32>
    %337 = arith.select %328, %322, %336 : vector<48x32xi1>, vector<48x32xf32>
    %338 = arith.maximumf %292, %337 : vector<48x32xf32>
    %339 = vector.extract_strided_slice %5 {offsets = [336, 0], sizes = [48, 128], strides = [1, 1]} : vector<384x128xf32> to vector<48x128xf32>
    %340 = vector.extract_strided_slice %7 {offsets = [0, 0], sizes = [48, 128], strides = [1, 1]} : vector<384x128xf32> to vector<48x128xf32>
    %341 = arith.addf %339, %340 : vector<48x128xf32>
    %cst_65 = arith.constant dense<0.000000e+00> : vector<48x128xf32>
    %342 = tpu.matmul %332, %10, %cst_65 {dimension_numbers = #tpu.dot_dimension_numbers<[1], [0], [0], [1], [0, 0, 1, 1], [], []>} : vector<48x32xf32>, vector<32x128xf32>, vector<48x128xf32> -> vector<48x128xf32>
    %343 = arith.addf %341, %342 : vector<48x128xf32>
    %344 = vector.extract_strided_slice %343 {offsets = [0, 0], sizes = [48, 32], strides = [1, 1]} : vector<48x128xf32> to vector<48x32xf32>
    %345 = arith.negf %344 : vector<48x32xf32>
    %346 = math.exp %345 : vector<48x32xf32>
    %cst_66 = arith.constant 1.000000e+00 : f32
    %347 = vector.broadcast %cst_66 : f32 to vector<48x32xf32>
    %348 = arith.addf %347, %346 : vector<48x32xf32>
    %349 = arith.divf %347, %348 : vector<48x32xf32>
    %350 = vector.extract_strided_slice %343 {offsets = [0, 32], sizes = [48, 32], strides = [1, 1]} : vector<48x128xf32> to vector<48x32xf32>
    %351 = arith.negf %350 : vector<48x32xf32>
    %352 = math.exp %351 : vector<48x32xf32>
    %cst_67 = arith.constant 1.000000e+00 : f32
    %353 = vector.broadcast %cst_67 : f32 to vector<48x32xf32>
    %354 = arith.addf %353, %352 : vector<48x32xf32>
    %355 = arith.divf %353, %354 : vector<48x32xf32>
    %356 = vector.extract_strided_slice %343 {offsets = [0, 64], sizes = [48, 32], strides = [1, 1]} : vector<48x128xf32> to vector<48x32xf32>
    %357 = math.tanh %356 : vector<48x32xf32>
    %358 = vector.extract_strided_slice %343 {offsets = [0, 96], sizes = [48, 32], strides = [1, 1]} : vector<48x128xf32> to vector<48x32xf32>
    %359 = arith.negf %358 : vector<48x32xf32>
    %360 = math.exp %359 : vector<48x32xf32>
    %cst_68 = arith.constant 1.000000e+00 : f32
    %361 = vector.broadcast %cst_68 : f32 to vector<48x32xf32>
    %362 = arith.addf %361, %360 : vector<48x32xf32>
    %363 = arith.divf %361, %362 : vector<48x32xf32>
    %364 = arith.mulf %355, %333 : vector<48x32xf32>
    %365 = arith.mulf %349, %357 : vector<48x32xf32>
    %366 = arith.addf %364, %365 : vector<48x32xf32>
    %367 = math.tanh %366 : vector<48x32xf32>
    %368 = arith.mulf %363, %367 : vector<48x32xf32>
    %c7_i32_69 = arith.constant 7 : i32
    %c0_i32_70 = arith.constant 0 : i32
    %369 = vector.broadcast %c7_i32_69 : i32 to vector<1x32xi32>
    %370 = vector.broadcast %c0_i32_70 : i32 to vector<1x32xi32>
    %371 = arith.select %13, %369, %370 : vector<1x32xi1>, vector<1x32xi32>
    %372 = vector.broadcast %8 : vector<48x1xi32> to vector<48x32xi32>
    %373 = vector.broadcast %371 : vector<1x32xi32> to vector<48x32xi32>
    %374 = arith.cmpi sgt, %372, %373 : vector<48x32xi32>
    %375 = vector.broadcast %9 : vector<48x1xi32> to vector<48x32xi32>
    %376 = vector.broadcast %371 : vector<1x32xi32> to vector<48x32xi32>
    %377 = arith.cmpi sgt, %375, %376 : vector<48x32xi32>
    %cst_71 = arith.constant 0.000000e+00 : f32
    %cst_72 = arith.constant -1.000000e+30 : f32
    %378 = vector.broadcast %cst_71 : f32 to vector<48x32xf32>
    %379 = vector.broadcast %cst_72 : f32 to vector<48x32xf32>
    %380 = arith.select %377, %378, %379 : vector<48x32xi1>, vector<48x32xf32>
    %381 = arith.select %374, %368, %380 : vector<48x32xi1>, vector<48x32xf32>
    %382 = arith.maximumf %338, %381 : vector<48x32xf32>
    %c0_73 = arith.constant 0 : index
    %c0_74 = arith.constant 0 : index
    %383 = vector.load %arg10[%c0_73, %c0_74] : memref<32x128xf32, #tpu.memory_space<vmem>>, vector<32x128xf32>
    %c0_75 = arith.constant 0 : index
    %c0_76 = arith.constant 0 : index
    %384 = vector.load %arg7[%c0_75, %c0_76] : memref<8x1xi32, #tpu.memory_space<vmem>>, vector<8x1xi32>
    %c0_77 = arith.constant 0 : index
    %c0_78 = arith.constant 0 : index
    %385 = vector.load %arg9[%c0_77, %c0_78] : memref<32x128xf32, #tpu.memory_space<vmem>>, vector<32x128xf32>
    %cst_79 = arith.constant dense<0.000000e+00> : vector<48x128xf32>
    %386 = tpu.matmul %382, %385, %cst_79 {dimension_numbers = #tpu.dot_dimension_numbers<[1], [0], [0], [1], [0, 0, 1, 1], [], []>} : vector<48x32xf32>, vector<32x128xf32>, vector<48x128xf32> -> vector<48x128xf32>
    %c0_80 = arith.constant 0 : index
    %c0_81 = arith.constant 0 : index
    %387 = vector.load %arg11[%c0_80, %c0_81] : memref<1x128xf32, #tpu.memory_space<vmem>>, vector<1x128xf32>
    %388 = vector.broadcast %387 : vector<1x128xf32> to vector<48x128xf32>
    %389 = arith.addf %386, %388 : vector<48x128xf32>
    %cst_82 = arith.constant 0.000000e+00 : f32
    %390 = vector.broadcast %cst_82 : f32 to vector<8x32xf32>
    %cst_83 = arith.constant 0.000000e+00 : f32
    %391 = vector.broadcast %cst_83 : f32 to vector<8x32xf32>
    %392 = vector.extract_strided_slice %389 {offsets = [0, 0], sizes = [8, 128], strides = [1, 1]} : vector<48x128xf32> to vector<8x128xf32>
    %cst_84 = arith.constant dense<0.000000e+00> : vector<8x128xf32>
    %393 = tpu.matmul %390, %383, %cst_84 {dimension_numbers = #tpu.dot_dimension_numbers<[1], [0], [0], [1], [0, 0, 1, 1], [], []>} : vector<8x32xf32>, vector<32x128xf32>, vector<8x128xf32> -> vector<8x128xf32>
    %394 = arith.addf %392, %393 : vector<8x128xf32>
    %395 = vector.extract_strided_slice %394 {offsets = [0, 0], sizes = [8, 32], strides = [1, 1]} : vector<8x128xf32> to vector<8x32xf32>
    %396 = arith.negf %395 : vector<8x32xf32>
    %397 = math.exp %396 : vector<8x32xf32>
    %cst_85 = arith.constant 1.000000e+00 : f32
    %398 = vector.broadcast %cst_85 : f32 to vector<8x32xf32>
    %399 = arith.addf %398, %397 : vector<8x32xf32>
    %400 = arith.divf %398, %399 : vector<8x32xf32>
    %401 = vector.extract_strided_slice %394 {offsets = [0, 32], sizes = [8, 32], strides = [1, 1]} : vector<8x128xf32> to vector<8x32xf32>
    %402 = arith.negf %401 : vector<8x32xf32>
    %403 = math.exp %402 : vector<8x32xf32>
    %cst_86 = arith.constant 1.000000e+00 : f32
    %404 = vector.broadcast %cst_86 : f32 to vector<8x32xf32>
    %405 = arith.addf %404, %403 : vector<8x32xf32>
    %406 = arith.divf %404, %405 : vector<8x32xf32>
    %407 = vector.extract_strided_slice %394 {offsets = [0, 64], sizes = [8, 32], strides = [1, 1]} : vector<8x128xf32> to vector<8x32xf32>
    %408 = math.tanh %407 : vector<8x32xf32>
    %409 = vector.extract_strided_slice %394 {offsets = [0, 96], sizes = [8, 32], strides = [1, 1]} : vector<8x128xf32> to vector<8x32xf32>
    %410 = arith.negf %409 : vector<8x32xf32>
    %411 = math.exp %410 : vector<8x32xf32>
    %cst_87 = arith.constant 1.000000e+00 : f32
    %412 = vector.broadcast %cst_87 : f32 to vector<8x32xf32>
    %413 = arith.addf %412, %411 : vector<8x32xf32>
    %414 = arith.divf %412, %413 : vector<8x32xf32>
    %415 = arith.mulf %406, %391 : vector<8x32xf32>
    %416 = arith.mulf %400, %408 : vector<8x32xf32>
    %417 = arith.addf %415, %416 : vector<8x32xf32>
    %418 = math.tanh %417 : vector<8x32xf32>
    %419 = arith.mulf %414, %418 : vector<8x32xf32>
    %c0_i32_88 = arith.constant 0 : i32
    %420 = vector.broadcast %c0_i32_88 : i32 to vector<8x1xi32>
    %421 = arith.cmpi sgt, %384, %420 : vector<8x1xi32>
    %422 = vector.shape_cast %421 : vector<8x1xi1> to vector<8x1xi1>
    %423 = vector.broadcast %422 : vector<8x1xi1> to vector<8x32xi1>
    %424 = arith.select %423, %419, %390 : vector<8x32xi1>, vector<8x32xf32>
    %425 = vector.shape_cast %421 : vector<8x1xi1> to vector<8x1xi1>
    %426 = vector.broadcast %425 : vector<8x1xi1> to vector<8x32xi1>
    %427 = arith.select %426, %417, %391 : vector<8x32xi1>, vector<8x32xf32>
    %cst_89 = arith.constant 0.000000e+00 : f32
    %428 = vector.shape_cast %421 : vector<8x1xi1> to vector<8x1xi1>
    %429 = vector.broadcast %428 : vector<8x1xi1> to vector<8x32xi1>
    %430 = vector.broadcast %cst_89 : f32 to vector<8x32xf32>
    %431 = arith.select %429, %419, %430 : vector<8x32xi1>, vector<8x32xf32>
    %432 = vector.extract_strided_slice %389 {offsets = [8, 0], sizes = [8, 128], strides = [1, 1]} : vector<48x128xf32> to vector<8x128xf32>
    %cst_90 = arith.constant dense<0.000000e+00> : vector<8x128xf32>
    %433 = tpu.matmul %424, %383, %cst_90 {dimension_numbers = #tpu.dot_dimension_numbers<[1], [0], [0], [1], [0, 0, 1, 1], [], []>} : vector<8x32xf32>, vector<32x128xf32>, vector<8x128xf32> -> vector<8x128xf32>
    %434 = arith.addf %432, %433 : vector<8x128xf32>
    %435 = vector.extract_strided_slice %434 {offsets = [0, 0], sizes = [8, 32], strides = [1, 1]} : vector<8x128xf32> to vector<8x32xf32>
    %436 = arith.negf %435 : vector<8x32xf32>
    %437 = math.exp %436 : vector<8x32xf32>
    %cst_91 = arith.constant 1.000000e+00 : f32
    %438 = vector.broadcast %cst_91 : f32 to vector<8x32xf32>
    %439 = arith.addf %438, %437 : vector<8x32xf32>
    %440 = arith.divf %438, %439 : vector<8x32xf32>
    %441 = vector.extract_strided_slice %434 {offsets = [0, 32], sizes = [8, 32], strides = [1, 1]} : vector<8x128xf32> to vector<8x32xf32>
    %442 = arith.negf %441 : vector<8x32xf32>
    %443 = math.exp %442 : vector<8x32xf32>
    %cst_92 = arith.constant 1.000000e+00 : f32
    %444 = vector.broadcast %cst_92 : f32 to vector<8x32xf32>
    %445 = arith.addf %444, %443 : vector<8x32xf32>
    %446 = arith.divf %444, %445 : vector<8x32xf32>
    %447 = vector.extract_strided_slice %434 {offsets = [0, 64], sizes = [8, 32], strides = [1, 1]} : vector<8x128xf32> to vector<8x32xf32>
    %448 = math.tanh %447 : vector<8x32xf32>
    %449 = vector.extract_strided_slice %434 {offsets = [0, 96], sizes = [8, 32], strides = [1, 1]} : vector<8x128xf32> to vector<8x32xf32>
    %450 = arith.negf %449 : vector<8x32xf32>
    %451 = math.exp %450 : vector<8x32xf32>
    %cst_93 = arith.constant 1.000000e+00 : f32
    %452 = vector.broadcast %cst_93 : f32 to vector<8x32xf32>
    %453 = arith.addf %452, %451 : vector<8x32xf32>
    %454 = arith.divf %452, %453 : vector<8x32xf32>
    %455 = arith.mulf %446, %427 : vector<8x32xf32>
    %456 = arith.mulf %440, %448 : vector<8x32xf32>
    %457 = arith.addf %455, %456 : vector<8x32xf32>
    %458 = math.tanh %457 : vector<8x32xf32>
    %459 = arith.mulf %454, %458 : vector<8x32xf32>
    %c1_i32_94 = arith.constant 1 : i32
    %460 = vector.broadcast %c1_i32_94 : i32 to vector<8x1xi32>
    %461 = arith.cmpi sgt, %384, %460 : vector<8x1xi32>
    %462 = vector.shape_cast %461 : vector<8x1xi1> to vector<8x1xi1>
    %463 = vector.broadcast %462 : vector<8x1xi1> to vector<8x32xi1>
    %464 = arith.select %463, %459, %424 : vector<8x32xi1>, vector<8x32xf32>
    %465 = vector.shape_cast %461 : vector<8x1xi1> to vector<8x1xi1>
    %466 = vector.broadcast %465 : vector<8x1xi1> to vector<8x32xi1>
    %467 = arith.select %466, %457, %427 : vector<8x32xi1>, vector<8x32xf32>
    %cst_95 = arith.constant 0.000000e+00 : f32
    %468 = vector.shape_cast %461 : vector<8x1xi1> to vector<8x1xi1>
    %469 = vector.broadcast %468 : vector<8x1xi1> to vector<8x32xi1>
    %470 = vector.broadcast %cst_95 : f32 to vector<8x32xf32>
    %471 = arith.select %469, %459, %470 : vector<8x32xi1>, vector<8x32xf32>
    %472 = vector.extract_strided_slice %389 {offsets = [16, 0], sizes = [8, 128], strides = [1, 1]} : vector<48x128xf32> to vector<8x128xf32>
    %cst_96 = arith.constant dense<0.000000e+00> : vector<8x128xf32>
    %473 = tpu.matmul %464, %383, %cst_96 {dimension_numbers = #tpu.dot_dimension_numbers<[1], [0], [0], [1], [0, 0, 1, 1], [], []>} : vector<8x32xf32>, vector<32x128xf32>, vector<8x128xf32> -> vector<8x128xf32>
    %474 = arith.addf %472, %473 : vector<8x128xf32>
    %475 = vector.extract_strided_slice %474 {offsets = [0, 0], sizes = [8, 32], strides = [1, 1]} : vector<8x128xf32> to vector<8x32xf32>
    %476 = arith.negf %475 : vector<8x32xf32>
    %477 = math.exp %476 : vector<8x32xf32>
    %cst_97 = arith.constant 1.000000e+00 : f32
    %478 = vector.broadcast %cst_97 : f32 to vector<8x32xf32>
    %479 = arith.addf %478, %477 : vector<8x32xf32>
    %480 = arith.divf %478, %479 : vector<8x32xf32>
    %481 = vector.extract_strided_slice %474 {offsets = [0, 32], sizes = [8, 32], strides = [1, 1]} : vector<8x128xf32> to vector<8x32xf32>
    %482 = arith.negf %481 : vector<8x32xf32>
    %483 = math.exp %482 : vector<8x32xf32>
    %cst_98 = arith.constant 1.000000e+00 : f32
    %484 = vector.broadcast %cst_98 : f32 to vector<8x32xf32>
    %485 = arith.addf %484, %483 : vector<8x32xf32>
    %486 = arith.divf %484, %485 : vector<8x32xf32>
    %487 = vector.extract_strided_slice %474 {offsets = [0, 64], sizes = [8, 32], strides = [1, 1]} : vector<8x128xf32> to vector<8x32xf32>
    %488 = math.tanh %487 : vector<8x32xf32>
    %489 = vector.extract_strided_slice %474 {offsets = [0, 96], sizes = [8, 32], strides = [1, 1]} : vector<8x128xf32> to vector<8x32xf32>
    %490 = arith.negf %489 : vector<8x32xf32>
    %491 = math.exp %490 : vector<8x32xf32>
    %cst_99 = arith.constant 1.000000e+00 : f32
    %492 = vector.broadcast %cst_99 : f32 to vector<8x32xf32>
    %493 = arith.addf %492, %491 : vector<8x32xf32>
    %494 = arith.divf %492, %493 : vector<8x32xf32>
    %495 = arith.mulf %486, %467 : vector<8x32xf32>
    %496 = arith.mulf %480, %488 : vector<8x32xf32>
    %497 = arith.addf %495, %496 : vector<8x32xf32>
    %498 = math.tanh %497 : vector<8x32xf32>
    %499 = arith.mulf %494, %498 : vector<8x32xf32>
    %c2_i32_100 = arith.constant 2 : i32
    %500 = vector.broadcast %c2_i32_100 : i32 to vector<8x1xi32>
    %501 = arith.cmpi sgt, %384, %500 : vector<8x1xi32>
    %502 = vector.shape_cast %501 : vector<8x1xi1> to vector<8x1xi1>
    %503 = vector.broadcast %502 : vector<8x1xi1> to vector<8x32xi1>
    %504 = arith.select %503, %499, %464 : vector<8x32xi1>, vector<8x32xf32>
    %505 = vector.shape_cast %501 : vector<8x1xi1> to vector<8x1xi1>
    %506 = vector.broadcast %505 : vector<8x1xi1> to vector<8x32xi1>
    %507 = arith.select %506, %497, %467 : vector<8x32xi1>, vector<8x32xf32>
    %cst_101 = arith.constant 0.000000e+00 : f32
    %508 = vector.shape_cast %501 : vector<8x1xi1> to vector<8x1xi1>
    %509 = vector.broadcast %508 : vector<8x1xi1> to vector<8x32xi1>
    %510 = vector.broadcast %cst_101 : f32 to vector<8x32xf32>
    %511 = arith.select %509, %499, %510 : vector<8x32xi1>, vector<8x32xf32>
    %512 = vector.extract_strided_slice %389 {offsets = [24, 0], sizes = [8, 128], strides = [1, 1]} : vector<48x128xf32> to vector<8x128xf32>
    %cst_102 = arith.constant dense<0.000000e+00> : vector<8x128xf32>
    %513 = tpu.matmul %504, %383, %cst_102 {dimension_numbers = #tpu.dot_dimension_numbers<[1], [0], [0], [1], [0, 0, 1, 1], [], []>} : vector<8x32xf32>, vector<32x128xf32>, vector<8x128xf32> -> vector<8x128xf32>
    %514 = arith.addf %512, %513 : vector<8x128xf32>
    %515 = vector.extract_strided_slice %514 {offsets = [0, 0], sizes = [8, 32], strides = [1, 1]} : vector<8x128xf32> to vector<8x32xf32>
    %516 = arith.negf %515 : vector<8x32xf32>
    %517 = math.exp %516 : vector<8x32xf32>
    %cst_103 = arith.constant 1.000000e+00 : f32
    %518 = vector.broadcast %cst_103 : f32 to vector<8x32xf32>
    %519 = arith.addf %518, %517 : vector<8x32xf32>
    %520 = arith.divf %518, %519 : vector<8x32xf32>
    %521 = vector.extract_strided_slice %514 {offsets = [0, 32], sizes = [8, 32], strides = [1, 1]} : vector<8x128xf32> to vector<8x32xf32>
    %522 = arith.negf %521 : vector<8x32xf32>
    %523 = math.exp %522 : vector<8x32xf32>
    %cst_104 = arith.constant 1.000000e+00 : f32
    %524 = vector.broadcast %cst_104 : f32 to vector<8x32xf32>
    %525 = arith.addf %524, %523 : vector<8x32xf32>
    %526 = arith.divf %524, %525 : vector<8x32xf32>
    %527 = vector.extract_strided_slice %514 {offsets = [0, 64], sizes = [8, 32], strides = [1, 1]} : vector<8x128xf32> to vector<8x32xf32>
    %528 = math.tanh %527 : vector<8x32xf32>
    %529 = vector.extract_strided_slice %514 {offsets = [0, 96], sizes = [8, 32], strides = [1, 1]} : vector<8x128xf32> to vector<8x32xf32>
    %530 = arith.negf %529 : vector<8x32xf32>
    %531 = math.exp %530 : vector<8x32xf32>
    %cst_105 = arith.constant 1.000000e+00 : f32
    %532 = vector.broadcast %cst_105 : f32 to vector<8x32xf32>
    %533 = arith.addf %532, %531 : vector<8x32xf32>
    %534 = arith.divf %532, %533 : vector<8x32xf32>
    %535 = arith.mulf %526, %507 : vector<8x32xf32>
    %536 = arith.mulf %520, %528 : vector<8x32xf32>
    %537 = arith.addf %535, %536 : vector<8x32xf32>
    %538 = math.tanh %537 : vector<8x32xf32>
    %539 = arith.mulf %534, %538 : vector<8x32xf32>
    %c3_i32_106 = arith.constant 3 : i32
    %540 = vector.broadcast %c3_i32_106 : i32 to vector<8x1xi32>
    %541 = arith.cmpi sgt, %384, %540 : vector<8x1xi32>
    %542 = vector.shape_cast %541 : vector<8x1xi1> to vector<8x1xi1>
    %543 = vector.broadcast %542 : vector<8x1xi1> to vector<8x32xi1>
    %544 = arith.select %543, %539, %504 : vector<8x32xi1>, vector<8x32xf32>
    %545 = vector.shape_cast %541 : vector<8x1xi1> to vector<8x1xi1>
    %546 = vector.broadcast %545 : vector<8x1xi1> to vector<8x32xi1>
    %547 = arith.select %546, %537, %507 : vector<8x32xi1>, vector<8x32xf32>
    %cst_107 = arith.constant 0.000000e+00 : f32
    %548 = vector.shape_cast %541 : vector<8x1xi1> to vector<8x1xi1>
    %549 = vector.broadcast %548 : vector<8x1xi1> to vector<8x32xi1>
    %550 = vector.broadcast %cst_107 : f32 to vector<8x32xf32>
    %551 = arith.select %549, %539, %550 : vector<8x32xi1>, vector<8x32xf32>
    %552 = vector.extract_strided_slice %389 {offsets = [32, 0], sizes = [8, 128], strides = [1, 1]} : vector<48x128xf32> to vector<8x128xf32>
    %cst_108 = arith.constant dense<0.000000e+00> : vector<8x128xf32>
    %553 = tpu.matmul %544, %383, %cst_108 {dimension_numbers = #tpu.dot_dimension_numbers<[1], [0], [0], [1], [0, 0, 1, 1], [], []>} : vector<8x32xf32>, vector<32x128xf32>, vector<8x128xf32> -> vector<8x128xf32>
    %554 = arith.addf %552, %553 : vector<8x128xf32>
    %555 = vector.extract_strided_slice %554 {offsets = [0, 0], sizes = [8, 32], strides = [1, 1]} : vector<8x128xf32> to vector<8x32xf32>
    %556 = arith.negf %555 : vector<8x32xf32>
    %557 = math.exp %556 : vector<8x32xf32>
    %cst_109 = arith.constant 1.000000e+00 : f32
    %558 = vector.broadcast %cst_109 : f32 to vector<8x32xf32>
    %559 = arith.addf %558, %557 : vector<8x32xf32>
    %560 = arith.divf %558, %559 : vector<8x32xf32>
    %561 = vector.extract_strided_slice %554 {offsets = [0, 32], sizes = [8, 32], strides = [1, 1]} : vector<8x128xf32> to vector<8x32xf32>
    %562 = arith.negf %561 : vector<8x32xf32>
    %563 = math.exp %562 : vector<8x32xf32>
    %cst_110 = arith.constant 1.000000e+00 : f32
    %564 = vector.broadcast %cst_110 : f32 to vector<8x32xf32>
    %565 = arith.addf %564, %563 : vector<8x32xf32>
    %566 = arith.divf %564, %565 : vector<8x32xf32>
    %567 = vector.extract_strided_slice %554 {offsets = [0, 64], sizes = [8, 32], strides = [1, 1]} : vector<8x128xf32> to vector<8x32xf32>
    %568 = math.tanh %567 : vector<8x32xf32>
    %569 = vector.extract_strided_slice %554 {offsets = [0, 96], sizes = [8, 32], strides = [1, 1]} : vector<8x128xf32> to vector<8x32xf32>
    %570 = arith.negf %569 : vector<8x32xf32>
    %571 = math.exp %570 : vector<8x32xf32>
    %cst_111 = arith.constant 1.000000e+00 : f32
    %572 = vector.broadcast %cst_111 : f32 to vector<8x32xf32>
    %573 = arith.addf %572, %571 : vector<8x32xf32>
    %574 = arith.divf %572, %573 : vector<8x32xf32>
    %575 = arith.mulf %566, %547 : vector<8x32xf32>
    %576 = arith.mulf %560, %568 : vector<8x32xf32>
    %577 = arith.addf %575, %576 : vector<8x32xf32>
    %578 = math.tanh %577 : vector<8x32xf32>
    %579 = arith.mulf %574, %578 : vector<8x32xf32>
    %c4_i32_112 = arith.constant 4 : i32
    %580 = vector.broadcast %c4_i32_112 : i32 to vector<8x1xi32>
    %581 = arith.cmpi sgt, %384, %580 : vector<8x1xi32>
    %582 = vector.shape_cast %581 : vector<8x1xi1> to vector<8x1xi1>
    %583 = vector.broadcast %582 : vector<8x1xi1> to vector<8x32xi1>
    %584 = arith.select %583, %579, %544 : vector<8x32xi1>, vector<8x32xf32>
    %585 = vector.shape_cast %581 : vector<8x1xi1> to vector<8x1xi1>
    %586 = vector.broadcast %585 : vector<8x1xi1> to vector<8x32xi1>
    %587 = arith.select %586, %577, %547 : vector<8x32xi1>, vector<8x32xf32>
    %cst_113 = arith.constant 0.000000e+00 : f32
    %588 = vector.shape_cast %581 : vector<8x1xi1> to vector<8x1xi1>
    %589 = vector.broadcast %588 : vector<8x1xi1> to vector<8x32xi1>
    %590 = vector.broadcast %cst_113 : f32 to vector<8x32xf32>
    %591 = arith.select %589, %579, %590 : vector<8x32xi1>, vector<8x32xf32>
    %592 = vector.extract_strided_slice %389 {offsets = [40, 0], sizes = [8, 128], strides = [1, 1]} : vector<48x128xf32> to vector<8x128xf32>
    %cst_114 = arith.constant dense<0.000000e+00> : vector<8x128xf32>
    %593 = tpu.matmul %584, %383, %cst_114 {dimension_numbers = #tpu.dot_dimension_numbers<[1], [0], [0], [1], [0, 0, 1, 1], [], []>} : vector<8x32xf32>, vector<32x128xf32>, vector<8x128xf32> -> vector<8x128xf32>
    %594 = arith.addf %592, %593 : vector<8x128xf32>
    %595 = vector.extract_strided_slice %594 {offsets = [0, 0], sizes = [8, 32], strides = [1, 1]} : vector<8x128xf32> to vector<8x32xf32>
    %596 = arith.negf %595 : vector<8x32xf32>
    %597 = math.exp %596 : vector<8x32xf32>
    %cst_115 = arith.constant 1.000000e+00 : f32
    %598 = vector.broadcast %cst_115 : f32 to vector<8x32xf32>
    %599 = arith.addf %598, %597 : vector<8x32xf32>
    %600 = arith.divf %598, %599 : vector<8x32xf32>
    %601 = vector.extract_strided_slice %594 {offsets = [0, 32], sizes = [8, 32], strides = [1, 1]} : vector<8x128xf32> to vector<8x32xf32>
    %602 = arith.negf %601 : vector<8x32xf32>
    %603 = math.exp %602 : vector<8x32xf32>
    %cst_116 = arith.constant 1.000000e+00 : f32
    %604 = vector.broadcast %cst_116 : f32 to vector<8x32xf32>
    %605 = arith.addf %604, %603 : vector<8x32xf32>
    %606 = arith.divf %604, %605 : vector<8x32xf32>
    %607 = vector.extract_strided_slice %594 {offsets = [0, 64], sizes = [8, 32], strides = [1, 1]} : vector<8x128xf32> to vector<8x32xf32>
    %608 = math.tanh %607 : vector<8x32xf32>
    %609 = vector.extract_strided_slice %594 {offsets = [0, 96], sizes = [8, 32], strides = [1, 1]} : vector<8x128xf32> to vector<8x32xf32>
    %610 = arith.negf %609 : vector<8x32xf32>
    %611 = math.exp %610 : vector<8x32xf32>
    %cst_117 = arith.constant 1.000000e+00 : f32
    %612 = vector.broadcast %cst_117 : f32 to vector<8x32xf32>
    %613 = arith.addf %612, %611 : vector<8x32xf32>
    %614 = arith.divf %612, %613 : vector<8x32xf32>
    %615 = arith.mulf %606, %587 : vector<8x32xf32>
    %616 = arith.mulf %600, %608 : vector<8x32xf32>
    %617 = arith.addf %615, %616 : vector<8x32xf32>
    %618 = math.tanh %617 : vector<8x32xf32>
    %619 = arith.mulf %614, %618 : vector<8x32xf32>
    %c5_i32_118 = arith.constant 5 : i32
    %620 = vector.broadcast %c5_i32_118 : i32 to vector<8x1xi32>
    %621 = arith.cmpi sgt, %384, %620 : vector<8x1xi32>
    %cst_119 = arith.constant 0.000000e+00 : f32
    %622 = vector.shape_cast %621 : vector<8x1xi1> to vector<8x1xi1>
    %623 = vector.broadcast %622 : vector<8x1xi1> to vector<8x32xi1>
    %624 = vector.broadcast %cst_119 : f32 to vector<8x32xf32>
    %625 = arith.select %623, %619, %624 : vector<8x32xi1>, vector<8x32xf32>
    %626 = tpu.concatenate %431, %471, %511, %551, %591, %625 in 0 : vector<8x32xf32>, vector<8x32xf32>, vector<8x32xf32>, vector<8x32xf32>, vector<8x32xf32>, vector<8x32xf32> -> vector<48x32xf32>
    %c0_120 = arith.constant 0 : index
    %c0_121 = arith.constant 0 : index
    %627 = vector.load %arg12[%c0_120, %c0_121] : memref<1x32xf32, #tpu.memory_space<vmem>>, vector<1x32xf32>
    %628 = vector.broadcast %627 : vector<1x32xf32> to vector<48x32xf32>
    %629 = arith.mulf %626, %628 : vector<48x32xf32>
    %cst_122 = arith.constant dense<0.000000e+00> : vector<48xf32>
    %630 = vector.multi_reduction <add>, %629, %cst_122 [1] : vector<48x32xf32> to vector<48xf32>
    %631 = vector.shape_cast %630 : vector<48xf32> to vector<48x1xf32>
    %c0_123 = arith.constant 0 : index
    %c0_124 = arith.constant 0 : index
    %632 = vector.load %arg8[%c0_123, %c0_124] : memref<48x4xf32, #tpu.memory_space<vmem>>, vector<48x4xf32>
    %c0_125 = arith.constant 0 : index
    %c0_126 = arith.constant 0 : index
    %633 = vector.load %arg13[%c0_125, %c0_126] : memref<1x4xf32, #tpu.memory_space<vmem>>, vector<1x4xf32>
    %634 = vector.broadcast %633 : vector<1x4xf32> to vector<48x4xf32>
    %635 = arith.mulf %632, %634 : vector<48x4xf32>
    %cst_127 = arith.constant dense<0.000000e+00> : vector<48xf32>
    %636 = vector.multi_reduction <add>, %635, %cst_127 [1] : vector<48x4xf32> to vector<48xf32>
    %637 = vector.shape_cast %636 : vector<48xf32> to vector<48x1xf32>
    %638 = arith.addf %631, %637 : vector<48x1xf32>
    %c0_128 = arith.constant 0 : index
    %c0_129 = arith.constant 0 : index
    %639 = vector.load %arg14[%c0_128, %c0_129] : memref<1x1xf32, #tpu.memory_space<vmem>>, vector<1x1xf32>
    %640 = vector.broadcast %639 : vector<1x1xf32> to vector<48x1xf32>
    %641 = arith.addf %638, %640 : vector<48x1xf32>
    %c0_130 = arith.constant 0 : index
    %c0_131 = arith.constant 0 : index
    %642 = vector.load %arg15[%c0_130, %c0_131] : memref<48x1xf32, #tpu.memory_space<vmem>>, vector<48x1xf32>
    tpu.vector_store %arg15[%c0_130, %c0_131], %641 {strides = array<i32>} : memref<48x1xf32, #tpu.memory_space<vmem>>, vector<48x1xf32>,
    return
  }
}

</mosaic_0001>

<bundles_post_ra>
// kernel: hierarchical_lstm_forward.1
= control target key start
LH: loop header
LB: loop body
LE: loop exit
PB: predicated region body
PF: predicated region fallthrough
CT: control target
= control target key end

     0   :  { %vm109_vm0 = vcmask 130048   ;;  %v8973_v56 = vmov 0.0   ;;  %s6080_s29 = smov 64   ;;  %s6083_s18 = smov 96   ;;  %vm891_vm3 = vcmask 261120   ;;  %s8957_s3 = inlined_call_operand.vmem [shape: f32[16,128], index: 3, kind: input, shape index: {}]   ;;  %s8958_s4 = inlined_call_operand.vmem [shape: f32[16,128], index: 4, kind: input, shape index: {}]   ;;  %s8959_s0 = inlined_call_operand.vmem [shape: f32[384,16], index: 0, kind: input, shape index: {}]   ;;  %s8960_s5 = inlined_call_operand.vmem [shape: f32[32,128], index: 5, kind: input, shape index: {}]   ;;  %s8961_s6 = inlined_call_operand.vmem [shape: f32[1,128], index: 6, kind: input, shape index: {}]   ;;  %s8962_s1 = inlined_call_operand.vmem [shape: s32[48,1], index: 1, kind: input, shape index: {}]   ;;  %s8963_s2 = inlined_call_operand.vmem [shape: s32[48,1], index: 2, kind: input, shape index: {}]   ;;  %s8964_s9 = inlined_call_operand.vmem [shape: f32[32,128], index: 9, kind: input, shape index: {}]   ;;  %s8965_s10 = inlined_call_operand.vmem [shape: f32[32,128], index: 10, kind: input, shape index: {}]   ;;  %s8966_s11 = inlined_call_operand.vmem [shape: f32[1,128], index: 11, kind: input, shape index: {}]   ;;  %s8967_s7 = inlined_call_operand.vmem [shape: s32[8,1], index: 7, kind: input, shape index: {}]   ;;  %s8968_s12 = inlined_call_operand.vmem [shape: f32[1,32], index: 12, kind: input, shape index: {}]   ;;  %s8969_s8 = inlined_call_operand.vmem [shape: f32[48,4], index: 8, kind: input, shape index: {}]   ;;  %s8970_s13 = inlined_call_operand.vmem [shape: f32[1,4], index: 13, kind: input, shape index: {}]   ;;  %s8971_s14 = inlined_call_operand.<no memory space> [shape: f32[1,1], index: 14, kind: input, shape index: {}]   ;;  %s8972_s15 = inlined_call_operand.vmem [shape: f32[48,1], index: 15, kind: output, shape index: {}]  }
   0x1   :  { %v101_v0 = vld [vmem:[%s8957_s3 + $0x8] sm:$0xff]  ;;  %v100_v2 = vld [vmem:[%s8957_s3] sm:$0xff]  ;;  %v6195_v6 = vld [vmem:[%s8960_s5 + $0x18] sm:$0xff]  ;;  %s6081_s3 = smov 32  }
   0x2   :  { %v560_v1 = vld [vmem:[%s8958_s4 + $0x8] sm:$0xff]  ;;  %5247 = vmatprep.subr.mxu0 %v101_v0  ;;  %v559_v3 = vld [vmem:[%s8958_s4] sm:$0xff]  ;;  %v54_v7 = vld [vmem:[%s8959_s0 + $0x10] sm:$0xff] }
   0x3   :  { %5323 = vmatprep.subr.mxu1 %v560_v1  ;;  %v52_v4 = vld [vmem:[%s8959_s0] sm:$0xff]  ;;  %5248 = vmatpush3.msra.mxu0 %v101_v0  ;;  %v53_v5 = vld [vmem:[%s8959_s0 + $0x8] sm:$0xff]  ;;  %v6206_v8 = vld [vmem:[%s8960_s5 + $0x10] sm:$0xff] }
   0x4   :  { %5324 = vmatpush3.msra.mxu1 %v560_v1  ;;  %5249 = vmatprep.subr.mxu0 %v100_v2  ;;  %v55_v9 = vld [vmem:[%s8959_s0 + $0x18] sm:$0xff]  ;;  %v56_v10 = vld [vmem:[%s8959_s0 + $0x20] sm:$0xff]  ;;  %v6225_v11 = vld [vmem:[%s8960_s5 + $0x8] sm:$0xff] }
   0x5   :  { %5325 = vmatprep.subr.mxu1 %v559_v3  ;;  %5250 = vmatpush3.msra.mxu0 %v100_v2  ;;  %v57_v12 = vld [vmem:[%s8959_s0 + $0x28] sm:$0xff]  ;;  %v58_v13 = vld [vmem:[%s8959_s0 + $0x30] sm:$0xff]  ;;  %v59_v14 = vld [vmem:[%s8959_s0 + $0x38] sm:$0xff] }
   0x6   :  { %5251 = vmatprep.mubr.msk.f32.mxu0 %vm109_vm0, %v52_v4  ;;  %5326 = vmatpush3.msra.mxu1 %v559_v3  ;;  %v6249_v15 = vld [vmem:[%s8960_s5] sm:$0xff]  ;;  %v61_v17 = vld [vmem:[%s8959_s0 + $0x48] sm:$0xff]  ;;  %v62_v18 = vld [vmem:[%s8959_s0 + $0x50] sm:$0xff] }
   0x7   :  { %5327 = vmatprep.mubr.msk.f32.mxu1 %vm109_vm0, %v52_v4  ;;  %5252 = vmatmul.mubr.msk.f32.vlgmr.msra.gmra.mxu0 %vm109_vm0, %v53_v5  ;;  %v60_v16 = vld [vmem:[%s8959_s0 + $0x40] sm:$0xff]  ;;  %v63_v19 = vld [vmem:[%s8959_s0 + $0x58] sm:$0xff]  ;;  %v65_v21 = vld [vmem:[%s8959_s0 + $0x68] sm:$0xff] }
   0x8   :  { %5328 = vmatmul.mubr.msk.f32.vlgmr.msra.gmra.mxu1 %vm109_vm0, %v53_v5  ;;  %5399 = vmatprep.subr.mxu0 %v6195_v6  ;;  %v64_v20 = vld [vmem:[%s8959_s0 + $0x60] sm:$0xff]  ;;  %v66_v22 = vld [vmem:[%s8959_s0 + $0x70] sm:$0xff]  ;;  %v67_v23 = vld [vmem:[%s8959_s0 + $0x78] sm:$0xff] }
   0x9   :  { %5254 = vmatprep.mubr.msk.f32.mxu0 %vm109_vm0, %v54_v7  ;;  %5400 = vmatpush3.msra.mxu0 %v6195_v6  ;;  %v68_v24 = vld [vmem:[%s8959_s0 + $0x80] sm:$0xff]  ;;  %v69_v25 = vld [vmem:[%s8959_s0 + $0x88] sm:$0xff]  ;;  %v70_v26 = vld [vmem:[%s8959_s0 + $0x90] sm:$0xff] }
   0xa   :  { %5330 = vmatprep.mubr.msk.f32.mxu1 %vm109_vm0, %v54_v7  ;;  %5401 = vmatprep.subr.mxu0 %v6206_v8  ;;  %v71_v27 = vld [vmem:[%s8959_s0 + $0x98] sm:$0xff]  ;;  %v72_v28 = vld [vmem:[%s8959_s0 + $0xa0] sm:$0xff]  ;;  %v73_v29 = vld [vmem:[%s8959_s0 + $0xa8] sm:$0xff] }
   0xb   :  { %5416 = vmatprep.subr.mxu1 %v6195_v6  ;;  %5255 = vmatmul.mubr.msk.f32.gmra.mxu0 %vm109_vm0, %v55_v9  ;;  %v74_v30 = vld [vmem:[%s8959_s0 + $0xb0] sm:$0xff]  ;;  %v75_v31 = vld [vmem:[%s8959_s0 + $0xb8] sm:$0xff]  ;;  %v76_v32 = vld [vmem:[%s8959_s0 + $0xc0] sm:$0xff] }
   0xc   :  { %5331 = vmatmul.mubr.msk.f32.gmra.mxu1 %vm109_vm0, %v55_v9  ;;  %5257 = vmatprep.mubr.msk.f32.mxu0 %vm109_vm0, %v56_v10  ;;  %v77_v33 = vld [vmem:[%s8959_s0 + $0xc8] sm:$0xff]  ;;  %v78_v34 = vld [vmem:[%s8959_s0 + $0xd0] sm:$0xff]  ;;  %v79_v35 = vld [vmem:[%s8959_s0 + $0xd8] sm:$0xff] }
   0xd   :  { %5333 = vmatprep.mubr.msk.f32.mxu1 %vm109_vm0, %v56_v10  ;;  %5402 = vmatpush3.msra.mxu0 %v6206_v8  ;;  %v80_v36 = vld [vmem:[%s8959_s0 + $0xe0] sm:$0xff]  ;;  %v81_v37 = vld [vmem:[%s8959_s0 + $0xe8] sm:$0xff]  ;;  %v82_v38 = vld [vmem:[%s8959_s0 + $0xf0] sm:$0xff] }
   0xe   :  { %5417 = vmatpush3.msra.mxu1 %v6195_v6  ;;  %5403 = vmatprep.subr.mxu0 %v6225_v11  ;;  %v83_v39 = vld [vmem:[%s8959_s0 + $0xf8] sm:$0xff]  ;;  %v84_v40 = vld [vmem:[%s8959_s0 + $0x100] sm:$0xff]  ;;  %v85_v41 = vld [vmem:[%s8959_s0 + $0x108] sm:$0xff] }
   0xf   :  { %5418 = vmatprep.subr.mxu1 %v6206_v8  ;;  %5258 = vmatmul.mubr.msk.f32.gmra.mxu0 %vm109_vm0, %v57_v12  ;;  %v86_v42 = vld [vmem:[%s8959_s0 + $0x110] sm:$0xff]  ;;  %v87_v43 = vld [vmem:[%s8959_s0 + $0x118] sm:$0xff]  ;;  %v88_v44 = vld [vmem:[%s8959_s0 + $0x120] sm:$0xff] }
  0x10   :  { %5334 = vmatmul.mubr.msk.f32.gmra.mxu1 %vm109_vm0, %v57_v12  ;;  %5260 = vmatprep.mubr.msk.f32.mxu0 %vm109_vm0, %v58_v13  ;;  %v89_v45 = vld [vmem:[%s8959_s0 + $0x128] sm:$0xff]  ;;  %v90_v46 = vld [vmem:[%s8959_s0 + $0x130] sm:$0xff]  ;;  %v91_v47 = vld [vmem:[%s8959_s0 + $0x138] sm:$0xff] }
  0x11   :  { %5336 = vmatprep.mubr.msk.f32.mxu1 %vm109_vm0, %v58_v13  ;;  %5404 = vmatpush3.msra.mxu0 %v6225_v11  ;;  %v92_v48 = vld [vmem:[%s8959_s0 + $0x140] sm:$0xff]  ;;  %v93_v49 = vld [vmem:[%s8959_s0 + $0x148] sm:$0xff]  ;;  %v94_v50 = vld [vmem:[%s8959_s0 + $0x150] sm:$0xff] }
  0x12   :  { %5419 = vmatpush3.msra.mxu1 %v6206_v8  ;;  %5405 = vmatprep.subr.mxu0 %v6249_v15  ;;  %v95_v51 = vld [vmem:[%s8959_s0 + $0x158] sm:$0xff]  ;;  %v96_v52 = vld [vmem:[%s8959_s0 + $0x160] sm:$0xff]  ;;  %v97_v53 = vld [vmem:[%s8959_s0 + $0x168] sm:$0xff] }
  0x13   :  { %5420 = vmatprep.subr.mxu1 %v6225_v11  ;;  %5261 = vmatmul.mubr.msk.f32.gmra.mxu0 %vm109_vm0, %v59_v14  ;;  %v98_v54 = vld [vmem:[%s8959_s0 + $0x170] sm:$0xff]  ;;  %v99_v55 = vld [vmem:[%s8959_s0 + $0x178] sm:$0xff] }
  0x14   :  { %5337 = vmatmul.mubr.msk.f32.gmra.mxu1 %vm109_vm0, %v59_v14  ;;  %5263 = vmatprep.mubr.msk.f32.mxu0 %vm109_vm0, %v60_v16 }
  0x15   :  { %5339 = vmatprep.mubr.msk.f32.mxu1 %vm109_vm0, %v60_v16  ;;  %5406 = vmatpush3.msra.mxu0 %v6249_v15 }
  0x16   :  { %5421 = vmatpush3.msra.mxu1 %v6225_v11  ;;  %5433 = vmatprep.subr.mxu0 %v6195_v6 }
  0x17   :  { %5422 = vmatprep.subr.mxu1 %v6249_v15  ;;  %5264 = vmatmul.mubr.msk.f32.gmra.mxu0 %vm109_vm0, %v61_v17 }
  0x18   :  { %5340 = vmatmul.mubr.msk.f32.gmra.mxu1 %vm109_vm0, %v61_v17  ;;  %5266 = vmatprep.mubr.msk.f32.mxu0 %vm109_vm0, %v62_v18 }
  0x19   :  { %5342 = vmatprep.mubr.msk.f32.mxu1 %vm109_vm0, %v62_v18  ;;  %5423 = vmatpush3.msra.mxu1 %v6249_v15 }
  0x1a   :  { %5450 = vmatprep.subr.mxu1 %v6195_v6 }
  0x1b   :  { %5267 = vmatmul.mubr.msk.f32.gmra.mxu0 %vm109_vm0, %v63_v19 }
  0x1c   :  { %5343 = vmatmul.mubr.msk.f32.gmra.mxu1 %vm109_vm0, %v63_v19  ;;  %5269 = vmatprep.mubr.msk.f32.mxu0 %vm109_vm0, %v64_v20 }
  0x1d   :  { %5345 = vmatprep.mubr.msk.f32.mxu1 %vm109_vm0, %v64_v20 }
  0x1f   :  { %5270 = vmatmul.mubr.msk.f32.gmra.mxu0 %vm109_vm0, %v65_v21 }
  0x20   :  { %5346 = vmatmul.mubr.msk.f32.gmra.mxu1 %vm109_vm0, %v65_v21  ;;  %5272 = vmatprep.mubr.msk.f32.mxu0 %vm109_vm0, %v66_v22 }
  0x21   :  { %5348 = vmatprep.mubr.msk.f32.mxu1 %vm109_vm0, %v66_v22 }
  0x23   :  { %5273 = vmatmul.mubr.msk.f32.gmra.mxu0 %vm109_vm0, %v67_v23 }
  0x24   :  { %5349 = vmatmul.mubr.msk.f32.gmra.mxu1 %vm109_vm0, %v67_v23  ;;  %5275 = vmatprep.mubr.msk.f32.mxu0 %vm109_vm0, %v68_v24 }
  0x25   :  { %5351 = vmatprep.mubr.msk.f32.mxu1 %vm109_vm0, %v68_v24 }
  0x27   :  { %5276 = vmatmul.mubr.msk.f32.gmra.mxu0 %vm109_vm0, %v69_v25 }
  0x28   :  { %5352 = vmatmul.mubr.msk.f32.gmra.mxu1 %vm109_vm0, %v69_v25  ;;  %5278 = vmatprep.mubr.msk.f32.mxu0 %vm109_vm0, %v70_v26 }
  0x29   :  { %5354 = vmatprep.mubr.msk.f32.mxu1 %vm109_vm0, %v70_v26 }
  0x2b   :  { %5279 = vmatmul.mubr.msk.f32.gmra.mxu0 %vm109_vm0, %v71_v27 }
  0x2c   :  { %5355 = vmatmul.mubr.msk.f32.gmra.mxu1 %vm109_vm0, %v71_v27  ;;  %5281 = vmatprep.mubr.msk.f32.mxu0 %vm109_vm0, %v72_v28 }
  0x2d   :  { %5357 = vmatprep.mubr.msk.f32.mxu1 %vm109_vm0, %v72_v28 }
  0x2f   :  { %5282 = vmatmul.mubr.msk.f32.gmra.mxu0 %vm109_vm0, %v73_v29 }
  0x30   :  { %5358 = vmatmul.mubr.msk.f32.gmra.mxu1 %vm109_vm0, %v73_v29  ;;  %5284 = vmatprep.mubr.msk.f32.mxu0 %vm109_vm0, %v74_v30 }
  0x31   :  { %5360 = vmatprep.mubr.msk.f32.mxu1 %vm109_vm0, %v74_v30 }
  0x33   :  { %5285 = vmatmul.mubr.msk.f32.gmra.mxu0 %vm109_vm0, %v75_v31 }
  0x34   :  { %5361 = vmatmul.mubr.msk.f32.gmra.mxu1 %vm109_vm0, %v75_v31  ;;  %5287 = vmatprep.mubr.msk.f32.mxu0 %vm109_vm0, %v76_v32 }
  0x35   :  { %5363 = vmatprep.mubr.msk.f32.mxu1 %vm109_vm0, %v76_v32 }
  0x37   :  { %5288 = vmatmul.mubr.msk.f32.gmra.mxu0 %vm109_vm0, %v77_v33 }
  0x38   :  { %5364 = vmatmul.mubr.msk.f32.gmra.mxu1 %vm109_vm0, %v77_v33  ;;  %5290 = vmatprep.mubr.msk.f32.mxu0 %vm109_vm0, %v78_v34 }
  0x39   :  { %5366 = vmatprep.mubr.msk.f32.mxu1 %vm109_vm0, %v78_v34 }
  0x3b   :  { %5291 = vmatmul.mubr.msk.f32.gmra.mxu0 %vm109_vm0, %v79_v35 }
  0x3c   :  { %5367 = vmatmul.mubr.msk.f32.gmra.mxu1 %vm109_vm0, %v79_v35  ;;  %5293 = vmatprep.mubr.msk.f32.mxu0 %vm109_vm0, %v80_v36 }
  0x3d   :  { %5369 = vmatprep.mubr.msk.f32.mxu1 %vm109_vm0, %v80_v36 }
  0x3f   :  { %5294 = vmatmul.mubr.msk.f32.gmra.mxu0 %vm109_vm0, %v81_v37 }
  0x40   :  { %5370 = vmatmul.mubr.msk.f32.gmra.mxu1 %vm109_vm0, %v81_v37  ;;  %5296 = vmatprep.mubr.msk.f32.mxu0 %vm109_vm0, %v82_v38 }
  0x41   :  { %5372 = vmatprep.mubr.msk.f32.mxu1 %vm109_vm0, %v82_v38 }
  0x43   :  { %5297 = vmatmul.mubr.msk.f32.gmra.mxu0 %vm109_vm0, %v83_v39 }
  0x44   :  { %5373 = vmatmul.mubr.msk.f32.gmra.mxu1 %vm109_vm0, %v83_v39  ;;  %5299 = vmatprep.mubr.msk.f32.mxu0 %vm109_vm0, %v84_v40 }
  0x45   :  { %5375 = vmatprep.mubr.msk.f32.mxu1 %vm109_vm0, %v84_v40 }
  0x47   :  { %5300 = vmatmul.mubr.msk.f32.gmra.mxu0 %vm109_vm0, %v85_v41 }
  0x48   :  { %5376 = vmatmul.mubr.msk.f32.gmra.mxu1 %vm109_vm0, %v85_v41  ;;  %5302 = vmatprep.mubr.msk.f32.mxu0 %vm109_vm0, %v86_v42 }
  0x49   :  { %5378 = vmatprep.mubr.msk.f32.mxu1 %vm109_vm0, %v86_v42 }
  0x4b   :  { %5303 = vmatmul.mubr.msk.f32.gmra.mxu0 %vm109_vm0, %v87_v43 }
  0x4c   :  { %5379 = vmatmul.mubr.msk.f32.gmra.mxu1 %vm109_vm0, %v87_v43  ;;  %5305 = vmatprep.mubr.msk.f32.mxu0 %vm109_vm0, %v88_v44  ;;  %v6548_v43 = vld [vmem:[%s8961_s6] ss:$0 sm:$0xff] }
  0x4d   :  { %5381 = vmatprep.mubr.msk.f32.mxu1 %vm109_vm0, %v88_v44 }
  0x4f   :  { %5306 = vmatmul.mubr.msk.f32.gmra.mxu0 %vm109_vm0, %v89_v45 }
  0x50   :  { %5382 = vmatmul.mubr.msk.f32.gmra.mxu1 %vm109_vm0, %v89_v45  ;;  %5308 = vmatprep.mubr.msk.f32.mxu0 %vm109_vm0, %v90_v46 }
  0x51   :  { %5384 = vmatprep.mubr.msk.f32.mxu1 %vm109_vm0, %v90_v46 }
  0x53   :  { %5309 = vmatmul.mubr.msk.f32.gmra.mxu0 %vm109_vm0, %v91_v47 }
  0x54   :  { %5385 = vmatmul.mubr.msk.f32.gmra.mxu1 %vm109_vm0, %v91_v47  ;;  %5311 = vmatprep.mubr.msk.f32.mxu0 %vm109_vm0, %v92_v48 }
  0x55   :  { %5387 = vmatprep.mubr.msk.f32.mxu1 %vm109_vm0, %v92_v48 }
  0x57   :  { %5312 = vmatmul.mubr.msk.f32.gmra.mxu0 %vm109_vm0, %v93_v49 }
  0x58   :  { %5388 = vmatmul.mubr.msk.f32.gmra.mxu1 %vm109_vm0, %v93_v49  ;;  %5314 = vmatprep.mubr.msk.f32.mxu0 %vm109_vm0, %v94_v50 }
  0x59   :  { %5390 = vmatprep.mubr.msk.f32.mxu1 %vm109_vm0, %v94_v50 }
  0x5b   :  { %5315 = vmatmul.mubr.msk.f32.gmra.mxu0 %vm109_vm0, %v95_v51 }
  0x5c   :  { %5391 = vmatmul.mubr.msk.f32.gmra.mxu1 %vm109_vm0, %v95_v51  ;;  %5317 = vmatprep.mubr.msk.f32.mxu0 %vm109_vm0, %v96_v52 }
  0x5d   :  { %5393 = vmatprep.mubr.msk.f32.mxu1 %vm109_vm0, %v96_v52 }
  0x5f   :  { %5318 = vmatmul.mubr.msk.f32.gmra.mxu0 %vm109_vm0, %v97_v53 }
  0x60   :  { %5394 = vmatmul.mubr.msk.f32.gmra.mxu1 %vm109_vm0, %v97_v53  ;;  %5320 = vmatprep.mubr.msk.f32.mxu0 %vm109_vm0, %v98_v54 }
  0x61   :  { %5396 = vmatprep.mubr.msk.f32.mxu1 %vm109_vm0, %v98_v54 }
  0x63   :  { %5321 = vmatmul.mubr.msk.f32.gmra.mxu0 %vm109_vm0, %v99_v55 }
  0x64   :  { %5397 = vmatmul.mubr.msk.f32.gmra.mxu1 %vm109_vm0, %v99_v55  ;;  %5407 = vmatprep.mubr.f32.mxu0 %v8973_v56 }
  0x67   :  { %5408 = vmatmul.mubr.f32.vlgmr.msra.gmra.mxu0 %v8973_v56 }
  0x68   :  { %5410 = vmatprep.mubr.f32.mxu0 %v8973_v56  ;;  %5434 = vmatpush3.msra.mxu0 %v6195_v6 }
  0x69   :  { %5435 = vmatprep.subr.mxu0 %v6206_v8 }
  0x6a   :  { %5436 = vmatpush3.msra.mxu0 %v6206_v8 }
  0x6b   :  { %5411 = vmatmul.mubr.f32.gmra.mxu0 %v8973_v56  ;;  %5437 = vmatprep.subr.mxu0 %v6225_v11 }
  0x6c   :  { %5413 = vmatprep.mubr.f32.mxu0 %v8973_v56  ;;  %5438 = vmatpush3.msra.mxu0 %v6225_v11 }
  0x6d   :  { %5439 = vmatprep.subr.mxu0 %v6249_v15 }
  0x6e   :  { %5440 = vmatpush3.msra.mxu0 %v6249_v15 }
  0x6f   :  { %5414 = vmatmul.mubr.f32.gmra.mxu0 %v8973_v56  ;;  %5467 = vmatprep.subr.mxu0 %v6195_v6 }
  0xc7   :  { %v6477_v57 = vpop.f32.mrf.mxu0 }
  0xc8   :  { %v6479_v58 = vpop.f32.mrf.mxu1 }
  0xc9   :  { %9030 = vst [vmem:[#allocation3_spill] sm:$0xff] %v6479_v58  ;;  %v6481_v59 = vpop.f32.mrf.mxu0 }
  0xca   :  { %v6483_v60 = vpop.f32.mrf.mxu1 }
  0xcb   :  { %9031 = vst [vmem:[#allocation4_spill] sm:$0xff] %v6483_v60  ;;  %v6485_v61 = vpop.f32.mrf.mxu0 }
  0xcc   :  { %v6487_v62 = vpop.f32.mrf.mxu1 }
  0xcd   :  { %9032 = vst [vmem:[#allocation5_spill] sm:$0xff] %v6487_v62  ;;  %v6489_v63 = vpop.f32.mrf.mxu0 }
  0xce   :  { %v6491_v0 = vpop.f32.mrf.mxu1 }
  0xcf   :  { %9033 = vst [vmem:[#allocation6_spill] sm:$0xff] %v6491_v0  ;;  %v6493_v1 = vpop.f32.mrf.mxu0 }
  0xd0   :  { %v6495_v2 = vpop.f32.mrf.mxu1 }
  0xd1   :  { %9034 = vst [vmem:[#allocation7_spill] sm:$0xff] %v6495_v2  ;;  %v6497_v3 = vpop.f32.mrf.mxu0 }
  0xd2   :  { %v6499_v4 = vpop.f32.mrf.mxu1 }
  0xd3   :  { %9035 = vst [vmem:[#allocation8_spill] sm:$0xff] %v6499_v4  ;;  %v6501_v5 = vpop.f32.mrf.mxu0 }
  0xd4   :  { %v6503_v7 = vpop.f32.mrf.mxu1 }
  0xd5   :  { %v6505_v9 = vpop.f32.mrf.mxu0 }
  0xd6   :  { %v6507_v10 = vpop.f32.mrf.mxu1 }
  0xd7   :  { %v6509_v12 = vpop.f32.mrf.mxu0 }
  0xd8   :  { %v6511_v13 = vpop.f32.mrf.mxu1 }
  0xd9   :  { %v6513_v14 = vpop.f32.mrf.mxu0 }
  0xda   :  { %v6515_v16 = vpop.f32.mrf.mxu1 }
  0xdb   :  { %v6517_v17 = vpop.f32.mrf.mxu0 }
  0xdc   :  { %v6519_v18 = vpop.f32.mrf.mxu1 }
  0xdd   :  { %v6521_v19 = vpop.f32.mrf.mxu0 }
  0xde   :  { %v6523_v20 = vpop.f32.mrf.mxu1 }
  0xdf   :  { %v5271_v21 = vpop.f32.mrf.mxu0 }
  0xe0   :  { %v6525_v22 = vpop.f32.mrf.mxu1 }
  0xe1   :  { %v380_v23 = vpop.f32.mrf.mxu0 }
  0xe2   :  { %v6527_v24 = vpop.f32.mrf.mxu1 }
  0xe3   :  { %v6529_v25 = vpop.f32.mrf.mxu0 }
  0xe4   :  { %v6531_v26 = vpop.f32.mrf.mxu1 }
  0xe5   :  { %v6533_v27 = vpop.f32.mrf.mxu0 }
  0xe6   :  { %v6535_v28 = vpop.f32.mrf.mxu1 }
  0xe7   :  { %v6537_v29 = vpop.f32.mrf.mxu0 }
  0xe8   :  { %v6539_v30 = vpop.f32.mrf.mxu1 }
  0xe9   :  { %v6541_v31 = vpop.f32.mrf.mxu0 }
  0xea   :  { %v6543_v32 = vpop.f32.mrf.mxu1 }
  0xeb   :  { %v5280_v33 = vpop.f32.mrf.mxu0 }
  0xec   :  { %v5356_v34 = vpop.f32.mrf.mxu1  ;;  %v416_v46 = vadd.f32 %v5280_v33, %v6548_v43 }
  0xed   :  { %v410_v35 = vpop.f32.mrf.mxu0 }
  0xee   :  { %v717_v36 = vpop.f32.mrf.mxu1  ;;  %v411_v49 = vadd.f32 %v6548_v43, %v410_v35 }
  0xef   :  { %v5283_v37 = vpop.f32.mrf.mxu0 }
  0xf0   :  { %v5359_v38 = vpop.f32.mrf.mxu1  ;;  %v426_v54 = vadd.f32 %v5283_v37, %v6548_v43 }
  0xf1   :  { %v420_v39 = vpop.f32.mrf.mxu0 }
  0xf2   :  { %v727_v40 = vpop.f32.mrf.mxu1  ;;  %v421_v2 = vadd.f32 %v6548_v43, %v420_v39 }
  0xf3   :  { %v5286_v41 = vpop.f32.mrf.mxu0 }
  0xf4   :  { %v5362_v42 = vpop.f32.mrf.mxu1  ;;  %v436_v37 = vadd.f32 %v5286_v41, %v6548_v43  ;;  %v386_v41 = vadd.f32 %v5271_v21, %v6548_v43  ;;  %v396_v21 = vadd.f32 %v6529_v25, %v6548_v43 }
  0xf5   :  { %v430_v44 = vpop.f32.mrf.mxu0 }
  0xf6   :  { %v737_v45 = vpop.f32.mrf.mxu1  ;;  %v431_v39 = vadd.f32 %v6548_v43, %v430_v44  ;;  %v381_v44 = vadd.f32 %v6548_v43, %v380_v23 }
  0xf7   :  { %v5289_v47 = vpop.f32.mrf.mxu0 }
  0xf8   :  { %v5365_v48 = vpop.f32.mrf.mxu1  ;;  %v446_v50 = vadd.f32 %v5289_v47, %v6548_v43 }
  0xf9   :  { %v6553_v51 = vadd.f32 %v5365_v48, %v416_v46  ;;  %v440_v52 = vpop.f32.mrf.mxu0 }
  0xfa   :  { %v747_v53 = vpop.f32.mrf.mxu1  ;;  %v441_v55 = vadd.f32 %v6548_v43, %v440_v52  ;;  %v6559_v0 = vadd.f32 %v5356_v34, %v446_v50 }
  0xfb   :  { %v6557_v56 = vadd.f32 %v747_v53, %v411_v49  ;;  %v5292_v4 = vpop.f32.mrf.mxu0 }
  0xfc   :  { %v5368_v33 = vpop.f32.mrf.mxu1  ;;  %v456_v35 = vadd.f32 %v5292_v4, %v6548_v43  ;;  %v6565_v46 = vadd.f32 %v717_v36, %v441_v55 }
  0xfd   :  { %v6563_v62 = vadd.f32 %v5368_v33, %v426_v54  ;;  %v450_v47 = vpop.f32.mrf.mxu0 }
  0xfe   :  { %v757_v48 = vpop.f32.mrf.mxu1  ;;  %v451_v52 = vadd.f32 %v6548_v43, %v450_v47  ;;  %v6571_v34 = vadd.f32 %v5359_v38, %v456_v35 }
  0xff   :  { %v6569_v49 = vadd.f32 %v757_v48, %v421_v2  ;;  %v5295_v50 = vpop.f32.mrf.mxu0 }
 0x100   :  { %v5371_v53 = vpop.f32.mrf.mxu1  ;;  %v466_v4 = vadd.f32 %v5295_v50, %v6548_v43  ;;  %v6577_v36 = vadd.f32 %v727_v40, %v451_v52 }
 0x101   :  { %v6575_v54 = vadd.f32 %v5371_v53, %v436_v37  ;;  %v460_v55 = vpop.f32.mrf.mxu0 }
 0x102   :  { %v767_v33 = vpop.f32.mrf.mxu1  ;;  %v461_v47 = vadd.f32 %v6548_v43, %v460_v55  ;;  %v6583_v38 = vadd.f32 %v5362_v42, %v466_v4 }
 0x103   :  { %v6581_v2 = vadd.f32 %v767_v33, %v431_v39  ;;  %v5298_v35 = vpop.f32.mrf.mxu0  ;;  %v391_v33 = vadd.f32 %v6548_v43, %v6533_v27 }
 0x104   :  { %v5374_v48 = vpop.f32.mrf.mxu1  ;;  %v476_v50 = vadd.f32 %v5298_v35, %v6548_v43  ;;  %v6589_v40 = vadd.f32 %v737_v45, %v461_v47 }
 0x105   :  { %v6587_v37 = vadd.f32 %v5374_v48, %v386_v41  ;;  %v470_v52 = vpop.f32.mrf.mxu0  ;;  %v406_v48 = vadd.f32 %v6537_v29, %v6548_v43 }
 0x106   :  { %9036 = vst [vmem:[#allocation9_spill] sm:$0xff] %v6589_v40  ;;  %v777_v53 = vpop.f32.mrf.mxu1  ;;  %v471_v39 = vadd.f32 %v6548_v43, %v470_v52  ;;  %v6597_v42 = vadd.f32 %v6525_v22, %v476_v50 }
 0x107   :  { %v6594_v55 = vadd.f32 %v777_v53, %v381_v44  ;;  %v5301_v4 = vpop.f32.mrf.mxu0  ;;  %v401_v53 = vadd.f32 %v6548_v43, %v6541_v31 }
 0x108   :  { %v5377_v23 = vpop.f32.mrf.mxu1  ;;  %v486_v45 = vadd.f32 %v5301_v4, %v6548_v43  ;;  %v6605_v47 = vadd.f32 %v6527_v24, %v471_v39 }
 0x109   :  { %v6602_v41 = vadd.f32 %v5377_v23, %v396_v21  ;;  %v480_v25 = vpop.f32.mrf.mxu0  ;;  %v356_v23 = vadd.f32 %v6501_v5, %v6548_v43 }
 0x10a   :  { %v787_v35 = vpop.f32.mrf.mxu1  ;;  %v481_v22 = vadd.f32 %v6548_v43, %v480_v25  ;;  %v6613_v50 = vadd.f32 %v6531_v26, %v486_v45 }
 0x10b   :  { %v6610_v44 = vadd.f32 %v787_v35, %v391_v33  ;;  %v5304_v27 = vpop.f32.mrf.mxu0  ;;  %v351_v35 = vadd.f32 %v6548_v43, %v6505_v9 }
 0x10c   :  { %9037 = vst [vmem:[#allocation10_spill] sm:$0xff] %v6613_v50  ;;  %v5380_v52 = vpop.f32.mrf.mxu1  ;;  %v496_v24 = vadd.f32 %v5304_v27, %v6548_v43  ;;  %v6621_v39 = vadd.f32 %v6535_v28, %v481_v22 }
 0x10d   :  { %v6618_v21 = vadd.f32 %v5380_v52, %v406_v48  ;;  %v490_v29 = vpop.f32.mrf.mxu0  ;;  %v366_v52 = vadd.f32 %v6509_v12, %v6548_v43 }
 0x10e   :  { %9038 = vst [vmem:[#allocation11_spill] sm:$0xff] %v6621_v39  ;;  %v797_v4 = vpop.f32.mrf.mxu1  ;;  %v491_v26 = vadd.f32 %v6548_v43, %v490_v29  ;;  %v6629_v45 = vadd.f32 %v6539_v30, %v496_v24 }
 0x10f   :  { %v6626_v33 = vadd.f32 %v797_v4, %v401_v53  ;;  %v5307_v31 = vpop.f32.mrf.mxu0  ;;  %v361_v4 = vadd.f32 %v6548_v43, %v6513_v14 }
 0x110   :  { %9039 = vst [vmem:[#allocation12_spill] sm:$0xff] %v6629_v45  ;;  %v5383_v25 = vpop.f32.mrf.mxu1  ;;  %v506_v28 = vadd.f32 %v5307_v31, %v6548_v43  ;;  %v6637_v22 = vadd.f32 %v6543_v32, %v491_v26 }
 0x111   :  { %v6634_v48 = vadd.f32 %v5383_v25, %v356_v23  ;;  %v500_v5 = vpop.f32.mrf.mxu0  ;;  %v376_v25 = vadd.f32 %v6517_v17, %v6548_v43 }
 0x112   :  { %9040 = vst [vmem:[#allocation13_spill] sm:$0xff] %v6637_v22  ;;  %v807_v27 = vpop.f32.mrf.mxu1  ;;  %v501_v30 = vadd.f32 %v6548_v43, %v500_v5  ;;  %v6645_v24 = vadd.f32 %v6503_v7, %v506_v28 }
 0x113   :  { %v6642_v53 = vadd.f32 %v807_v27, %v351_v35  ;;  %v5310_v9 = vpop.f32.mrf.mxu0  ;;  %v371_v27 = vadd.f32 %v6548_v43, %v6521_v19 }
 0x114   :  { %9041 = vst [vmem:[#allocation14_spill] sm:$0xff] %v6645_v24  ;;  %v5386_v29 = vpop.f32.mrf.mxu1  ;;  %v516_v32 = vadd.f32 %v5310_v9, %v6548_v43  ;;  %v6653_v26 = vadd.f32 %v6507_v10, %v501_v30 }
 0x115   :  { %v6650_v23 = vadd.f32 %v5386_v29, %v366_v52  ;;  %v510_v12 = vpop.f32.mrf.mxu0 }
 0x116   :  { %9042 = vst [vmem:[#allocation15_spill] sm:$0xff] %v6653_v26  ;;  %v817_v31 = vpop.f32.mrf.mxu1  ;;  %v511_v7 = vadd.f32 %v6548_v43, %v510_v12  ;;  %v6661_v28 = vadd.f32 %v6511_v13, %v516_v32 }
 0x117   :  { %v6658_v35 = vadd.f32 %v817_v31, %v361_v4  ;;  %v5313_v14 = vpop.f32.mrf.mxu0 }
 0x118   :  { %9043 = vst [vmem:[#allocation16_spill] sm:$0xff] %v6661_v28  ;;  %v5389_v5 = vpop.f32.mrf.mxu1  ;;  %v526_v10 = vadd.f32 %v5313_v14, %v6548_v43  ;;  %v6669_v30 = vadd.f32 %v6515_v16, %v511_v7 }
 0x119   :  { %v6666_v52 = vadd.f32 %v5389_v5, %v376_v25  ;;  %v520_v17 = vpop.f32.mrf.mxu0 }
 0x11a   :  { %9044 = vst [vmem:[#allocation17_spill] sm:$0xff] %v6669_v30  ;;  %v827_v9 = vpop.f32.mrf.mxu1  ;;  %v521_v29 = vadd.f32 %v6548_v43, %v520_v17  ;;  %v6675_v13 = vadd.f32 %v6519_v18, %v526_v10  ;;  %v321_v18 = vadd.f32 %v6548_v43, %v6481_v59 }
 0x11b   :  { %v6672_v4 = vadd.f32 %v827_v9, %v371_v27  ;;  %v6677_v32 = vpop.f32.mrf.mxu0 }
 0x11c   :  { %9045 = vst [vmem:[#allocation18_spill] sm:$0xff] %v6675_v13  ;;  %9046 = vst [vmem:[#allocation19_spill] sm:$0xff] %v6677_v32  ;;  %v6680_v19 = vadd.f32 %v6523_v20, %v521_v29  ;;  %v5392_v16 = vpop.f32.mrf.mxu1  ;;  %v326_v20 = vadd.f32 %v6477_v57, %v6548_v43 }
 0x11d   :  { %v6682_v12 = vpop.f32.mrf.mxu0 }
 0x11e   :  { %9047 = vst [vmem:[#allocation20_spill] sm:$0xff] %v6680_v19  ;;  %9048 = vst [vmem:[#allocation21_spill] sm:$0xff] %v6682_v12  ;;  %v837_v14 = vpop.f32.mrf.mxu1  ;;  %v886_v29 = vadd.f32 %v5392_v16, %v326_v20 }
 0x11f   :  { %v6684_v31 = vpop.f32.mrf.mxu0  ;;  %v885_v10 = vadd.f32 %v837_v14, %v321_v18 }
 0x120   :  { %9049 = vst [vmem:[#allocation22_spill] sm:$0xff] %v6684_v31 }
 0x121   :  { %v6686_v25 = vpop.f32.mrf.mxu0 }
 0x122   :  { %9050 = vst [vmem:[#allocation23_spill] sm:$0xff] %v6686_v25 }
 0x123   :  { %v6688_v7 = vpop.f32.mrf.mxu0 }
 0x124   :  { %9051 = vst [vmem:[#allocation24_spill] sm:$0xff] %v6688_v7 }
 0x125   :  { %v6690_v5 = vpop.f32.mrf.mxu0 }
 0x126   :  { %9052 = vst [vmem:[#allocation25_spill] sm:$0xff] %v6690_v5 }
 0x127   :  { %v5409_v27 = vpop.f32.mrf.mxu0 }
 0x128   :  { %v991_v31 = vadd.f32 %v5409_v27, %v886_v29 }
 0x129   :  { %v961_v17 = vpop.f32.mrf.mxu0 }
 0x12a   :  { %v990_v9 = vadd.f32 %v961_v17, %v885_v10  ;;  %v4917_v59 = vmul.f32 -1.442695, %v991_v31 }
 0x12c   :  { %5634 = vtanh.f32 %v990_v9  ;;  %v4916_v5 = vmul.f32 -1.442695, %v990_v9 }
 0x12d   :  { %5636 = vtanh.f32 %v991_v31  ;;  %v8975_v31 = vmov 0  }
 0x12e   :  { %5638 = vpow2.f32 %v4916_v5  ;;  %5633 = vset.pattern.permute.xlu1 %v8975_v31  ;;  %5632 = vset.pattern.permute.xlu0 %v8975_v31 }
 0x12f   :  { %5640 = vpow2.f32 %v4917_v59 }
 0x139   :  { %v5635_v25 = vpop.eup %5634 }
 0x13a   :  { %1050 = vrot.lane.b32.xlu0 %v5635_v25, %s6080_s29  ;;  %v5637_v7 = vpop.eup %5636 }
 0x13b   :  { %v5639_v14 = vpop.eup %5638 }
 0x13c   :  { %v1014_v18 = vadd.f32 1.0, %v5639_v14  ;;  %v5641_v57 = vpop.eup %5640 }
 0x13d   :  { %v1015_v19 = vadd.f32 1.0, %v5641_v57 }
 0x13e   :  { %1052 = vrot.lane.b32.xlu0 %v5637_v7, %s6080_s29  ;;  %5642 = vrcp.f32 %v1014_v18  ;;  %v866_v18 = vld [vmem:[%s8962_s1] sm:$0xff] }
 0x13f   :  { %5644 = vrcp.f32 %v1015_v19 }
 0x14b   :  { %v5643_v16 = vpop.eup %5642 }
 0x14c   :  { %v5645_v25 = vpop.eup %5644  ;;  %v1038_v7 = vmul.f32 0.0, %v5643_v16 }
 0x14d   :  { %v1039_v19 = vmul.f32 0.0, %v5645_v25 }
 0x1ac   :  { %v1051_v27 = vpop.permute.xlu0 %1050 }
 0x1ad   :  { %v1068_v10 = vmul.f32 %v5643_v16, %v1051_v27  ;;  %v867_v27 = vld [vmem:[%s8962_s1 + $0x8] sm:$0xff] }
 0x1af   :  { %1080 = vrot.lane.b32.xlu1 %v1068_v10, %s6081_s3  ;;  %v5395_v10 = vpop.f32.mrf.mxu1 }
 0x1b0   :  { %v1053_v20 = vpop.permute.xlu0 %1052 }
 0x1b1   :  { %v1069_v17 = vmul.f32 %v5645_v25, %v1053_v20  ;;  %v5412_v20 = vpop.f32.mrf.mxu0 }
 0x1b3   :  { %1082 = vrot.lane.b32.xlu1 %v1069_v17, %s6081_s3  ;;  %v847_v17 = vpop.f32.mrf.mxu1 }
 0x221   :  { %v1081_v5 = vpop.permute.xlu1 %1080 }
 0x222   :  { %v1098_v9 = vadd.f32 %v1081_v5, %v1038_v7  ;;  %v331_v7 = vadd.f32 %v6548_v43, %v6489_v63  ;;  %v971_v5 = vpop.f32.mrf.mxu0 }
 0x224   :  { %5646 = vtanh.f32 %v1098_v9 }
 0x225   :  { %v1083_v29 = vpop.permute.xlu1 %1082 }
 0x226   :  { %v1099_v59 = vadd.f32 %v1083_v29, %v1039_v19  ;;  %v887_v19 = vadd.f32 %v847_v17, %v331_v7  ;;  %v336_v29 = vadd.f32 %v6485_v61, %v6548_v43  ;;  %v882_v61 = vlaneseq  ;;  %v5398_v7 = vpop.f32.mrf.mxu1 }
 0x228   :  { %5648 = vtanh.f32 %v1099_v59  ;;  %v888_v31 = vadd.f32 %v5395_v10, %v336_v29 }
 0x231   :  { %v5647_v14 = vpop.eup %5646 }
 0x232   :  { %1116 = vrot.lane.b32.xlu0 %v5647_v14, %s6080_s29  ;;  %v992_v14 = vadd.f32 %v971_v5, %v887_v19  ;;  %v857_v5 = vpop.f32.mrf.mxu1  ;;  %v346_v19 = vadd.f32 %v6493_v1, %v6548_v43 }
 0x234   :  { %5650 = vtanh.f32 %v992_v14 }
 0x235   :  { %v5649_v57 = vpop.eup %5648 }
 0x236   :  { %1118 = vrot.lane.b32.xlu1 %v5649_v57, %s6080_s29  ;;  %1142 = vperm.xlu0 %5632, %v866_v18   ;;  %v993_v57 = vadd.f32 %v5412_v20, %v888_v31  ;;  %v6720_v31 = vand.u32 127, %v882_v61  ;;  %v4918_v20 = vmul.f32 -1.442695, %v992_v14 }
 0x238   :  { %5652 = vtanh.f32 %v993_v57  ;;  %vm884_vm1 = vcmp.lt.s32.totalorder %v6720_v31, 16  ;;  %v4919_v17 = vmul.f32 -1.442695, %v993_v57 }
 0x239   :  { %5654 = vpow2.f32 %v4918_v20 }
 0x23a   :  { %1145 = vperm.xlu1 %5633, %v867_v27   ;;  %5656 = vpow2.f32 %v4919_v17 }
 0x241   :  { %v5651_v58 = vpop.eup %5650 }
 0x245   :  { %v5653_v63 = vpop.eup %5652 }
 0x246   :  { %v5655_v61 = vpop.eup %5654 }
 0x247   :  { %v1016_v1 = vadd.f32 1.0, %v5655_v61  ;;  %v5657_v20 = vpop.eup %5656 }
 0x248   :  { %v1017_v17 = vadd.f32 1.0, %v5657_v20 }
 0x2a4   :  { %v1117_v18 = vpop.permute.xlu0 %1116 }
 0x2a5   :  { %v1134_v13 = vmul.f32 %v5643_v16, %v1117_v18  ;;  %v890_v18 = vadd.f32 %v5398_v7, %v346_v19 }
 0x2a7   :  { %1195 = vrot.lane.b32.xlu1 %v1134_v13, %s6081_s3 }
 0x2a8   :  { %v1119_v27 = vpop.permute.xlu1 %1118 }
 0x2a9   :  { %v1135_v60 = vmul.f32 %v5645_v25, %v1119_v27  ;;  %v341_v27 = vadd.f32 %v6548_v43, %v6497_v3 }
 0x2ab   :  { %1197 = vrot.lane.b32.xlu0 %v1135_v60, %s6081_s3  ;;  %1054 = vrot.lane.b32.xlu1 %v5651_v58, %s6080_s29  ;;  %v6084_v60 = vmov 7   ;;  %v889_v57 = vadd.f32 %v857_v5, %v341_v27 }
 0x2ac   :  { %v6729_v58 = vsel %vm884_vm1, 0, %v6084_v60 }
 0x2ad   :  { %9053 = vst [vmem:[#allocation26_spill] sm:$0xff] %v6729_v58 }
 0x2af   :  { %1056 = vrot.lane.b32.xlu0 %v5653_v63, %s6080_s29  ;;  %1225 = vrot.lane.b32.xlu1 %v1098_v9, %s6083_s18 }
 0x2b1   :  { %v6725_v16 = vpop.permute.xlu0 %1142 }
 0x2b2   :  { %vm1159_vm2 = vcmp.gt.s32.totalorder %v6725_v16, %v6729_v58 }
 0x2b3   :  { %1227 = vrot.lane.b32.xlu0 %v1099_v59, %s6083_s18 }
 0x2b5   :  { %v6723_v13 = vpop.permute.xlu1 %1145 }
 0x2b6   :  { %vm1160_vm4 = vcmp.gt.s32.totalorder %v6723_v13, %v6729_v58 }
 0x319   :  { %v6733_v25 = vpop.permute.xlu1 %1195 }
 0x31a   :  { %9054 = vst [vmem:[#allocation27_spill] sm:$0xff] %v6733_v25  ;;  %v6739_v9 = vsel %vm1159_vm2, %v6733_v25, 0.0 }
 0x31b   :  { %5424 = vmatprep.mubr.msk.f32.mxu1 %vm891_vm3, %v6739_v9 }
 0x31d   :  { %v6745_v59 = vpop.permute.xlu0 %1197 }
 0x31e   :  { %9055 = vst [vmem:[#allocation28_spill] sm:$0xff] %v6745_v59  ;;  %v6751_v10 = vsel %vm1160_vm4, %v6745_v59, 0.0 }
 0x31f   :  { %5425 = vmatmul.mubr.msk.f32.vlgmr.msra.gmra.mxu1 %vm891_vm3, %v6751_v10 }
 0x320   :  { %5451 = vmatpush3.msra.mxu1 %v6195_v6 }
 0x321   :  { %5452 = vmatprep.subr.mxu1 %v6206_v8  ;;  %v1057_v43 = vpop.permute.xlu0 %1056 }
 0x322   :  { %5453 = vmatpush3.msra.mxu1 %v6206_v8  ;;  %v5415_v8 = vpop.f32.mrf.mxu0 }
 0x323   :  { %5454 = vmatprep.subr.mxu1 %v6225_v11  ;;  %v995_v63 = vadd.f32 %v5415_v8, %v890_v18 }
 0x324   :  { %5455 = vmatpush3.msra.mxu1 %v6225_v11 }
 0x325   :  { %5456 = vmatprep.subr.mxu1 %v6249_v15  ;;  %v1228_v18 = vpop.permute.xlu0 %1227  ;;  %v4921_v20 = vmul.f32 -1.442695, %v995_v63 }
 0x326   :  { %5457 = vmatpush3.msra.mxu1 %v6249_v15 }
 0x327   :  { %5484 = vmatprep.subr.mxu1 %v6195_v6  ;;  %v981_v6 = vpop.f32.mrf.mxu0 }
 0x328   :  { %v994_v60 = vadd.f32 %v981_v6, %v889_v57 }
 0x3df   :  { %v5426_v29 = vpop.f32.mrf.mxu1 }
 0x3e0   :  { %v1387_v11 = vadd.f32 %v5426_v29, %v6634_v48  ;;  %v1055_v48 = vpop.permute.xlu1 %1054 }
 0x3e1   :  { %v1357_v15 = vpop.f32.mrf.mxu1 }
 0x3e2   :  { %5658 = vtanh.f32 %v1387_v11  ;;  %v1386_v14 = vadd.f32 %v1357_v15, %v6642_v53  ;;  %v6787_v15 = vsel %vm1160_vm4, %v1228_v18, 0.0  ;;  %v4929_v61 = vmul.f32 -1.442695, %v1387_v11 }
 0x3e4   :  { %5660 = vtanh.f32 %v1386_v14  ;;  %v1226_v53 = vpop.permute.xlu1 %1225 }
 0x3e5   :  { %5662 = vtanh.f32 %v995_v63  ;;  %v6776_v8 = vsel %vm1159_vm2, %v1226_v53, 0.0 }
 0x3e6   :  { %5664 = vtanh.f32 %v994_v60 }
 0x3e7   :  { %5666 = vrcp.f32 %v1016_v1  ;;  %v4928_v1 = vmul.f32 -1.442695, %v1386_v14 }
 0x3e8   :  { %5668 = vrcp.f32 %v1017_v17  ;;  %v4920_v17 = vmul.f32 -1.442695, %v994_v60 }
 0x3e9   :  { %5670 = vpow2.f32 %v4929_v61 }
 0x3ea   :  { %5672 = vpow2.f32 %v4928_v1 }
 0x3eb   :  { %5674 = vpow2.f32 %v4921_v20 }
 0x3ec   :  { %5676 = vpow2.f32 %v4920_v17 }
 0x3ef   :  { %v5659_v7 = vpop.eup %5658 }
 0x3f0   :  { %1472 = vrot.lane.b32.xlu0 %v5659_v7, %s6080_s29 }
 0x3f1   :  { %v5661_v3 = vpop.eup %5660 }
 0x3f2   :  { %v5663_v19 = vpop.eup %5662  ;;  %1470 = vrot.lane.b32.xlu1 %v5661_v3, %s6080_s29 }
 0x3f3   :  { %v5665_v5 = vpop.eup %5664 }
 0x3f4   :  { %1060 = vrot.lane.b32.xlu0 %v5663_v19, %s6080_s29  ;;  %v6778_v29 = vpop.eup %5666 }
 0x3f5   :  { %v1070_v27 = vmul.f32 %v6778_v29, %v1055_v48  ;;  %v6789_v6 = vpop.eup %5668 }
 0x3f6   :  { %1058 = vrot.lane.b32.xlu1 %v5665_v5, %s6080_s29  ;;  %v1071_v57 = vmul.f32 %v6789_v6, %v1057_v43  ;;  %v5671_v48 = vpop.eup %5670 }
 0x3f7   :  { %v5673_v7 = vpop.eup %5672  ;;  %v1411_v3 = vadd.f32 1.0, %v5671_v48 }
 0x3f8   :  { %1440 = vrot.lane.b32.xlu0 %v6776_v8, %s6081_s3  ;;  %v5675_v19 = vpop.eup %5674  ;;  %v1410_v53 = vadd.f32 1.0, %v5673_v7 }
 0x3f9   :  { %v5677_v5 = vpop.eup %5676  ;;  %v1019_v18 = vadd.f32 1.0, %v5675_v19  ;;  %5678 = vrcp.f32 %v1411_v3  ;;  %v1040_v3 = vmul.f32 0.0, %v6778_v29 }
 0x3fa   :  { %1084 = vrot.lane.b32.xlu1 %v1070_v27, %s6081_s3  ;;  %v1018_v27 = vadd.f32 1.0, %v5677_v5  ;;  %5680 = vrcp.f32 %v1410_v53  ;;  %v1041_v5 = vmul.f32 0.0, %v6789_v6 }
 0x3fb   :  { %5682 = vrcp.f32 %v1019_v18 }
 0x3fc   :  { %1442 = vrot.lane.b32.xlu0 %v6787_v15, %s6081_s3  ;;  %5684 = vrcp.f32 %v1018_v27 }
 0x3fe   :  { %1086 = vrot.lane.b32.xlu1 %v1071_v57, %s6081_s3 }
 0x406   :  { %v6795_v11 = vpop.eup %5678 }
 0x407   :  { %v6798_v60 = vpop.eup %5680 }
 0x408   :  { %v6801_v57 = vpop.eup %5682 }
 0x409   :  { %v6806_v17 = vpop.eup %5684 }
 0x462   :  { %v1473_v63 = vpop.permute.xlu0 %1472 }
 0x463   :  { %v1489_v14 = vmul.f32 %v6795_v11, %v1473_v63 }
 0x464   :  { %v1471_v43 = vpop.permute.xlu1 %1470 }
 0x465   :  { %1502 = vrot.lane.b32.xlu0 %v1489_v14, %s6081_s3  ;;  %v1488_v61 = vmul.f32 %v6798_v60, %v1471_v43 }
 0x466   :  { %v1061_v1 = vpop.permute.xlu0 %1060 }
 0x467   :  { %v1073_v20 = vmul.f32 %v6801_v57, %v1061_v1  ;;  %1500 = vrot.lane.b32.xlu1 %v1488_v61, %s6081_s3 }
 0x468   :  { %v1059_v48 = vpop.permute.xlu1 %1058 }
 0x469   :  { %1090 = vrot.lane.b32.xlu0 %v1073_v20, %s6081_s3  ;;  %v1072_v7 = vmul.f32 %v6806_v17, %v1059_v48 }
 0x46a   :  { %v1441_v43 = vpop.permute.xlu0 %1440 }
 0x46b   :  { %1088 = vrot.lane.b32.xlu1 %v1072_v7, %s6081_s3  ;;  %v1458_v7 = vmul.f32 %v6798_v60, %v1441_v43 }
 0x46c   :  { %v1085_v19 = vpop.permute.xlu1 %1084 }
 0x46d   :  { %v1100_v53 = vadd.f32 %v1085_v19, %v1040_v3  ;;  %v1043_v19 = vmul.f32 0.0, %v6801_v57 }
 0x46e   :  { %v1443_v61 = vpop.permute.xlu0 %1442 }
 0x46f   :  { %5686 = vtanh.f32 %v1100_v53  ;;  %v1459_v1 = vmul.f32 %v6795_v11, %v1443_v61 }
 0x470   :  { %v1087_v18 = vpop.permute.xlu1 %1086 }
 0x471   :  { %v1101_v27 = vadd.f32 %v1087_v18, %v1041_v5 }
 0x473   :  { %5688 = vtanh.f32 %v1101_v27 }
 0x47c   :  { %v5687_v63 = vpop.eup %5686 }
 0x47d   :  { %1120 = vrot.lane.b32.xlu1 %v5687_v63, %s6080_s29 }
 0x480   :  { %v5689_v14 = vpop.eup %5688 }
 0x481   :  { %1122 = vrot.lane.b32.xlu0 %v5689_v14, %s6080_s29  ;;  %v1042_v14 = vmul.f32 0.0, %v6806_v17 }
 0x4d7   :  { %v1503_v20 = vpop.permute.xlu0 %1502 }
 0x4d8   :  { %v6816_v48 = vadd.f32 %v1503_v20, %v1459_v1 }
 0x4d9   :  { %v1501_v3 = vpop.permute.xlu1 %1500 }
 0x4da   :  { %5690 = vtanh.f32 %v6816_v48  ;;  %v6821_v5 = vadd.f32 %v1501_v3, %v1458_v7  ;;  %v869_v3 = vld [vmem:[%s8962_s1 + $0x18] sm:$0xff] }
 0x4db   :  { %v1091_v18 = vpop.permute.xlu0 %1090 }
 0x4dc   :  { %v6823_v63 = vadd.f32 %v1091_v18, %v1043_v19  ;;  %5692 = vtanh.f32 %v6821_v5  ;;  %v868_v18 = vld [vmem:[%s8962_s1 + $0x10] sm:$0xff] }
 0x4dd   :  { %v1089_v61 = vpop.permute.xlu1 %1088 }
 0x4de   :  { %5694 = vtanh.f32 %v6823_v63  ;;  %v6828_v1 = vadd.f32 %v1089_v61, %v1042_v14  ;;  %v871_v14 = vld [vmem:[%s8962_s1 + $0x28] sm:$0xff] }
 0x4e0   :  { %5696 = vtanh.f32 %v6828_v1 }
 0x4e7   :  { %v5691_v43 = vpop.eup %5690 }
 0x4e8   :  { %1538 = vrot.lane.b32.xlu0 %v5691_v43, %s6080_s29  ;;  %v870_v43 = vld [vmem:[%s8962_s1 + $0x20] sm:$0xff] }
 0x4e9   :  { %v5693_v20 = vpop.eup %5692 }
 0x4ea   :  { %1536 = vrot.lane.b32.xlu1 %v5693_v20, %s6080_s29 }
 0x4eb   :  { %v5695_v7 = vpop.eup %5694 }
 0x4ec   :  { %1126 = vrot.lane.b32.xlu0 %v5695_v7, %s6080_s29 }
 0x4ed   :  { %v5697_v19 = vpop.eup %5696 }
 0x4ee   :  { %1124 = vrot.lane.b32.xlu1 %v5697_v19, %s6080_s29 }
 0x4ef   :  { %v1121_v20 = vpop.permute.xlu1 %1120 }
 0x4f0   :  { %1151 = vperm.xlu0 %5632, %v869_v3   ;;  %v1136_v3 = vmul.f32 %v6778_v29, %v1121_v20 }
 0x4f2   :  { %1148 = vperm.xlu1 %5633, %v868_v18  }
 0x4f3   :  { %v1123_v61 = vpop.permute.xlu0 %1122 }
 0x4f4   :  { %1157 = vperm.xlu0 %5632, %v871_v14   ;;  %v1137_v7 = vmul.f32 %v6789_v6, %v1123_v61 }
 0x4f6   :  { %1154 = vperm.xlu1 %5633, %v870_v43  }
 0x4f8   :  { %1201 = vrot.lane.b32.xlu0 %v1137_v7, %s6081_s3 }
 0x4fa   :  { %1199 = vrot.lane.b32.xlu1 %v1136_v3, %s6081_s3 }
 0x55a   :  { %v1539_v19 = vpop.permute.xlu0 %1538 }
 0x55b   :  { %v1555_v59 = vmul.f32 %v6795_v11, %v1539_v19 }
 0x55c   :  { %v1537_v18 = vpop.permute.xlu1 %1536 }
 0x55d   :  { %1581 = vrot.lane.b32.xlu0 %v1555_v59, %s6081_s3  ;;  %v1554_v14 = vmul.f32 %v6798_v60, %v1537_v18 }
 0x55e   :  { %v1127_v25 = vpop.permute.xlu0 %1126 }
 0x55f   :  { %v1139_v12 = vmul.f32 %v6801_v57, %v1127_v25  ;;  %1579 = vrot.lane.b32.xlu1 %v1554_v14, %s6081_s3  ;;  %v6946_v14 = vld [vmem:[%s8960_s5 + $0x10] sm:$0xff] }
 0x560   :  { %v1125_v6 = vpop.permute.xlu1 %1124 }
 0x561   :  { %1205 = vrot.lane.b32.xlu0 %v1139_v12, %s6081_s3  ;;  %v1138_v29 = vmul.f32 %v6806_v17, %v1125_v6 }
 0x563   :  { %1203 = vrot.lane.b32.xlu1 %v1138_v29, %s6081_s3  ;;  %v6963_v29 = vld [vmem:[%s8960_s5 + $0x8] sm:$0xff] }
 0x565   :  { %1231 = vrot.lane.b32.xlu0 %v1101_v27, %s6083_s18 }
 0x567   :  { %1229 = vrot.lane.b32.xlu1 %v1100_v53, %s6083_s18  ;;  %v6085_v53 = vmov 6  }
 0x568   :  { %v6895_v27 = vsel %vm884_vm1, 1, %v6085_v53  ;;  %v6970_v53 = vld [vmem:[%s8960_s5] sm:$0xff] }
 0x569   :  { %vm1561_vm7 = vcmp.gt.s32.totalorder %v6725_v16, %v6895_v27  ;;  %vm1562_vm8 = vcmp.gt.s32.totalorder %v6723_v13, %v6895_v27 }
 0x56b   :  { %v6861_v11 = vpop.permute.xlu0 %1151 }
 0x56c   :  { %vm8991_vm6 = vcmp.gt.s32.totalorder %v6861_v11, %v6729_v58  ;;  %vm8990_vm12 = vcmp.gt.s32.totalorder %v6861_v11, %v6895_v27 }
 0x56d   :  { %v6863_v59 = vpop.permute.xlu1 %1148 }
 0x56e   :  { %vm8999_vm5 = vcmp.gt.s32.totalorder %v6863_v59, %v6729_v58  ;;  %vm8998_vm11 = vcmp.gt.s32.totalorder %v6863_v59, %v6895_v27 }
 0x56f   :  { %v6865_v60 = vpop.permute.xlu0 %1157 }
 0x570   :  { %vm8989_vm10 = vcmp.gt.s32.totalorder %v6865_v60, %v6729_v58  ;;  %vm8988_vm0 = vcmp.gt.s32.totalorder %v6865_v60, %v6895_v27 }
 0x571   :  { %v6867_v25 = vpop.permute.xlu1 %1154 }
 0x572   :  { %vm8993_vm9 = vcmp.gt.s32.totalorder %v6867_v25, %v6729_v58  ;;  %vm8992_vm15 = vcmp.gt.s32.totalorder %v6867_v25, %v6895_v27 }
 0x573   :  { %v6869_v57 = vpop.permute.xlu0 %1201 }
 0x574   :  { %9056 = vst [vmem:[#allocation29_spill] sm:$0xff] %v6869_v57  ;;  %v6889_v17 = vsel %vm8991_vm6, %v6869_v57, 0.0 }
 0x575   :  { %v6871_v61 = vpop.permute.xlu1 %1199 }
 0x576   :  { %9057 = vst [vmem:[#allocation30_spill] sm:$0xff] %v6871_v61  ;;  %v6879_v12 = vsel %vm8999_vm5, %v6871_v61, 0.0 }
 0x577   :  { %5427 = vmatprep.mubr.msk.f32.mxu1 %vm891_vm3, %v6879_v12 }
 0x578   :  { %5428 = vmatmul.mubr.msk.f32.gmra.mxu1 %vm891_vm3, %v6889_v17 }
 0x5cf   :  { %v6897_v43 = vpop.permute.xlu0 %1581 }
 0x5d0   :  { %9058 = vst [vmem:[#allocation31_spill] sm:$0xff] %v6897_v43  ;;  %v6917_v3 = vsel %vm1562_vm8, %v6897_v43, %v6751_v10 }
 0x5d1   :  { %v6899_v20 = vpop.permute.xlu1 %1579 }
 0x5d2   :  { %9059 = vst [vmem:[#allocation32_spill] sm:$0xff] %v6899_v20  ;;  %v6910_v7 = vsel %vm1561_vm7, %v6899_v20, %v6739_v9  ;;  %v6932_v9 = vld [vmem:[%s8960_s5 + $0x18] sm:$0xff] }
 0x5d3   :  { %5441 = vmatprep.mubr.msk.f32.mxu0 %vm891_vm3, %v6910_v7  ;;  %v6921_v19 = vpop.permute.xlu0 %1205 }
 0x5d4   :  { %9060 = vst [vmem:[#allocation33_spill] sm:$0xff] %v6921_v19  ;;  %5442 = vmatmul.mubr.msk.f32.vlgmr.msra.gmra.mxu0 %vm891_vm3, %v6917_v3  ;;  %v6955_v6 = vsel %vm8989_vm10, %v6921_v19, 0.0 }
 0x5d5   :  { %v6925_v18 = vpop.permute.xlu1 %1203  ;;  %5468 = vmatpush3.msra.mxu0 %v6932_v9 }
 0x5d6   :  { %9061 = vst [vmem:[#allocation34_spill] sm:$0xff] %v6925_v18  ;;  %v6939_v10 = vsel %vm8993_vm9, %v6925_v18, 0.0  ;;  %5469 = vmatprep.subr.mxu0 %v6946_v14 }
 0x5d7   :  { %5430 = vmatprep.mubr.msk.f32.mxu1 %vm891_vm3, %v6939_v10  ;;  %5470 = vmatpush3.msra.mxu0 %v6946_v14 }
 0x5d8   :  { %5431 = vmatmul.mubr.msk.f32.gmra.mxu1 %vm891_vm3, %v6955_v6  ;;  %5471 = vmatprep.subr.mxu0 %v6963_v29 }
 0x5d9   :  { %5472 = vmatpush3.msra.mxu0 %v6963_v29 }
 0x5da   :  { %5473 = vmatprep.subr.mxu0 %v6970_v53 }
 0x5db   :  { %5474 = vmatpush3.msra.mxu0 %v6970_v53 }
 0x5dc   :  { %5501 = vmatprep.subr.mxu0 %v6932_v9 }
 0x638   :  { %v5429_v19 = vpop.f32.mrf.mxu1 }
 0x639   :  { %v1389_v57 = vadd.f32 %v5429_v19, %v6650_v23 }
 0x63a   :  { %v1367_v18 = vpop.f32.mrf.mxu1 }
 0x63b   :  { %5698 = vtanh.f32 %v1389_v57  ;;  %v1388_v61 = vadd.f32 %v1367_v18, %v6658_v35 }
 0x63d   :  { %5700 = vtanh.f32 %v1388_v61  ;;  %v4930_v18 = vmul.f32 -1.442695, %v1388_v61  ;;  %v1232_v61 = vpop.permute.xlu0 %1231 }
 0x648   :  { %v5699_v43 = vpop.eup %5698 }
 0x649   :  { %1476 = vrot.lane.b32.xlu0 %v5699_v43, %s6080_s29 }
 0x64a   :  { %v5701_v20 = vpop.eup %5700 }
 0x64b   :  { %1474 = vrot.lane.b32.xlu1 %v5701_v20, %s6080_s29 }
 0x64d   :  { %1611 = vrot.lane.b32.xlu0 %v6816_v48, %s6083_s18 }
 0x64f   :  { %1609 = vrot.lane.b32.xlu1 %v6821_v5, %s6083_s18 }
 0x651   :  { %1233 = vrot.lane.b32.xlu0 %v6828_v1, %s6083_s18  ;;  %v4931_v1 = vmul.f32 -1.442695, %v1389_v57 }
 0x655   :  { %1235 = vrot.lane.b32.xlu0 %v6823_v63, %s6083_s18 }
 0x694   :  { %v5443_v23 = vpop.f32.mrf.mxu0 }
 0x695   :  { %v1771_v35 = vadd.f32 %v5443_v23, %v6587_v37 }
 0x696   :  { %v1741_v19 = vpop.f32.mrf.mxu0 }
 0x697   :  { %5702 = vtanh.f32 %v1771_v35  ;;  %v1770_v43 = vadd.f32 %v1741_v19, %v6594_v55  ;;  %v1230_v19 = vpop.permute.xlu1 %1229 }
 0x698   :  { %v5432_v20 = vpop.f32.mrf.mxu1  ;;  %v7005_v57 = vsel %vm8999_vm5, %v1230_v19, 0.0 }
 0x699   :  { %v1391_v48 = vadd.f32 %v5432_v20, %v6666_v52  ;;  %5704 = vtanh.f32 %v1770_v43 }
 0x69a   :  { %v1377_v32 = vpop.f32.mrf.mxu1 }
 0x69b   :  { %v1390_v5 = vadd.f32 %v1377_v32, %v6672_v4  ;;  %5706 = vtanh.f32 %v1391_v48  ;;  %v6998_v4 = vsel %vm8991_vm6, %v1232_v61, 0.0 }
 0x69c   :  { %5708 = vpow2.f32 %v4930_v18 }
 0x69d   :  { %5710 = vtanh.f32 %v1390_v5 }
 0x69e   :  { %5712 = vpow2.f32 %v4931_v1 }
 0x6a4   :  { %v5703_v63 = vpop.eup %5702 }
 0x6a5   :  { %1856 = vrot.lane.b32.xlu1 %v5703_v63, %s6080_s29 }
 0x6a6   :  { %v5705_v37 = vpop.eup %5704 }
 0x6a8   :  { %v5707_v23 = vpop.eup %5706 }
 0x6a9   :  { %1854 = vrot.lane.b32.xlu1 %v5705_v37, %s6080_s29  ;;  %v5709_v55 = vpop.eup %5708  ;;  %1480 = vrot.lane.b32.xlu0 %v5707_v23, %s6080_s29 }
 0x6aa   :  { %v5711_v52 = vpop.eup %5710  ;;  %v1412_v20 = vadd.f32 1.0, %v5709_v55 }
 0x6ab   :  { %v5713_v32 = vpop.eup %5712 }
 0x6ac   :  { %v1413_v18 = vadd.f32 1.0, %v5713_v32  ;;  %5714 = vrcp.f32 %v1412_v20 }
 0x6ad   :  { %1478 = vrot.lane.b32.xlu1 %v5711_v52, %s6080_s29  ;;  %1446 = vrot.lane.b32.xlu0 %v6998_v4, %s6081_s3 }
 0x6ae   :  { %5716 = vrcp.f32 %v1413_v18 }
 0x6b1   :  { %1444 = vrot.lane.b32.xlu1 %v7005_v57, %s6081_s3 }
 0x6b9   :  { %v7009_v63 = vpop.eup %5714 }
 0x6bb   :  { %v1477_v1 = vpop.permute.xlu0 %1476  ;;  %v7013_v61 = vpop.eup %5716 }
 0x6bc   :  { %v1491_v19 = vmul.f32 %v7013_v61, %v1477_v1 }
 0x6bd   :  { %v1475_v37 = vpop.permute.xlu1 %1474 }
 0x6be   :  { %v1490_v23 = vmul.f32 %v7009_v63, %v1475_v37 }
 0x6bf   :  { %v1612_v55 = vpop.permute.xlu0 %1611 }
 0x6c0   :  { %1504 = vrot.lane.b32.xlu1 %v1490_v23, %s6081_s3  ;;  %v7029_v18 = vsel %vm1562_vm8, %v1612_v55, %v6787_v15  ;;  %v4941_v15 = vmul.f32 -1.442695, %v1771_v35  ;;  %v4940_v23 = vmul.f32 -1.442695, %v1770_v43  ;;  %v4933_v55 = vmul.f32 -1.442695, %v1391_v48 }
 0x6c1   :  { %v1610_v52 = vpop.permute.xlu1 %1609 }
 0x6c2   :  { %v7020_v20 = vsel %vm1561_vm7, %v1610_v52, %v6776_v8  ;;  %5718 = vpow2.f32 %v4941_v15  ;;  %v4932_v52 = vmul.f32 -1.442695, %v1390_v5 }
 0x6c3   :  { %v1234_v32 = vpop.permute.xlu0 %1233  ;;  %1824 = vrot.lane.b32.xlu0 %v7020_v20, %s6081_s3  ;;  %5720 = vpow2.f32 %v4940_v23 }
 0x6c4   :  { %1506 = vrot.lane.b32.xlu1 %v1491_v19, %s6081_s3  ;;  %v7036_v8 = vsel %vm8993_vm9, %v1234_v32, 0.0  ;;  %5722 = vpow2.f32 %v4933_v55 }
 0x6c5   :  { %5724 = vpow2.f32 %v4932_v52 }
 0x6c7   :  { %1826 = vrot.lane.b32.xlu0 %v7029_v18, %s6081_s3  ;;  %v1236_v1 = vpop.permute.xlu0 %1235 }
 0x6c8   :  { %1448 = vrot.lane.b32.xlu1 %v7036_v8, %s6081_s3  ;;  %v7043_v37 = vsel %vm8989_vm10, %v1236_v1, 0.0 }
 0x6cc   :  { %1450 = vrot.lane.b32.xlu1 %v7043_v37, %s6081_s3 }
 0x6cf   :  { %v5719_v19 = vpop.eup %5718 }
 0x6d0   :  { %v1795_v32 = vadd.f32 1.0, %v5719_v19  ;;  %v5721_v30 = vpop.eup %5720 }
 0x6d1   :  { %v5723_v28 = vpop.eup %5722  ;;  %v1794_v22 = vadd.f32 1.0, %v5721_v30 }
 0x6d2   :  { %5726 = vrcp.f32 %v1795_v32  ;;  %v5725_v58 = vpop.eup %5724  ;;  %v1415_v1 = vadd.f32 1.0, %v5723_v28 }
 0x6d3   :  { %5728 = vrcp.f32 %v1794_v22  ;;  %v1414_v45 = vadd.f32 1.0, %v5725_v58 }
 0x6d4   :  { %5730 = vrcp.f32 %v1415_v1 }
 0x6d5   :  { %5732 = vrcp.f32 %v1414_v45 }
 0x6df   :  { %v7047_v35 = vpop.eup %5726 }
 0x6e0   :  { %v7051_v5 = vpop.eup %5728 }
 0x6e1   :  { %v7054_v30 = vpop.eup %5730 }
 0x6e2   :  { %v5733_v22 = vpop.eup %5732 }
 0x717   :  { %v1857_v43 = vpop.permute.xlu1 %1856 }
 0x718   :  { %v1873_v48 = vmul.f32 %v7047_v35, %v1857_v43 }
 0x71a   :  { %1886 = vrot.lane.b32.xlu0 %v1873_v48, %s6081_s3 }
 0x71b   :  { %v1855_v15 = vpop.permute.xlu1 %1854  ;;  %v1481_v55 = vpop.permute.xlu0 %1480 }
 0x71c   :  { %v1872_v23 = vmul.f32 %v7051_v5, %v1855_v15  ;;  %v1493_v45 = vmul.f32 %v7054_v30, %v1481_v55 }
 0x71e   :  { %1884 = vrot.lane.b32.xlu0 %v1872_v23, %s6081_s3 }
 0x71f   :  { %v1479_v28 = vpop.permute.xlu1 %1478  ;;  %v1447_v32 = vpop.permute.xlu0 %1446 }
 0x720   :  { %v1492_v58 = vmul.f32 %v5733_v22, %v1479_v28  ;;  %v1461_v48 = vmul.f32 %v7013_v61, %v1447_v32 }
 0x722   :  { %1508 = vrot.lane.b32.xlu1 %v1492_v58, %s6081_s3  ;;  %1510 = vrot.lane.b32.xlu0 %v1493_v45, %s6081_s3 }
 0x723   :  { %v1445_v52 = vpop.permute.xlu1 %1444 }
 0x724   :  { %v1460_v19 = vmul.f32 %v7009_v63, %v1445_v52 }
 0x732   :  { %v1505_v1 = vpop.permute.xlu1 %1504 }
 0x733   :  { %v1520_v43 = vadd.f32 %v1505_v1, %v1460_v19 }
 0x735   :  { %5734 = vtanh.f32 %v1520_v43  ;;  %v1825_v28 = vpop.permute.xlu0 %1824 }
 0x736   :  { %v1507_v15 = vpop.permute.xlu1 %1506  ;;  %v1842_v19 = vmul.f32 %v7051_v5, %v1825_v28 }
 0x737   :  { %v1521_v23 = vadd.f32 %v1507_v15, %v1461_v48 }
 0x739   :  { %5736 = vtanh.f32 %v1521_v23  ;;  %v1827_v45 = vpop.permute.xlu0 %1826 }
 0x73a   :  { %v1449_v58 = vpop.permute.xlu1 %1448  ;;  %v1843_v52 = vmul.f32 %v7047_v35, %v1827_v45 }
 0x73e   :  { %v1451_v32 = vpop.permute.xlu1 %1450 }
 0x73f   :  { %v1463_v15 = vmul.f32 %v7054_v30, %v1451_v32 }
 0x742   :  { %v5735_v26 = vpop.eup %5734 }
 0x743   :  { %1540 = vrot.lane.b32.xlu1 %v5735_v26, %s6080_s29  ;;  %v1462_v26 = vmul.f32 %v5733_v22, %v1449_v58 }
 0x746   :  { %v5737_v55 = vpop.eup %5736 }
 0x747   :  { %1542 = vrot.lane.b32.xlu0 %v5737_v55, %s6080_s29 }
 0x78c   :  { %v1887_v24 = vpop.permute.xlu0 %1886 }
 0x78d   :  { %v7065_v39 = vadd.f32 %v1887_v24, %v1843_v52 }
 0x78f   :  { %5738 = vtanh.f32 %v7065_v39 }
 0x790   :  { %v1885_v1 = vpop.permute.xlu0 %1884 }
 0x791   :  { %v7069_v48 = vadd.f32 %v1885_v1, %v1842_v19 }
 0x793   :  { %5740 = vtanh.f32 %v7069_v48 }
 0x794   :  { %v1509_v55 = vpop.permute.xlu1 %1508  ;;  %v1511_v50 = vpop.permute.xlu0 %1510 }
 0x795   :  { %v7073_v40 = vadd.f32 %v1509_v55, %v1462_v26  ;;  %v7075_v45 = vadd.f32 %v1511_v50, %v1463_v15 }
 0x797   :  { %5742 = vtanh.f32 %v7073_v40 }
 0x798   :  { %5744 = vtanh.f32 %v7075_v45 }
 0x79c   :  { %v5739_v24 = vpop.eup %5738 }
 0x79d   :  { %1922 = vrot.lane.b32.xlu0 %v5739_v24, %s6080_s29 }
 0x7a0   :  { %v5741_v28 = vpop.eup %5740 }
 0x7a1   :  { %1920 = vrot.lane.b32.xlu1 %v5741_v28, %s6080_s29 }
 0x7a4   :  { %v5743_v58 = vpop.eup %5742 }
 0x7a5   :  { %v5745_v52 = vpop.eup %5744  ;;  %1544 = vrot.lane.b32.xlu1 %v5743_v58, %s6080_s29 }
 0x7a6   :  { %1546 = vrot.lane.b32.xlu0 %v5745_v52, %s6080_s29 }
 0x7b5   :  { %v1541_v19 = vpop.permute.xlu1 %1540 }
 0x7b6   :  { %v1556_v50 = vmul.f32 %v7009_v63, %v1541_v19 }
 0x7b8   :  { %1583 = vrot.lane.b32.xlu1 %v1556_v50, %s6081_s3 }
 0x7b9   :  { %v1543_v32 = vpop.permute.xlu0 %1542 }
 0x7ba   :  { %v1557_v1 = vmul.f32 %v7013_v61, %v1543_v32 }
 0x7bc   :  { %1585 = vrot.lane.b32.xlu0 %v1557_v1, %s6081_s3 }
 0x80f   :  { %v1923_v26 = vpop.permute.xlu0 %1922 }
 0x810   :  { %v1939_v15 = vmul.f32 %v7047_v35, %v1923_v26 }
 0x812   :  { %1965 = vrot.lane.b32.xlu0 %v1939_v15, %s6081_s3 }
 0x813   :  { %v1921_v55 = vpop.permute.xlu1 %1920 }
 0x814   :  { %v1938_v24 = vmul.f32 %v7051_v5, %v1921_v55 }
 0x816   :  { %1963 = vrot.lane.b32.xlu1 %v1938_v24, %s6081_s3 }
 0x817   :  { %v1545_v28 = vpop.permute.xlu1 %1544 }
 0x818   :  { %v1558_v58 = vmul.f32 %v5733_v22, %v1545_v28  ;;  %v1547_v63 = vpop.permute.xlu0 %1546 }
 0x819   :  { %v1559_v52 = vmul.f32 %v7054_v30, %v1547_v63 }
 0x81a   :  { %1587 = vrot.lane.b32.xlu1 %v1558_v58, %s6081_s3 }
 0x81b   :  { %1589 = vrot.lane.b32.xlu0 %v1559_v52, %s6081_s3 }
 0x81e   :  { %1613 = vrot.lane.b32.xlu1 %v1520_v43, %s6083_s18 }
 0x81f   :  { %1615 = vrot.lane.b32.xlu0 %v1521_v23, %s6083_s18 }
 0x82a   :  { %v7096_v61 = vpop.permute.xlu1 %1583 }
 0x82b   :  { %v7105_v35 = vsel %vm8998_vm11, %v7096_v61, %v6879_v12  ;;  %v6086_v12 = vmov 5  }
 0x82c   :  { %5444 = vmatprep.mubr.msk.f32.mxu0 %vm891_vm3, %v7105_v35  ;;  %v7124_v22 = vsel %vm884_vm1, 2, %v6086_v12 }
 0x82d   :  { %vm1945_vm13 = vcmp.gt.s32.totalorder %v6725_v16, %v7124_v22  ;;  %vm1946_vm14 = vcmp.gt.s32.totalorder %v6723_v13, %v7124_v22  ;;  %vm8995_vm10 = vcmp.gt.s32.totalorder %v6861_v11, %v7124_v22  ;;  %vm8994_vm9 = vcmp.gt.s32.totalorder %v6865_v60, %v7124_v22 }
 0x82e   :  { %v7109_v5 = vpop.permute.xlu0 %1585 }
 0x82f   :  { %9062 = vst [vmem:[#allocation35_spill] sm:$0xff] %v7109_v5  ;;  %v7118_v30 = vsel %vm8990_vm12, %v7109_v5, %v6889_v17 }
 0x830   :  { %5445 = vmatmul.mubr.msk.f32.gmra.mxu0 %vm891_vm3, %v7118_v30 }
 0x884   :  { %v7126_v43 = vpop.permute.xlu0 %1965 }
 0x885   :  { %v7146_v19 = vsel %vm1946_vm14, %v7126_v43, %v6917_v3 }
 0x888   :  { %v7128_v23 = vpop.permute.xlu1 %1963 }
 0x889   :  { %v7139_v17 = vsel %vm1945_vm13, %v7128_v23, %v6910_v7 }
 0x88a   :  { %5458 = vmatprep.mubr.msk.f32.mxu1 %vm891_vm3, %v7139_v17 }
 0x88b   :  { %5459 = vmatmul.mubr.msk.f32.vlgmr.msra.gmra.mxu1 %vm891_vm3, %v7146_v19 }
 0x88c   :  { %v7152_v50 = vpop.permute.xlu1 %1587  ;;  %5485 = vmatpush3.msra.mxu1 %v6932_v9 }
 0x88d   :  { %v7157_v7 = vpop.permute.xlu0 %1589  ;;  %v7164_v3 = vsel %vm8992_vm15, %v7152_v50, %v6939_v10  ;;  %5486 = vmatprep.subr.mxu1 %v6946_v14 }
 0x88e   :  { %9063 = vst [vmem:[#allocation36_spill] sm:$0xff] %v7157_v7  ;;  %5447 = vmatprep.mubr.msk.f32.mxu0 %vm891_vm3, %v7164_v3  ;;  %v7176_v32 = vsel %vm8988_vm0, %v7157_v7, %v6955_v6  ;;  %5487 = vmatpush3.msra.mxu1 %v6946_v14 }
 0x88f   :  { %5448 = vmatmul.mubr.msk.f32.gmra.mxu0 %vm891_vm3, %v7176_v32  ;;  %5488 = vmatprep.subr.mxu1 %v6963_v29 }
 0x890   :  { %5489 = vmatpush3.msra.mxu1 %v6963_v29 }
 0x891   :  { %5490 = vmatprep.subr.mxu1 %v6970_v53 }
 0x892   :  { %5491 = vmatpush3.msra.mxu1 %v6970_v53 }
 0x893   :  { %5518 = vmatprep.subr.mxu1 %v6932_v9 }
 0x8f0   :  { %v5446_v10 = vpop.f32.mrf.mxu0 }
 0x8f1   :  { %v1773_v1 = vadd.f32 %v5446_v10, %v6602_v41 }
 0x8f2   :  { %v1751_v6 = vpop.f32.mrf.mxu0 }
 0x8f3   :  { %5746 = vtanh.f32 %v1773_v1  ;;  %v1772_v26 = vadd.f32 %v1751_v6, %v6610_v44  ;;  %v1614_v6 = vpop.permute.xlu1 %1613 }
 0x8f5   :  { %5748 = vtanh.f32 %v1772_v26 }
 0x900   :  { %v5747_v15 = vpop.eup %5746 }
 0x901   :  { %1860 = vrot.lane.b32.xlu0 %v5747_v15, %s6080_s29  ;;  %v7218_v15 = vsel %vm8998_vm11, %v1614_v6, %v7005_v57 }
 0x902   :  { %v5749_v55 = vpop.eup %5748 }
 0x903   :  { %1858 = vrot.lane.b32.xlu1 %v5749_v55, %s6080_s29 }
 0x905   :  { %1995 = vrot.lane.b32.xlu0 %v7065_v39, %s6083_s18  ;;  %v4942_v39 = vmul.f32 -1.442695, %v1772_v26 }
 0x907   :  { %1993 = vrot.lane.b32.xlu1 %v7069_v48, %s6083_s18 }
 0x909   :  { %1617 = vrot.lane.b32.xlu0 %v7073_v40, %s6083_s18  ;;  %v4943_v40 = vmul.f32 -1.442695, %v1773_v1 }
 0x90d   :  { %1619 = vrot.lane.b32.xlu0 %v7075_v45, %s6083_s18 }
 0x94b   :  { %v5460_v41 = vpop.f32.mrf.mxu1 }
 0x94c   :  { %v2155_v44 = vadd.f32 %v5460_v41, %v6553_v51 }
 0x94d   :  { %v2125_v24 = vpop.f32.mrf.mxu1 }
 0x94e   :  { %5750 = vtanh.f32 %v2155_v44  ;;  %v2154_v28 = vadd.f32 %v2125_v24, %v6557_v56  ;;  %v1616_v56 = vpop.permute.xlu0 %1615 }
 0x94f   :  { %v5449_v58 = vpop.f32.mrf.mxu0 }
 0x950   :  { %v1775_v63 = vadd.f32 %v5449_v58, %v6618_v21  ;;  %5752 = vtanh.f32 %v2154_v28 }
 0x951   :  { %v1761_v52 = vpop.f32.mrf.mxu0 }
 0x952   :  { %v1774_v48 = vadd.f32 %v1761_v52, %v6626_v33  ;;  %5754 = vtanh.f32 %v1775_v63  ;;  %v7210_v33 = vsel %vm8990_vm12, %v1616_v56, %v6998_v4  ;;  %v4945_v6 = vmul.f32 -1.442695, %v1775_v63 }
 0x953   :  { %5756 = vpow2.f32 %v4942_v39 }
 0x954   :  { %5758 = vtanh.f32 %v1774_v48 }
 0x955   :  { %5760 = vpow2.f32 %v4943_v40 }
 0x95b   :  { %v5751_v45 = vpop.eup %5750 }
 0x95c   :  { %2240 = vrot.lane.b32.xlu1 %v5751_v45, %s6080_s29 }
 0x95d   :  { %v5753_v51 = vpop.eup %5752 }
 0x95f   :  { %v5755_v12 = vpop.eup %5754 }
 0x960   :  { %2238 = vrot.lane.b32.xlu1 %v5753_v51, %s6080_s29  ;;  %1864 = vrot.lane.b32.xlu0 %v5755_v12, %s6080_s29  ;;  %v5757_v21 = vpop.eup %5756 }
 0x961   :  { %v5759_v10 = vpop.eup %5758  ;;  %v1796_v1 = vadd.f32 1.0, %v5757_v21 }
 0x962   :  { %v5761_v26 = vpop.eup %5760 }
 0x963   :  { %v1797_v55 = vadd.f32 1.0, %v5761_v26  ;;  %5762 = vrcp.f32 %v1796_v1 }
 0x964   :  { %1862 = vrot.lane.b32.xlu1 %v5759_v10, %s6080_s29  ;;  %1830 = vrot.lane.b32.xlu0 %v7210_v33, %s6081_s3  ;;  %v4952_v10 = vmul.f32 -1.442695, %v2154_v28 }
 0x965   :  { %5764 = vrcp.f32 %v1797_v55 }
 0x968   :  { %1828 = vrot.lane.b32.xlu1 %v7218_v15, %s6081_s3 }
 0x970   :  { %v7222_v4 = vpop.eup %5762 }
 0x972   :  { %v7226_v52 = vpop.eup %5764 }
 0x973   :  { %v1861_v41 = vpop.permute.xlu0 %1860 }
 0x974   :  { %v1875_v57 = vmul.f32 %v7226_v52, %v1861_v41 }
 0x975   :  { %v1859_v24 = vpop.permute.xlu1 %1858 }
 0x976   :  { %v1874_v58 = vmul.f32 %v7222_v4, %v1859_v24 }
 0x977   :  { %v1996_v39 = vpop.permute.xlu0 %1995 }
 0x978   :  { %1888 = vrot.lane.b32.xlu1 %v1874_v58, %s6081_s3  ;;  %v7242_v12 = vsel %vm1946_vm14, %v1996_v39, %v7029_v18  ;;  %v4953_v18 = vmul.f32 -1.442695, %v2155_v44 }
 0x979   :  { %v1994_v40 = vpop.permute.xlu1 %1993 }
 0x97a   :  { %v7233_v45 = vsel %vm1945_vm13, %v1994_v40, %v7020_v20  ;;  %5766 = vpow2.f32 %v4953_v18 }
 0x97b   :  { %v1618_v51 = vpop.permute.xlu0 %1617  ;;  %2208 = vrot.lane.b32.xlu0 %v7233_v45, %s6081_s3  ;;  %5768 = vpow2.f32 %v4952_v10 }
 0x97c   :  { %1890 = vrot.lane.b32.xlu1 %v1875_v57, %s6081_s3  ;;  %v7250_v20 = vsel %vm8992_vm15, %v1618_v51, %v7036_v8  ;;  %v4944_v8 = vmul.f32 -1.442695, %v1774_v48  ;;  %5770 = vpow2.f32 %v4945_v6  ;;  %vm8996_vm15 = vcmp.gt.s32.totalorder %v6867_v25, %v7124_v22 }
 0x97e   :  { %5772 = vpow2.f32 %v4944_v8 }
 0x97f   :  { %2210 = vrot.lane.b32.xlu0 %v7242_v12, %s6081_s3  ;;  %v1620_v56 = vpop.permute.xlu0 %1619 }
 0x980   :  { %1832 = vrot.lane.b32.xlu1 %v7250_v20, %s6081_s3  ;;  %v7258_v21 = vsel %vm8988_vm0, %v1620_v56, %v7043_v37  ;;  %vm8997_vm0 = vcmp.gt.s32.totalorder %v6863_v59, %v7124_v22 }
 0x984   :  { %1834 = vrot.lane.b32.xlu1 %v7258_v21, %s6081_s3 }
 0x987   :  { %v5767_v1 = vpop.eup %5766 }
 0x988   :  { %v2179_v26 = vadd.f32 1.0, %v5767_v1  ;;  %v5769_v55 = vpop.eup %5768 }
 0x989   :  { %v5771_v41 = vpop.eup %5770  ;;  %v2178_v24 = vadd.f32 1.0, %v5769_v55 }
 0x98a   :  { %5774 = vrcp.f32 %v2179_v26  ;;  %v1799_v37 = vadd.f32 1.0, %v5771_v41 }
 0x98b   :  { %v5773_v58 = vpop.eup %5772  ;;  %5776 = vrcp.f32 %v2178_v24 }
 0x98c   :  { %v1798_v39 = vadd.f32 1.0, %v5773_v58  ;;  %5778 = vrcp.f32 %v1799_v37 }
 0x98e   :  { %5780 = vrcp.f32 %v1798_v39 }
 0x997   :  { %v7262_v44 = vpop.eup %5774 }
 0x998   :  { %v7266_v48 = vpop.eup %5776 }
 0x999   :  { %v7269_v56 = vpop.eup %5778 }
 0x99b   :  { %v5781_v18 = vpop.eup %5780 }
 0x9ce   :  { %v2241_v28 = vpop.permute.xlu1 %2240 }
 0x9cf   :  { %v2257_v63 = vmul.f32 %v7262_v44, %v2241_v28 }
 0x9d1   :  { %2270 = vrot.lane.b32.xlu0 %v2257_v63, %s6081_s3 }
 0x9d2   :  { %v2239_v40 = vpop.permute.xlu1 %2238  ;;  %v1865_v51 = vpop.permute.xlu0 %1864 }
 0x9d3   :  { %v2256_v57 = vmul.f32 %v7266_v48, %v2239_v40  ;;  %v1877_v6 = vmul.f32 %v7269_v56, %v1865_v51 }
 0x9d5   :  { %2268 = vrot.lane.b32.xlu0 %v2256_v57, %s6081_s3 }
 0x9d6   :  { %v1863_v10 = vpop.permute.xlu1 %1862  ;;  %v1831_v55 = vpop.permute.xlu0 %1830 }
 0x9d7   :  { %v1876_v8 = vmul.f32 %v5781_v18, %v1863_v10  ;;  %v1845_v58 = vmul.f32 %v7226_v52, %v1831_v55 }
 0x9d9   :  { %1892 = vrot.lane.b32.xlu1 %v1876_v8, %s6081_s3  ;;  %1894 = vrot.lane.b32.xlu0 %v1877_v6, %s6081_s3 }
 0x9da   :  { %v1829_v1 = vpop.permute.xlu1 %1828 }
 0x9db   :  { %v1844_v26 = vmul.f32 %v7222_v4, %v1829_v1 }
 0x9ea   :  { %v1889_v41 = vpop.permute.xlu1 %1888 }
 0x9eb   :  { %v1904_v24 = vadd.f32 %v1889_v41, %v1844_v26 }
 0x9ed   :  { %5782 = vtanh.f32 %v1904_v24  ;;  %v2209_v40 = vpop.permute.xlu0 %2208 }
 0x9ee   :  { %v1891_v37 = vpop.permute.xlu1 %1890  ;;  %v2226_v1 = vmul.f32 %v7266_v48, %v2209_v40 }
 0x9ef   :  { %v1905_v39 = vadd.f32 %v1891_v37, %v1845_v58 }
 0x9f1   :  { %5784 = vtanh.f32 %v1905_v39  ;;  %v2211_v57 = vpop.permute.xlu0 %2210 }
 0x9f2   :  { %v1833_v51 = vpop.permute.xlu1 %1832  ;;  %v2227_v10 = vmul.f32 %v7262_v44, %v2211_v57 }
 0x9f3   :  { %v1846_v58 = vmul.f32 %v5781_v18, %v1833_v51 }
 0x9f6   :  { %v1835_v26 = vpop.permute.xlu1 %1834 }
 0x9f7   :  { %v1847_v37 = vmul.f32 %v7269_v56, %v1835_v26 }
 0x9fa   :  { %v5783_v28 = vpop.eup %5782 }
 0x9fb   :  { %1924 = vrot.lane.b32.xlu1 %v5783_v28, %s6080_s29 }
 0x9fe   :  { %v5785_v63 = vpop.eup %5784 }
 0x9ff   :  { %1926 = vrot.lane.b32.xlu0 %v5785_v63, %s6080_s29 }
 0xa43   :  { %v2271_v6 = vpop.permute.xlu0 %2270 }
 0xa44   :  { %v7280_v8 = vadd.f32 %v2271_v6, %v2227_v10 }
 0xa46   :  { %5786 = vtanh.f32 %v7280_v8 }
 0xa47   :  { %v2269_v55 = vpop.permute.xlu0 %2268 }
 0xa48   :  { %v7284_v41 = vadd.f32 %v2269_v55, %v2226_v1 }
 0xa4a   :  { %5788 = vtanh.f32 %v7284_v41 }
 0xa4b   :  { %v1893_v28 = vpop.permute.xlu1 %1892  ;;  %v1895_v63 = vpop.permute.xlu0 %1894 }
 0xa4c   :  { %v7288_v7 = vadd.f32 %v1893_v28, %v1846_v58  ;;  %v7290_v57 = vadd.f32 %v1895_v63, %v1847_v37 }
 0xa4e   :  { %5790 = vtanh.f32 %v7288_v7 }
 0xa4f   :  { %5792 = vtanh.f32 %v7290_v57 }
 0xa53   :  { %v5787_v40 = vpop.eup %5786 }
 0xa54   :  { %2306 = vrot.lane.b32.xlu0 %v5787_v40, %s6080_s29 }
 0xa57   :  { %v5789_v10 = vpop.eup %5788 }
 0xa58   :  { %2304 = vrot.lane.b32.xlu1 %v5789_v10, %s6080_s29 }
 0xa5b   :  { %v5791_v51 = vpop.eup %5790 }
 0xa5c   :  { %v5793_v6 = vpop.eup %5792  ;;  %1928 = vrot.lane.b32.xlu1 %v5791_v51, %s6080_s29 }
 0xa5d   :  { %1930 = vrot.lane.b32.xlu0 %v5793_v6, %s6080_s29 }
 0xa6d   :  { %v1925_v1 = vpop.permute.xlu1 %1924 }
 0xa6e   :  { %v1940_v26 = vmul.f32 %v7222_v4, %v1925_v1 }
 0xa70   :  { %1967 = vrot.lane.b32.xlu1 %v1940_v26, %s6081_s3 }
 0xa71   :  { %v1927_v55 = vpop.permute.xlu0 %1926 }
 0xa72   :  { %v1941_v58 = vmul.f32 %v7226_v52, %v1927_v55 }
 0xa74   :  { %1969 = vrot.lane.b32.xlu0 %v1941_v58, %s6081_s3 }
 0xac6   :  { %v2307_v37 = vpop.permute.xlu0 %2306 }
 0xac7   :  { %v2323_v28 = vmul.f32 %v7262_v44, %v2307_v37 }
 0xac9   :  { %2349 = vrot.lane.b32.xlu0 %v2323_v28, %s6081_s3 }
 0xaca   :  { %v2305_v63 = vpop.permute.xlu1 %2304 }
 0xacb   :  { %v2322_v40 = vmul.f32 %v7266_v48, %v2305_v63 }
 0xacd   :  { %2347 = vrot.lane.b32.xlu1 %v2322_v40, %s6081_s3 }
 0xace   :  { %v1929_v10 = vpop.permute.xlu1 %1928 }
 0xacf   :  { %v1942_v51 = vmul.f32 %v5781_v18, %v1929_v10  ;;  %v1931_v4 = vpop.permute.xlu0 %1930 }
 0xad0   :  { %v1943_v6 = vmul.f32 %v7269_v56, %v1931_v4 }
 0xad1   :  { %1971 = vrot.lane.b32.xlu1 %v1942_v51, %s6081_s3 }
 0xad2   :  { %1973 = vrot.lane.b32.xlu0 %v1943_v6, %s6081_s3 }
 0xad5   :  { %1997 = vrot.lane.b32.xlu1 %v1904_v24, %s6083_s18 }
 0xad6   :  { %1999 = vrot.lane.b32.xlu0 %v1905_v39, %s6083_s18 }
 0xae2   :  { %v7311_v52 = vpop.permute.xlu1 %1967 }
 0xae3   :  { %v7320_v44 = vsel %vm8997_vm0, %v7311_v52, %v7105_v35  ;;  %v6087_v35 = vmov 4  }
 0xae4   :  { %5461 = vmatprep.mubr.msk.f32.mxu1 %vm891_vm3, %v7320_v44  ;;  %v7339_v18 = vsel %vm884_vm1, 3, %v6087_v35 }
 0xae5   :  { %vm2329_vm12 = vcmp.gt.s32.totalorder %v6725_v16, %v7339_v18  ;;  %vm2330_vm6 = vcmp.gt.s32.totalorder %v6723_v13, %v7339_v18  ;;  %vm9002_vm11 = vcmp.gt.s32.totalorder %v6867_v25, %v7339_v18  ;;  %vm9000_vm5 = vcmp.gt.s32.totalorder %v6865_v60, %v7339_v18 }
 0xae6   :  { %v7324_v48 = vpop.permute.xlu0 %1969 }
 0xae7   :  { %9064 = vst [vmem:[#allocation37_spill] sm:$0xff] %v7324_v48  ;;  %v7333_v56 = vsel %vm8995_vm10, %v7324_v48, %v7118_v30 }
 0xae8   :  { %5462 = vmatmul.mubr.msk.f32.gmra.mxu1 %vm891_vm3, %v7333_v56 }
 0xb3b   :  { %v7341_v24 = vpop.permute.xlu0 %2349 }
 0xb3c   :  { %v7361_v1 = vsel %vm2330_vm6, %v7341_v24, %v7146_v19 }
 0xb3f   :  { %v7343_v39 = vpop.permute.xlu1 %2347 }
 0xb40   :  { %v7354_v30 = vsel %vm2329_vm12, %v7343_v39, %v7139_v17 }
 0xb41   :  { %5475 = vmatprep.mubr.msk.f32.mxu0 %vm891_vm3, %v7354_v30 }
 0xb42   :  { %5476 = vmatmul.mubr.msk.f32.vlgmr.msra.gmra.mxu0 %vm891_vm3, %v7361_v1 }
 0xb43   :  { %v7367_v26 = vpop.permute.xlu1 %1971  ;;  %5502 = vmatpush3.msra.mxu0 %v6932_v9 }
 0xb44   :  { %v7372_v17 = vpop.permute.xlu0 %1973  ;;  %v7379_v19 = vsel %vm8996_vm15, %v7367_v26, %v7164_v3  ;;  %5503 = vmatprep.subr.mxu0 %v6946_v14 }
 0xb45   :  { %9065 = vst [vmem:[#allocation38_spill] sm:$0xff] %v7372_v17  ;;  %5464 = vmatprep.mubr.msk.f32.mxu1 %vm891_vm3, %v7379_v19  ;;  %v7391_v9 = vsel %vm8994_vm9, %v7372_v17, %v7176_v32  ;;  %5504 = vmatpush3.msra.mxu0 %v6946_v14 }
 0xb46   :  { %5465 = vmatmul.mubr.msk.f32.gmra.mxu1 %vm891_vm3, %v7391_v9  ;;  %5505 = vmatprep.subr.mxu0 %v6963_v29 }
 0xb47   :  { %5506 = vmatpush3.msra.mxu0 %v6963_v29  ;;  %v1998_v51 = vpop.permute.xlu1 %1997 }
 0xb48   :  { %5507 = vmatprep.subr.mxu0 %v6970_v53  ;;  %v7432_v6 = vsel %vm8997_vm0, %v1998_v51, %v7218_v15 }
 0xb49   :  { %5508 = vmatpush3.msra.mxu0 %v6970_v53 }
 0xba8   :  { %v5463_v3 = vpop.f32.mrf.mxu1 }
 0xba9   :  { %v2157_v55 = vadd.f32 %v5463_v3, %v6563_v62 }
 0xbaa   :  { %v2135_v58 = vpop.f32.mrf.mxu1 }
 0xbab   :  { %5794 = vtanh.f32 %v2157_v55  ;;  %v2156_v32 = vadd.f32 %v2135_v58, %v6569_v49 }
 0xbad   :  { %5796 = vtanh.f32 %v2156_v32  ;;  %v4954_v40 = vmul.f32 -1.442695, %v2156_v32 }
 0xbb8   :  { %v5795_v14 = vpop.eup %5794 }
 0xbb9   :  { %2244 = vrot.lane.b32.xlu0 %v5795_v14, %s6080_s29 }
 0xbba   :  { %v5797_v37 = vpop.eup %5796 }
 0xbbb   :  { %2242 = vrot.lane.b32.xlu1 %v5797_v37, %s6080_s29 }
 0xbbd   :  { %2379 = vrot.lane.b32.xlu0 %v7280_v8, %s6083_s18 }
 0xbbf   :  { %2377 = vrot.lane.b32.xlu1 %v7284_v41, %s6083_s18 }
 0xbc1   :  { %2001 = vrot.lane.b32.xlu0 %v7288_v7, %s6083_s18  ;;  %v4955_v7 = vmul.f32 -1.442695, %v2157_v55 }
 0xbc5   :  { %2003 = vrot.lane.b32.xlu0 %v7290_v57, %s6083_s18 }
 0xc02   :  { %v5477_v62 = vpop.f32.mrf.mxu0 }
 0xc03   :  { %v2539_v49 = vadd.f32 %v5477_v62, %v6559_v0 }
 0xc04   :  { %v2509_v29 = vpop.f32.mrf.mxu0 }
 0xc05   :  { %5798 = vtanh.f32 %v2539_v49  ;;  %v2538_v53 = vadd.f32 %v2509_v29, %v6565_v46  ;;  %v2000_v46 = vpop.permute.xlu0 %1999 }
 0xc06   :  { %v5466_v28 = vpop.f32.mrf.mxu1 }
 0xc07   :  { %v2159_v63 = vadd.f32 %v5466_v28, %v6575_v54  ;;  %5800 = vtanh.f32 %v2538_v53 }
 0xc08   :  { %v2145_v8 = vpop.f32.mrf.mxu1 }
 0xc09   :  { %v2158_v41 = vadd.f32 %v2145_v8, %v6581_v2  ;;  %5802 = vtanh.f32 %v2159_v63  ;;  %v7423_v2 = vsel %vm8995_vm10, %v2000_v46, %v7210_v33  ;;  %vm9001_vm10 = vcmp.gt.s32.totalorder %v6861_v11, %v7339_v18 }
 0xc0b   :  { %5804 = vtanh.f32 %v2158_v41 }
 0xc0c   :  { %5806 = vpow2.f32 %v4954_v40 }
 0xc0d   :  { %5808 = vpow2.f32 %v4955_v7 }
 0xc12   :  { %v5799_v57 = vpop.eup %5798 }
 0xc13   :  { %2624 = vrot.lane.b32.xlu1 %v5799_v57, %s6080_s29 }
 0xc14   :  { %v5801_v0 = vpop.eup %5800 }
 0xc16   :  { %v5803_v10 = vpop.eup %5802 }
 0xc17   :  { %2622 = vrot.lane.b32.xlu1 %v5801_v0, %s6080_s29  ;;  %2248 = vrot.lane.b32.xlu0 %v5803_v10, %s6080_s29  ;;  %v4957_v0 = vmul.f32 -1.442695, %v2159_v63  ;;  %v4956_v10 = vmul.f32 -1.442695, %v2158_v41 }
 0xc18   :  { %v5805_v54 = vpop.eup %5804 }
 0xc19   :  { %v5807_v4 = vpop.eup %5806 }
 0xc1a   :  { %v2180_v35 = vadd.f32 1.0, %v5807_v4  ;;  %v5809_v3 = vpop.eup %5808 }
 0xc1b   :  { %2246 = vrot.lane.b32.xlu1 %v5805_v54, %s6080_s29  ;;  %2214 = vrot.lane.b32.xlu0 %v7423_v2, %s6081_s3  ;;  %v2181_v55 = vadd.f32 1.0, %v5809_v3 }
 0xc1c   :  { %5810 = vrcp.f32 %v2180_v35 }
 0xc1d   :  { %5812 = vrcp.f32 %v2181_v55 }
 0xc1f   :  { %2212 = vrot.lane.b32.xlu1 %v7432_v6, %s6081_s3 }
 0xc29   :  { %v7436_v58 = vpop.eup %5810 }
 0xc2a   :  { %v7440_v62 = vpop.eup %5812 }
 0xc2b   :  { %v2245_v33 = vpop.permute.xlu0 %2244 }
 0xc2c   :  { %v2259_v29 = vmul.f32 %v7440_v62, %v2245_v33 }
 0xc2d   :  { %v2243_v32 = vpop.permute.xlu1 %2242 }
 0xc2e   :  { %v2258_v14 = vmul.f32 %v7436_v58, %v2243_v32 }
 0xc2f   :  { %v2380_v37 = vpop.permute.xlu0 %2379 }
 0xc30   :  { %2272 = vrot.lane.b32.xlu1 %v2258_v14, %s6081_s3  ;;  %v7456_v40 = vsel %vm2330_vm6, %v2380_v37, %v7242_v12  ;;  %v4965_v12 = vmul.f32 -1.442695, %v2539_v49 }
 0xc31   :  { %v2378_v15 = vpop.permute.xlu1 %2377 }
 0xc32   :  { %v7447_v28 = vsel %vm2329_vm12, %v2378_v15, %v7233_v45  ;;  %5814 = vpow2.f32 %v4965_v12 }
 0xc33   :  { %v2002_v8 = vpop.permute.xlu0 %2001  ;;  %2592 = vrot.lane.b32.xlu0 %v7447_v28, %s6081_s3 }
 0xc34   :  { %2274 = vrot.lane.b32.xlu1 %v2259_v29, %s6081_s3  ;;  %v7462_v7 = vsel %vm8996_vm15, %v2002_v8, %v7250_v20  ;;  %v4964_v20 = vmul.f32 -1.442695, %v2538_v53 }
 0xc36   :  { %5816 = vpow2.f32 %v4964_v20 }
 0xc37   :  { %2594 = vrot.lane.b32.xlu0 %v7456_v40, %s6081_s3  ;;  %v2004_v45 = vpop.permute.xlu0 %2003  ;;  %5818 = vpow2.f32 %v4957_v0 }
 0xc38   :  { %2216 = vrot.lane.b32.xlu1 %v7462_v7, %s6081_s3  ;;  %v7472_v57 = vsel %vm8994_vm9, %v2004_v45, %v7258_v21  ;;  %5820 = vpow2.f32 %v4956_v10  ;;  %vm9003_vm9 = vcmp.gt.s32.totalorder %v6863_v59, %v7339_v18 }
 0xc3c   :  { %2218 = vrot.lane.b32.xlu1 %v7472_v57, %s6081_s3 }
 0xc3f   :  { %v5815_v46 = vpop.eup %5814 }
 0xc40   :  { %v2563_v54 = vadd.f32 1.0, %v5815_v46 }
 0xc42   :  { %5822 = vrcp.f32 %v2563_v54 }
 0xc43   :  { %v5817_v51 = vpop.eup %5816 }
 0xc44   :  { %v5819_v4 = vpop.eup %5818  ;;  %v2562_v35 = vadd.f32 1.0, %v5817_v51 }
 0xc45   :  { %v5821_v3 = vpop.eup %5820  ;;  %v2183_v21 = vadd.f32 1.0, %v5819_v4 }
 0xc46   :  { %5824 = vrcp.f32 %v2562_v35  ;;  %v2182_v55 = vadd.f32 1.0, %v5821_v3 }
 0xc47   :  { %5826 = vrcp.f32 %v2183_v21 }
 0xc48   :  { %5828 = vrcp.f32 %v2182_v55 }
 0xc4f   :  { %v7476_v49 = vpop.eup %5822 }
 0xc53   :  { %v7480_v41 = vpop.eup %5824 }
 0xc54   :  { %v7483_v37 = vpop.eup %5826 }
 0xc55   :  { %v5829_v15 = vpop.eup %5828 }
 0xc85   :  { %v2625_v53 = vpop.permute.xlu1 %2624 }
 0xc86   :  { %v2641_v63 = vmul.f32 %v7476_v49, %v2625_v53 }
 0xc88   :  { %2654 = vrot.lane.b32.xlu0 %v2641_v63, %s6081_s3 }
 0xc89   :  { %v2623_v33 = vpop.permute.xlu1 %2622  ;;  %v2249_v14 = vpop.permute.xlu0 %2248 }
 0xc8a   :  { %v2640_v32 = vmul.f32 %v7480_v41, %v2623_v33  ;;  %v2261_v8 = vmul.f32 %v7483_v37, %v2249_v14 }
 0xc8c   :  { %2652 = vrot.lane.b32.xlu0 %v2640_v32, %s6081_s3 }
 0xc8d   :  { %v2247_v29 = vpop.permute.xlu1 %2246  ;;  %v2215_v0 = vpop.permute.xlu0 %2214 }
 0xc8e   :  { %v2260_v45 = vmul.f32 %v5829_v15, %v2247_v29  ;;  %v2229_v54 = vmul.f32 %v7440_v62, %v2215_v0 }
 0xc90   :  { %2276 = vrot.lane.b32.xlu1 %v2260_v45, %s6081_s3  ;;  %2278 = vrot.lane.b32.xlu0 %v2261_v8, %s6081_s3 }
 0xc91   :  { %v2213_v12 = vpop.permute.xlu1 %2212 }
 0xc92   :  { %v2228_v20 = vmul.f32 %v7436_v58, %v2213_v12 }
 0xca2   :  { %v2273_v10 = vpop.permute.xlu1 %2272 }
 0xca3   :  { %v2288_v46 = vadd.f32 %v2273_v10, %v2228_v20 }
 0xca5   :  { %5830 = vtanh.f32 %v2288_v46  ;;  %v2593_v21 = vpop.permute.xlu0 %2592 }
 0xca6   :  { %v2275_v51 = vpop.permute.xlu1 %2274  ;;  %v2610_v14 = vmul.f32 %v7480_v41, %v2593_v21 }
 0xca7   :  { %v2289_v4 = vadd.f32 %v2275_v51, %v2229_v54 }
 0xca9   :  { %5832 = vtanh.f32 %v2289_v4  ;;  %v2595_v55 = vpop.permute.xlu0 %2594 }
 0xcaa   :  { %v2217_v53 = vpop.permute.xlu1 %2216  ;;  %v2611_v63 = vmul.f32 %v7476_v49, %v2595_v55 }
 0xcab   :  { %v2230_v12 = vmul.f32 %v5829_v15, %v2217_v53 }
 0xcae   :  { %v2219_v29 = vpop.permute.xlu1 %2218 }
 0xcaf   :  { %v2231_v20 = vmul.f32 %v7483_v37, %v2219_v29 }
 0xcb2   :  { %v5831_v35 = vpop.eup %5830 }
 0xcb3   :  { %2308 = vrot.lane.b32.xlu1 %v5831_v35, %s6080_s29 }
 0xcb6   :  { %v5833_v3 = vpop.eup %5832 }
 0xcb7   :  { %2310 = vrot.lane.b32.xlu0 %v5833_v3, %s6080_s29 }
 0xcfa   :  { %v2655_v33 = vpop.permute.xlu0 %2654 }
 0xcfb   :  { %v7494_v32 = vadd.f32 %v2655_v33, %v2611_v63 }
 0xcfd   :  { %5834 = vtanh.f32 %v7494_v32 }
 0xcfe   :  { %v2653_v8 = vpop.permute.xlu0 %2652 }
 0xcff   :  { %v7498_v45 = vadd.f32 %v2653_v8, %v2610_v14 }
 0xd01   :  { %5836 = vtanh.f32 %v7498_v45 }
 0xd02   :  { %v2277_v0 = vpop.permute.xlu1 %2276  ;;  %v2279_v10 = vpop.permute.xlu0 %2278 }
 0xd03   :  { %v7502_v54 = vadd.f32 %v2277_v0, %v2230_v12  ;;  %v7504_v51 = vadd.f32 %v2279_v10, %v2231_v20 }
 0xd05   :  { %5838 = vtanh.f32 %v7502_v54 }
 0xd06   :  { %5840 = vtanh.f32 %v7504_v51 }
 0xd0a   :  { %v5835_v35 = vpop.eup %5834 }
 0xd0b   :  { %2690 = vrot.lane.b32.xlu0 %v5835_v35, %s6080_s29 }
 0xd0e   :  { %v5837_v3 = vpop.eup %5836 }
 0xd0f   :  { %2688 = vrot.lane.b32.xlu1 %v5837_v3, %s6080_s29 }
 0xd12   :  { %v5839_v21 = vpop.eup %5838 }
 0xd13   :  { %v5841_v55 = vpop.eup %5840  ;;  %2312 = vrot.lane.b32.xlu1 %v5839_v21, %s6080_s29 }
 0xd14   :  { %2314 = vrot.lane.b32.xlu0 %v5841_v55, %s6080_s29 }
 0xd25   :  { %v2309_v53 = vpop.permute.xlu1 %2308 }
 0xd26   :  { %v2324_v63 = vmul.f32 %v7436_v58, %v2309_v53  ;;  %v6071_v53 = vld [vmem:[%s8960_s5 + $0x10] sm:$0xff] }
 0xd28   :  { %2351 = vrot.lane.b32.xlu1 %v2324_v63, %s6081_s3 }
 0xd29   :  { %v2311_v33 = vpop.permute.xlu0 %2310 }
 0xd2a   :  { %v2325_v14 = vmul.f32 %v7440_v62, %v2311_v33  ;;  %v6073_v33 = vld [vmem:[%s8960_s5] sm:$0xff] }
 0xd2c   :  { %2353 = vrot.lane.b32.xlu0 %v2325_v14, %s6081_s3  ;;  %v9069_v14 = vmov 0.0  }
 0xd7d   :  { %v2691_v29 = vpop.permute.xlu0 %2690 }
 0xd7e   :  { %v2707_v8 = vmul.f32 %v7476_v49, %v2691_v29 }
 0xd80   :  { %2733 = vrot.lane.b32.xlu0 %v2707_v8, %s6081_s3 }
 0xd81   :  { %v2689_v12 = vpop.permute.xlu1 %2688 }
 0xd82   :  { %v2706_v20 = vmul.f32 %v7480_v41, %v2689_v12 }
 0xd84   :  { %2731 = vrot.lane.b32.xlu1 %v2706_v20, %s6081_s3 }
 0xd85   :  { %v2313_v0 = vpop.permute.xlu1 %2312 }
 0xd86   :  { %v2326_v10 = vmul.f32 %v5829_v15, %v2313_v0  ;;  %v2315_v58 = vpop.permute.xlu0 %2314 }
 0xd87   :  { %v2327_v35 = vmul.f32 %v7483_v37, %v2315_v58 }
 0xd88   :  { %2355 = vrot.lane.b32.xlu1 %v2326_v10, %s6081_s3 }
 0xd89   :  { %2357 = vrot.lane.b32.xlu0 %v2327_v35, %s6081_s3 }
 0xd8c   :  { %2381 = vrot.lane.b32.xlu1 %v2288_v46, %s6083_s18 }
 0xd8d   :  { %2383 = vrot.lane.b32.xlu0 %v2289_v4, %s6083_s18 }
 0xd9a   :  { %v7525_v62 = vpop.permute.xlu1 %2351 }
 0xd9b   :  { %v7534_v49 = vsel %vm9003_vm9, %v7525_v62, %v7320_v44  ;;  %v6088_v44 = vmov 3  }
 0xd9c   :  { %5478 = vmatprep.mubr.msk.f32.mxu0 %vm891_vm3, %v7534_v49  ;;  %v7553_v15 = vsel %vm884_vm1, 4, %v6088_v44 }
 0xd9d   :  { %vm9005_vm15 = vcmp.gt.s32.totalorder %v6725_v16, %v7553_v15  ;;  %vm9004_vm0 = vcmp.gt.s32.totalorder %v6723_v13, %v7553_v15 }
 0xd9e   :  { %v7538_v41 = vpop.permute.xlu0 %2353 }
 0xd9f   :  { %9066 = vst [vmem:[#allocation39_spill] sm:$0xff] %v7538_v41  ;;  %v7547_v37 = vsel %vm9001_vm10, %v7538_v41, %v7333_v56 }
 0xda0   :  { %5479 = vmatmul.mubr.msk.f32.gmra.mxu0 %vm891_vm3, %v7547_v37 }
 0xdf2   :  { %v7555_v46 = vpop.permute.xlu0 %2733 }
 0xdf3   :  { %v7575_v3 = vsel %vm9004_vm0, %v7555_v46, %v7361_v1 }
 0xdf6   :  { %v7557_v4 = vpop.permute.xlu1 %2731 }
 0xdf7   :  { %v7568_v56 = vsel %vm9005_vm15, %v7557_v4, %v7354_v30  ;;  %v6070_v30 = vld [vmem:[%s8960_s5 + $0x18] sm:$0xff] }
 0xdf8   :  { %5492 = vmatprep.mubr.msk.f32.mxu1 %vm891_vm3, %v7568_v56 }
 0xdf9   :  { %5493 = vmatmul.mubr.msk.f32.vlgmr.msra.gmra.mxu1 %vm891_vm3, %v7575_v3 }
 0xdfa   :  { %v7581_v21 = vpop.permute.xlu1 %2355  ;;  %5519 = vmatpush3.msra.mxu1 %v6070_v30  ;;  %v9070_v30 = vld [vmem:[#allocation9_spill] sm:$0xff] }
 0xdfb   :  { %9067 = vst [vmem:[#allocation40_spill] sm:$0xff] %v7581_v21  ;;  %v7588_v55 = vpop.permute.xlu0 %2357  ;;  %v7595_v1 = vsel %vm9002_vm11, %v7581_v21, %v7379_v19  ;;  %5520 = vmatprep.subr.mxu1 %v6071_v53  ;;  %v6072_v19 = vld [vmem:[%s8960_s5 + $0x8] sm:$0xff] }
 0xdfc   :  { %9068 = vst [vmem:[#allocation41_spill] sm:$0xff] %v7588_v55  ;;  %5481 = vmatprep.mubr.msk.f32.mxu0 %vm891_vm3, %v7595_v1  ;;  %v7609_v63 = vsel %vm9000_vm5, %v7588_v55, %v7391_v9  ;;  %5521 = vmatpush3.msra.mxu1 %v6071_v53 }
 0xdfd   :  { %5482 = vmatmul.mubr.msk.f32.gmra.mxu0 %vm891_vm3, %v7609_v63  ;;  %5522 = vmatprep.subr.mxu1 %v6072_v19 }
 0xdfe   :  { %5523 = vmatpush3.msra.mxu1 %v6072_v19 }
 0xdff   :  { %5524 = vmatprep.subr.mxu1 %v6073_v33 }
 0xe00   :  { %5525 = vmatpush3.msra.mxu1 %v6073_v33  ;;  %v2382_v33 = vpop.permute.xlu1 %2381 }
 0xe01   :  { %5552 = vmatprep.subr.mxu1 %v9069_v14 }
 0xe60   :  { %v5480_v9 = vpop.f32.mrf.mxu0 }
 0xe61   :  { %v2541_v29 = vadd.f32 %v5480_v9, %v6571_v34 }
 0xe62   :  { %v2519_v8 = vpop.f32.mrf.mxu0 }
 0xe63   :  { %5842 = vtanh.f32 %v2541_v29  ;;  %v2540_v12 = vadd.f32 %v2519_v8, %v6577_v36  ;;  %v7652_v8 = vsel %vm9003_vm9, %v2382_v33, %v7432_v6 }
 0xe65   :  { %5844 = vtanh.f32 %v2540_v12  ;;  %v4966_v53 = vmul.f32 -1.442695, %v2540_v12 }
 0xe70   :  { %v5843_v20 = vpop.eup %5842 }
 0xe71   :  { %2628 = vrot.lane.b32.xlu0 %v5843_v20, %s6080_s29 }
 0xe72   :  { %v5845_v0 = vpop.eup %5844 }
 0xe73   :  { %2626 = vrot.lane.b32.xlu1 %v5845_v0, %s6080_s29 }
 0xe75   :  { %2763 = vrot.lane.b32.xlu0 %v7494_v32, %s6083_s18 }
 0xe77   :  { %2761 = vrot.lane.b32.xlu1 %v7498_v45, %s6083_s18 }
 0xe79   :  { %2385 = vrot.lane.b32.xlu0 %v7502_v54, %s6083_s18  ;;  %v4967_v54 = vmul.f32 -1.442695, %v2541_v29 }
 0xe7d   :  { %2387 = vrot.lane.b32.xlu0 %v7504_v51, %s6083_s18 }
 0xeb9   :  { %v5494_v34 = vpop.f32.mrf.mxu1 }
 0xeba   :  { %v2923_v36 = vadd.f32 %v5494_v34, %v6597_v42 }
 0xebb   :  { %v2893_v10 = vpop.f32.mrf.mxu1 }
 0xebc   :  { %5846 = vtanh.f32 %v2923_v36  ;;  %v2922_v58 = vadd.f32 %v2893_v10, %v6605_v47  ;;  %v2384_v47 = vpop.permute.xlu0 %2383 }
 0xebd   :  { %v5483_v35 = vpop.f32.mrf.mxu0  ;;  %v7643_v9 = vsel %vm9001_vm10, %v2384_v47, %v7423_v2  ;;  %vm9014_vm10 = vcmp.gt.s32.totalorder %v6861_v11, %v7553_v15 }
 0xebe   :  { %v2543_v44 = vadd.f32 %v5483_v35, %v6583_v38  ;;  %5848 = vtanh.f32 %v2922_v58 }
 0xebf   :  { %v2529_v32 = vpop.f32.mrf.mxu0 }
 0xec0   :  { %v2542_v45 = vadd.f32 %v2529_v32, %v9070_v30  ;;  %5850 = vtanh.f32 %v2543_v44 }
 0xec2   :  { %5852 = vtanh.f32 %v2542_v45  ;;  %v4968_v33 = vmul.f32 -1.442695, %v2542_v45 }
 0xec3   :  { %5854 = vpow2.f32 %v4966_v53 }
 0xec4   :  { %5856 = vpow2.f32 %v4967_v54 }
 0xec9   :  { %v5847_v51 = vpop.eup %5846 }
 0xeca   :  { %3008 = vrot.lane.b32.xlu1 %v5847_v51, %s6080_s29 }
 0xecb   :  { %v5849_v42 = vpop.eup %5848 }
 0xecd   :  { %v5851_v19 = vpop.eup %5850 }
 0xece   :  { %3006 = vrot.lane.b32.xlu1 %v5849_v42, %s6080_s29  ;;  %2632 = vrot.lane.b32.xlu0 %v5851_v19, %s6080_s29 }
 0xecf   :  { %v5853_v38 = vpop.eup %5852 }
 0xed0   :  { %v5855_v29 = vpop.eup %5854 }
 0xed1   :  { %v2564_v12 = vadd.f32 1.0, %v5855_v29  ;;  %v5857_v20 = vpop.eup %5856 }
 0xed2   :  { %2630 = vrot.lane.b32.xlu1 %v5853_v38, %s6080_s29  ;;  %2598 = vrot.lane.b32.xlu0 %v7643_v9, %s6081_s3  ;;  %v2565_v0 = vadd.f32 1.0, %v5857_v20  ;;  %v4969_v38 = vmul.f32 -1.442695, %v2543_v44 }
 0xed3   :  { %5858 = vrcp.f32 %v2564_v12 }
 0xed4   :  { %5860 = vrcp.f32 %v2565_v0 }
 0xed6   :  { %2596 = vrot.lane.b32.xlu1 %v7652_v8, %s6081_s3 }
 0xee0   :  { %v7656_v34 = vpop.eup %5858 }
 0xee1   :  { %v7660_v30 = vpop.eup %5860 }
 0xee3   :  { %v2629_v2 = vpop.permute.xlu0 %2628 }
 0xee4   :  { %v2643_v53 = vmul.f32 %v7660_v30, %v2629_v2 }
 0xee5   :  { %v2627_v10 = vpop.permute.xlu1 %2626 }
 0xee6   :  { %v2642_v35 = vmul.f32 %v7656_v34, %v2627_v10 }
 0xee7   :  { %v2764_v32 = vpop.permute.xlu0 %2763 }
 0xee8   :  { %2656 = vrot.lane.b32.xlu1 %v2642_v35, %s6081_s3  ;;  %v7676_v42 = vsel %vm9004_vm0, %v2764_v32, %v7456_v40  ;;  %v4977_v40 = vmul.f32 -1.442695, %v2923_v36  ;;  %vm9015_vm0 = vcmp.gt.s32.totalorder %v6867_v25, %v7553_v15 }
 0xee9   :  { %v2762_v6 = vpop.permute.xlu1 %2761 }
 0xeea   :  { %v7667_v54 = vsel %vm9005_vm15, %v2762_v6, %v7447_v28  ;;  %5862 = vpow2.f32 %v4977_v40  ;;  %vm9013_vm15 = vcmp.gt.s32.totalorder %v6865_v60, %v7553_v15 }
 0xeeb   :  { %v2386_v51 = vpop.permute.xlu0 %2385  ;;  %2976 = vrot.lane.b32.xlu0 %v7667_v54, %s6081_s3 }
 0xeec   :  { %2658 = vrot.lane.b32.xlu1 %v2643_v53, %s6081_s3  ;;  %v7682_v19 = vsel %vm9002_vm11, %v2386_v51, %v7462_v7  ;;  %v4976_v7 = vmul.f32 -1.442695, %v2922_v58 }
 0xeee   :  { %5864 = vpow2.f32 %v4976_v7 }
 0xeef   :  { %2978 = vrot.lane.b32.xlu0 %v7676_v42, %s6081_s3  ;;  %v2388_v28 = vpop.permute.xlu0 %2387  ;;  %5866 = vpow2.f32 %v4969_v38 }
 0xef0   :  { %2600 = vrot.lane.b32.xlu1 %v7682_v19, %s6081_s3  ;;  %v7692_v47 = vsel %vm9000_vm5, %v2388_v28, %v7472_v57  ;;  %5868 = vpow2.f32 %v4968_v33  ;;  %vm9016_vm5 = vcmp.gt.s32.totalorder %v6863_v59, %v7553_v15 }
 0xef4   :  { %2602 = vrot.lane.b32.xlu1 %v7692_v47, %s6081_s3 }
 0xef7   :  { %v5863_v29 = vpop.eup %5862 }
 0xef8   :  { %v2947_v12 = vadd.f32 1.0, %v5863_v29 }
 0xefa   :  { %5870 = vrcp.f32 %v2947_v12 }
 0xefb   :  { %v5865_v20 = vpop.eup %5864 }
 0xefc   :  { %v5867_v0 = vpop.eup %5866  ;;  %v2946_v2 = vadd.f32 1.0, %v5865_v20 }
 0xefd   :  { %v5869_v10 = vpop.eup %5868  ;;  %v2567_v57 = vadd.f32 1.0, %v5867_v0 }
 0xefe   :  { %5872 = vrcp.f32 %v2946_v2  ;;  %v2566_v35 = vadd.f32 1.0, %v5869_v10 }
 0xeff   :  { %5874 = vrcp.f32 %v2567_v57 }
 0xf00   :  { %5876 = vrcp.f32 %v2566_v35 }
 0xf07   :  { %v7696_v36 = vpop.eup %5870 }
 0xf0b   :  { %v7700_v45 = vpop.eup %5872 }
 0xf0c   :  { %v7703_v51 = vpop.eup %5874 }
 0xf0d   :  { %v5877_v28 = vpop.eup %5876 }
 0xf3c   :  { %v3009_v58 = vpop.permute.xlu1 %3008 }
 0xf3d   :  { %v3025_v44 = vmul.f32 %v7696_v36, %v3009_v58 }
 0xf3f   :  { %3038 = vrot.lane.b32.xlu0 %v3025_v44, %s6081_s3 }
 0xf40   :  { %v3007_v32 = vpop.permute.xlu1 %3006  ;;  %v2633_v53 = vpop.permute.xlu0 %2632 }
 0xf41   :  { %v3024_v6 = vmul.f32 %v7700_v45, %v3007_v32  ;;  %v2645_v7 = vmul.f32 %v7703_v51, %v2633_v53 }
 0xf43   :  { %3036 = vrot.lane.b32.xlu0 %v3024_v6, %s6081_s3 }
 0xf44   :  { %v2631_v40 = vpop.permute.xlu1 %2630  ;;  %v2599_v12 = vpop.permute.xlu0 %2598 }
 0xf45   :  { %v2644_v38 = vmul.f32 %v5877_v28, %v2631_v40  ;;  %v2613_v2 = vmul.f32 %v7660_v30, %v2599_v12 }
 0xf47   :  { %2660 = vrot.lane.b32.xlu1 %v2644_v38, %s6081_s3  ;;  %2662 = vrot.lane.b32.xlu0 %v2645_v7, %s6081_s3 }
 0xf48   :  { %v2597_v33 = vpop.permute.xlu1 %2596 }
 0xf49   :  { %v2612_v29 = vmul.f32 %v7656_v34, %v2597_v33 }
 0xf5a   :  { %v2657_v20 = vpop.permute.xlu1 %2656 }
 0xf5b   :  { %v2672_v0 = vadd.f32 %v2657_v20, %v2612_v29 }
 0xf5d   :  { %5878 = vtanh.f32 %v2672_v0  ;;  %v2977_v44 = vpop.permute.xlu0 %2976 }
 0xf5e   :  { %v2659_v10 = vpop.permute.xlu1 %2658  ;;  %v2994_v38 = vmul.f32 %v7700_v45, %v2977_v44 }
 0xf5f   :  { %v2673_v57 = vadd.f32 %v2659_v10, %v2613_v2 }
 0xf61   :  { %5880 = vtanh.f32 %v2673_v57  ;;  %v2979_v32 = vpop.permute.xlu0 %2978 }
 0xf62   :  { %v2601_v6 = vpop.permute.xlu1 %2600  ;;  %v2995_v53 = vmul.f32 %v7696_v36, %v2979_v32 }
 0xf63   :  { %v2614_v20 = vmul.f32 %v5877_v28, %v2601_v6 }
 0xf66   :  { %v2603_v33 = vpop.permute.xlu1 %2602 }
 0xf67   :  { %v2615_v2 = vmul.f32 %v7703_v51, %v2603_v33 }
 0xf6a   :  { %v5879_v35 = vpop.eup %5878 }
 0xf6b   :  { %2692 = vrot.lane.b32.xlu1 %v5879_v35, %s6080_s29 }
 0xf6e   :  { %v5881_v58 = vpop.eup %5880 }
 0xf6f   :  { %2694 = vrot.lane.b32.xlu0 %v5881_v58, %s6080_s29 }
 0xfb1   :  { %v3039_v40 = vpop.permute.xlu0 %3038 }
 0xfb2   :  { %v7714_v7 = vadd.f32 %v3039_v40, %v2995_v53 }
 0xfb4   :  { %5882 = vtanh.f32 %v7714_v7 }
 0xfb5   :  { %v3037_v29 = vpop.permute.xlu0 %3036 }
 0xfb6   :  { %v7718_v12 = vadd.f32 %v3037_v29, %v2994_v38 }
 0xfb8   :  { %5884 = vtanh.f32 %v7718_v12 }
 0xfb9   :  { %v2661_v10 = vpop.permute.xlu1 %2660  ;;  %v2663_v35 = vpop.permute.xlu0 %2662 }
 0xfba   :  { %v7722_v58 = vadd.f32 %v2661_v10, %v2614_v20  ;;  %v7724_v32 = vadd.f32 %v2663_v35, %v2615_v2 }
 0xfbc   :  { %5886 = vtanh.f32 %v7722_v58 }
 0xfbd   :  { %5888 = vtanh.f32 %v7724_v32 }
 0xfc1   :  { %v5883_v44 = vpop.eup %5882 }
 0xfc2   :  { %3074 = vrot.lane.b32.xlu0 %v5883_v44, %s6080_s29 }
 0xfc5   :  { %v5885_v53 = vpop.eup %5884 }
 0xfc6   :  { %3072 = vrot.lane.b32.xlu1 %v5885_v53, %s6080_s29 }
 0xfc9   :  { %v5887_v6 = vpop.eup %5886 }
 0xfca   :  { %v5889_v40 = vpop.eup %5888  ;;  %2696 = vrot.lane.b32.xlu1 %v5887_v6, %s6080_s29 }
 0xfcb   :  { %2698 = vrot.lane.b32.xlu0 %v5889_v40, %s6080_s29 }
 0xfdd   :  { %v2693_v38 = vpop.permute.xlu1 %2692 }
 0xfde   :  { %v2708_v33 = vmul.f32 %v7656_v34, %v2693_v38 }
 0xfe0   :  { %2735 = vrot.lane.b32.xlu1 %v2708_v33, %s6081_s3 }
 0xfe1   :  { %v2695_v29 = vpop.permute.xlu0 %2694 }
 0xfe2   :  { %v2709_v20 = vmul.f32 %v7660_v30, %v2695_v29 }
 0xfe4   :  { %2737 = vrot.lane.b32.xlu0 %v2709_v20, %s6081_s3 }
0x1034   :  { %v3075_v2 = vpop.permute.xlu0 %3074 }
0x1035   :  { %v3091_v10 = vmul.f32 %v7696_v36, %v3075_v2  ;;  %v9074_v2 = vld [vmem:[#allocation10_spill] sm:$0xff] }
0x1037   :  { %3117 = vrot.lane.b32.xlu0 %v3091_v10, %s6081_s3 }
0x1038   :  { %v3073_v35 = vpop.permute.xlu1 %3072 }
0x1039   :  { %v3090_v44 = vmul.f32 %v7700_v45, %v3073_v35  ;;  %v9075_v35 = vld [vmem:[#allocation11_spill] sm:$0xff] }
0x103b   :  { %3115 = vrot.lane.b32.xlu1 %v3090_v44, %s6081_s3 }
0x103c   :  { %v2697_v53 = vpop.permute.xlu1 %2696 }
0x103d   :  { %v2710_v6 = vmul.f32 %v5877_v28, %v2697_v53  ;;  %v2699_v34 = vpop.permute.xlu0 %2698 }
0x103e   :  { %v2711_v40 = vmul.f32 %v7703_v51, %v2699_v34  ;;  %v9076_v34 = vld [vmem:[#allocation14_spill] sm:$0xff] }
0x103f   :  { %2739 = vrot.lane.b32.xlu1 %v2710_v6, %s6081_s3 }
0x1040   :  { %2741 = vrot.lane.b32.xlu0 %v2711_v40, %s6081_s3 }
0x1043   :  { %2765 = vrot.lane.b32.xlu1 %v2672_v0, %s6083_s18 }
0x1044   :  { %2767 = vrot.lane.b32.xlu0 %v2673_v57, %s6083_s18 }
0x1052   :  { %v7745_v30 = vpop.permute.xlu1 %2735 }
0x1053   :  { %v7754_v36 = vsel %vm9016_vm5, %v7745_v30, %v7534_v49  ;;  %v6089_v49 = vmov 2  }
0x1054   :  { %5495 = vmatprep.mubr.msk.f32.mxu1 %vm891_vm3, %v7754_v36  ;;  %v7773_v28 = vsel %vm884_vm1, 5, %v6089_v49 }
0x1055   :  { %vm9018_vm11 = vcmp.gt.s32.totalorder %v6725_v16, %v7773_v28  ;;  %vm9017_vm9 = vcmp.gt.s32.totalorder %v6723_v13, %v7773_v28 }
0x1056   :  { %v7758_v45 = vpop.permute.xlu0 %2737 }
0x1057   :  { %9071 = vst [vmem:[#allocation9_spill] sm:$0xff] %v7758_v45  ;;  %v7767_v51 = vsel %vm9014_vm10, %v7758_v45, %v7547_v37 }
0x1058   :  { %5496 = vmatmul.mubr.msk.f32.gmra.mxu1 %vm891_vm3, %v7767_v51 }
0x10a9   :  { %v7775_v0 = vpop.permute.xlu0 %3117 }
0x10aa   :  { %v7795_v38 = vsel %vm9017_vm9, %v7775_v0, %v7575_v3 }
0x10ad   :  { %v7777_v57 = vpop.permute.xlu1 %3115 }
0x10ae   :  { %v7788_v37 = vsel %vm9018_vm11, %v7777_v57, %v7568_v56 }
0x10af   :  { %5509 = vmatprep.mubr.msk.f32.mxu0 %vm891_vm3, %v7788_v37 }
0x10b0   :  { %5510 = vmatmul.mubr.msk.f32.vlgmr.msra.gmra.mxu0 %vm891_vm3, %v7795_v38 }
0x10b1   :  { %v7801_v33 = vpop.permute.xlu1 %2739 }
0x10b2   :  { %9072 = vst [vmem:[#allocation42_spill] sm:$0xff] %v7801_v33  ;;  %v7805_v56 = vpop.permute.xlu0 %2741  ;;  %v7812_v3 = vsel %vm9015_vm0, %v7801_v33, %v7595_v1 }
0x10b3   :  { %9073 = vst [vmem:[#allocation43_spill] sm:$0xff] %v7805_v56  ;;  %5498 = vmatprep.mubr.msk.f32.mxu1 %vm891_vm3, %v7812_v3  ;;  %v7823_v29 = vsel %vm9013_vm15, %v7805_v56, %v7609_v63 }
0x10b4   :  { %5499 = vmatmul.mubr.msk.f32.gmra.mxu1 %vm891_vm3, %v7823_v29 }
0x1118   :  { %v5497_v20 = vpop.f32.mrf.mxu1 }
0x1119   :  { %v2925_v1 = vadd.f32 %v5497_v20, %v9074_v2  ;;  %v9077_v20 = vld [vmem:[#allocation15_spill] sm:$0xff] }
0x111a   :  { %v2903_v10 = vpop.f32.mrf.mxu1 }
0x111b   :  { %5890 = vtanh.f32 %v2925_v1  ;;  %v2924_v44 = vadd.f32 %v2903_v10, %v9075_v35  ;;  %v9078_v35 = vld [vmem:[#allocation12_spill] sm:$0xff]  ;;  %v4979_v55 = vmul.f32 -1.442695, %v2925_v1 }
0x111d   :  { %5892 = vtanh.f32 %v2924_v44 }
0x1128   :  { %v5891_v53 = vpop.eup %5890 }
0x1129   :  { %3012 = vrot.lane.b32.xlu0 %v5891_v53, %s6080_s29 }
0x112a   :  { %v5893_v6 = vpop.eup %5892 }
0x112b   :  { %3010 = vrot.lane.b32.xlu1 %v5893_v6, %s6080_s29  ;;  %v9079_v6 = vld [vmem:[#allocation13_spill] sm:$0xff] }
0x112d   :  { %3147 = vrot.lane.b32.xlu0 %v7714_v7, %s6083_s18 }
0x112f   :  { %3145 = vrot.lane.b32.xlu1 %v7718_v12, %s6083_s18 }
0x1131   :  { %2769 = vrot.lane.b32.xlu0 %v7722_v58, %s6083_s18  ;;  %v4978_v58 = vmul.f32 -1.442695, %v2924_v44 }
0x1135   :  { %2771 = vrot.lane.b32.xlu0 %v7724_v32, %s6083_s18 }
0x1170   :  { %v5511_v63 = vpop.f32.mrf.mxu0 }
0x1171   :  { %v3307_v40 = vadd.f32 %v5511_v63, %v9076_v34  ;;  %v2768_v34 = vpop.permute.xlu0 %2767 }
0x1172   :  { %v3277_v49 = vpop.f32.mrf.mxu0  ;;  %v7850_v44 = vsel %vm9014_vm10, %v2768_v34, %v7643_v9  ;;  %vm9025_vm10 = vcmp.gt.s32.totalorder %v6861_v11, %v7773_v28 }
0x1173   :  { %5894 = vtanh.f32 %v3307_v40  ;;  %v3306_v2 = vadd.f32 %v3277_v49, %v9077_v20  ;;  %v2766_v20 = vpop.permute.xlu1 %2765 }
0x1174   :  { %v5500_v10 = vpop.f32.mrf.mxu1 }
0x1175   :  { %v2927_v53 = vadd.f32 %v5500_v10, %v9078_v35  ;;  %5896 = vtanh.f32 %v3306_v2 }
0x1176   :  { %v2913_v7 = vpop.f32.mrf.mxu1 }
0x1177   :  { %v2926_v12 = vadd.f32 %v2913_v7, %v9079_v6  ;;  %5898 = vtanh.f32 %v2927_v53 }
0x1179   :  { %5900 = vtanh.f32 %v2926_v12 }
0x117a   :  { %5902 = vpow2.f32 %v4978_v58 }
0x117b   :  { %5904 = vpow2.f32 %v4979_v55  ;;  %v7859_v55 = vsel %vm9016_vm5, %v2766_v20, %v7652_v8 }
0x1180   :  { %v5895_v56 = vpop.eup %5894 }
0x1181   :  { %3392 = vrot.lane.b32.xlu1 %v5895_v56, %s6080_s29 }
0x1182   :  { %v5897_v32 = vpop.eup %5896 }
0x1184   :  { %v5899_v63 = vpop.eup %5898 }
0x1185   :  { %3390 = vrot.lane.b32.xlu1 %v5897_v32, %s6080_s29  ;;  %3016 = vrot.lane.b32.xlu0 %v5899_v63, %s6080_s29 }
0x1186   :  { %v5901_v49 = vpop.eup %5900 }
0x1187   :  { %v5903_v56 = vpop.eup %5902 }
0x1188   :  { %v2948_v1 = vadd.f32 1.0, %v5903_v56  ;;  %v5905_v10 = vpop.eup %5904 }
0x1189   :  { %3014 = vrot.lane.b32.xlu1 %v5901_v49, %s6080_s29  ;;  %2982 = vrot.lane.b32.xlu0 %v7850_v44, %s6081_s3  ;;  %v2949_v35 = vadd.f32 1.0, %v5905_v10 }
0x118a   :  { %5906 = vrcp.f32 %v2948_v1 }
0x118b   :  { %5908 = vrcp.f32 %v2949_v35  ;;  %v4981_v35 = vmul.f32 -1.442695, %v2927_v53 }
0x118d   :  { %2980 = vrot.lane.b32.xlu1 %v7859_v55, %s6081_s3 }
0x1197   :  { %v7863_v7 = vpop.eup %5906 }
0x1198   :  { %v7867_v8 = vpop.eup %5908 }
0x119b   :  { %v3013_v9 = vpop.permute.xlu0 %3012 }
0x119c   :  { %v3027_v34 = vmul.f32 %v7867_v8, %v3013_v9  ;;  %v4980_v9 = vmul.f32 -1.442695, %v2926_v12 }
0x119d   :  { %v3011_v6 = vpop.permute.xlu1 %3010 }
0x119e   :  { %v3026_v58 = vmul.f32 %v7863_v7, %v3011_v6 }
0x119f   :  { %v3148_v32 = vpop.permute.xlu0 %3147 }
0x11a0   :  { %3040 = vrot.lane.b32.xlu1 %v3026_v58, %s6081_s3  ;;  %v7883_v56 = vsel %vm9017_vm9, %v3148_v32, %v7676_v42  ;;  %v4989_v42 = vmul.f32 -1.442695, %v3307_v40  ;;  %vm9026_vm9 = vcmp.gt.s32.totalorder %v6867_v25, %v7773_v28 }
0x11a1   :  { %v3146_v63 = vpop.permute.xlu1 %3145 }
0x11a2   :  { %v7874_v49 = vsel %vm9018_vm11, %v3146_v63, %v7667_v54  ;;  %5910 = vpow2.f32 %v4989_v42  ;;  %vm9024_vm11 = vcmp.gt.s32.totalorder %v6865_v60, %v7773_v28 }
0x11a3   :  { %v2770_v20 = vpop.permute.xlu0 %2769  ;;  %3360 = vrot.lane.b32.xlu0 %v7874_v49, %s6081_s3 }
0x11a4   :  { %3042 = vrot.lane.b32.xlu1 %v3027_v34, %s6081_s3  ;;  %v7889_v1 = vsel %vm9015_vm0, %v2770_v20, %v7682_v19  ;;  %v4988_v19 = vmul.f32 -1.442695, %v3306_v2 }
0x11a6   :  { %5912 = vpow2.f32 %v4988_v19 }
0x11a7   :  { %3362 = vrot.lane.b32.xlu0 %v7883_v56, %s6081_s3  ;;  %v2772_v54 = vpop.permute.xlu0 %2771  ;;  %5914 = vpow2.f32 %v4981_v35 }
0x11a8   :  { %2984 = vrot.lane.b32.xlu1 %v7889_v1, %s6081_s3  ;;  %v7899_v10 = vsel %vm9013_vm15, %v2772_v54, %v7692_v47  ;;  %5916 = vpow2.f32 %v4980_v9  ;;  %vm9027_vm15 = vcmp.gt.s32.totalorder %v6863_v59, %v7773_v28 }
0x11ac   :  { %2986 = vrot.lane.b32.xlu1 %v7899_v10, %s6081_s3 }
0x11af   :  { %v5911_v6 = vpop.eup %5910 }
0x11b0   :  { %v3331_v58 = vadd.f32 1.0, %v5911_v6 }
0x11b2   :  { %5918 = vrcp.f32 %v3331_v58 }
0x11b3   :  { %v5913_v32 = vpop.eup %5912 }
0x11b4   :  { %v5915_v63 = vpop.eup %5914  ;;  %v3330_v34 = vadd.f32 1.0, %v5913_v32 }
0x11b5   :  { %v5917_v20 = vpop.eup %5916  ;;  %v2951_v47 = vadd.f32 1.0, %v5915_v63 }
0x11b6   :  { %5920 = vrcp.f32 %v3330_v34  ;;  %v2950_v54 = vadd.f32 1.0, %v5917_v20 }
0x11b7   :  { %5922 = vrcp.f32 %v2951_v47 }
0x11b8   :  { %5924 = vrcp.f32 %v2950_v54 }
0x11bf   :  { %v7903_v40 = vpop.eup %5918 }
0x11c3   :  { %v7907_v12 = vpop.eup %5920 }
0x11c4   :  { %v7910_v9 = vpop.eup %5922 }
0x11c5   :  { %v5925_v6 = vpop.eup %5924 }
0x11f3   :  { %v3393_v2 = vpop.permute.xlu1 %3392 }
0x11f4   :  { %v3409_v53 = vmul.f32 %v7903_v40, %v3393_v2 }
0x11f6   :  { %3422 = vrot.lane.b32.xlu0 %v3409_v53, %s6081_s3 }
0x11f7   :  { %v3391_v42 = vpop.permute.xlu1 %3390  ;;  %v3017_v35 = vpop.permute.xlu0 %3016 }
0x11f8   :  { %v3408_v19 = vmul.f32 %v7907_v12, %v3391_v42  ;;  %v3029_v32 = vmul.f32 %v7910_v9, %v3017_v35 }
0x11fa   :  { %3420 = vrot.lane.b32.xlu0 %v3408_v19, %s6081_s3 }
0x11fb   :  { %v3015_v58 = vpop.permute.xlu1 %3014  ;;  %v2983_v47 = vpop.permute.xlu0 %2982 }
0x11fc   :  { %v3028_v63 = vmul.f32 %v5925_v6, %v3015_v58  ;;  %v2997_v53 = vmul.f32 %v7867_v8, %v2983_v47 }
0x11fe   :  { %3044 = vrot.lane.b32.xlu1 %v3028_v63, %s6081_s3  ;;  %3046 = vrot.lane.b32.xlu0 %v3029_v32, %s6081_s3 }
0x11ff   :  { %v2981_v34 = vpop.permute.xlu1 %2980 }
0x1200   :  { %v2996_v20 = vmul.f32 %v7863_v7, %v2981_v34 }
0x1212   :  { %v3041_v54 = vpop.permute.xlu1 %3040 }
0x1213   :  { %v3056_v2 = vadd.f32 %v3041_v54, %v2996_v20 }
0x1215   :  { %5926 = vtanh.f32 %v3056_v2  ;;  %v3361_v58 = vpop.permute.xlu0 %3360 }
0x1216   :  { %v3043_v42 = vpop.permute.xlu1 %3042  ;;  %v3378_v20 = vmul.f32 %v7907_v12, %v3361_v58 }
0x1217   :  { %v3057_v19 = vadd.f32 %v3043_v42, %v2997_v53 }
0x1219   :  { %5928 = vtanh.f32 %v3057_v19  ;;  %v3363_v32 = vpop.permute.xlu0 %3362 }
0x121a   :  { %v2985_v63 = vpop.permute.xlu1 %2984  ;;  %v3379_v34 = vmul.f32 %v7903_v40, %v3363_v32 }
0x121e   :  { %v2987_v47 = vpop.permute.xlu1 %2986 }
0x121f   :  { %v2999_v42 = vmul.f32 %v7910_v9, %v2987_v47 }
0x1222   :  { %v5927_v17 = vpop.eup %5926 }
0x1223   :  { %3076 = vrot.lane.b32.xlu1 %v5927_v17, %s6080_s29  ;;  %v2998_v17 = vmul.f32 %v5925_v6, %v2985_v63 }
0x1226   :  { %v5929_v35 = vpop.eup %5928 }
0x1227   :  { %3078 = vrot.lane.b32.xlu0 %v5929_v35, %s6080_s29 }
0x1268   :  { %v3423_v45 = vpop.permute.xlu0 %3422 }
0x1269   :  { %v7921_v41 = vadd.f32 %v3423_v45, %v3379_v34 }
0x126b   :  { %5930 = vtanh.f32 %v7921_v41 }
0x126c   :  { %v3421_v54 = vpop.permute.xlu0 %3420 }
0x126d   :  { %v7925_v53 = vadd.f32 %v3421_v54, %v3378_v20 }
0x126f   :  { %5932 = vtanh.f32 %v7925_v53 }
0x1270   :  { %v3045_v35 = vpop.permute.xlu1 %3044  ;;  %v3047_v48 = vpop.permute.xlu0 %3046 }
0x1271   :  { %v7929_v5 = vadd.f32 %v3045_v35, %v2998_v17  ;;  %v7931_v32 = vadd.f32 %v3047_v48, %v2999_v42 }
0x1273   :  { %5934 = vtanh.f32 %v7929_v5 }
0x1274   :  { %5936 = vtanh.f32 %v7931_v32 }
0x1278   :  { %v5931_v45 = vpop.eup %5930 }
0x1279   :  { %3458 = vrot.lane.b32.xlu0 %v5931_v45, %s6080_s29 }
0x127c   :  { %v5933_v58 = vpop.eup %5932 }
0x127d   :  { %3456 = vrot.lane.b32.xlu1 %v5933_v58, %s6080_s29 }
0x1280   :  { %v5935_v63 = vpop.eup %5934 }
0x1281   :  { %v5937_v34 = vpop.eup %5936  ;;  %3080 = vrot.lane.b32.xlu1 %v5935_v63, %s6080_s29 }
0x1282   :  { %3082 = vrot.lane.b32.xlu0 %v5937_v34, %s6080_s29 }
0x1295   :  { %v3077_v20 = vpop.permute.xlu1 %3076 }
0x1296   :  { %v3092_v48 = vmul.f32 %v7863_v7, %v3077_v20 }
0x1298   :  { %3119 = vrot.lane.b32.xlu1 %v3092_v48, %s6081_s3 }
0x1299   :  { %v3079_v47 = vpop.permute.xlu0 %3078 }
0x129a   :  { %v3093_v54 = vmul.f32 %v7867_v8, %v3079_v47 }
0x129c   :  { %3121 = vrot.lane.b32.xlu0 %v3093_v54, %s6081_s3 }
0x12eb   :  { %v3459_v17 = vpop.permute.xlu0 %3458 }
0x12ec   :  { %v3475_v42 = vmul.f32 %v7903_v40, %v3459_v17  ;;  %v9083_v17 = vld [vmem:[#allocation16_spill] sm:$0xff] }
0x12ee   :  { %3501 = vrot.lane.b32.xlu0 %v3475_v42, %s6081_s3 }
0x12ef   :  { %v3457_v35 = vpop.permute.xlu1 %3456 }
0x12f0   :  { %v3474_v45 = vmul.f32 %v7907_v12, %v3457_v35  ;;  %v9084_v35 = vld [vmem:[#allocation17_spill] sm:$0xff] }
0x12f2   :  { %3499 = vrot.lane.b32.xlu1 %v3474_v45, %s6081_s3 }
0x12f3   :  { %v3081_v58 = vpop.permute.xlu1 %3080 }
0x12f4   :  { %v3094_v63 = vmul.f32 %v5925_v6, %v3081_v58  ;;  %v3083_v7 = vpop.permute.xlu0 %3082 }
0x12f5   :  { %v3095_v34 = vmul.f32 %v7910_v9, %v3083_v7  ;;  %v9085_v7 = vld [vmem:[#allocation19_spill] sm:$0xff] }
0x12f6   :  { %3123 = vrot.lane.b32.xlu1 %v3094_v63, %s6081_s3 }
0x12f7   :  { %3125 = vrot.lane.b32.xlu0 %v3095_v34, %s6081_s3 }
0x12fa   :  { %3149 = vrot.lane.b32.xlu1 %v3056_v2, %s6083_s18 }
0x12fb   :  { %3151 = vrot.lane.b32.xlu0 %v3057_v19, %s6083_s18 }
0x130a   :  { %v7952_v8 = vpop.permute.xlu1 %3119 }
0x130b   :  { %v7961_v40 = vsel %vm9027_vm15, %v7952_v8, %v7754_v36  ;;  %v6090_v36 = vmov 1  }
0x130c   :  { %5512 = vmatprep.mubr.msk.f32.mxu0 %vm891_vm3, %v7961_v40  ;;  %v7980_v6 = vsel %vm884_vm1, 6, %v6090_v36  ;;  %v9086_v36 = vld [vmem:[#allocation21_spill] sm:$0xff] }
0x130d   :  { %vm3481_vm0 = vcmp.gt.s32.totalorder %v6725_v16, %v7980_v6  ;;  %vm3482_vm5 = vcmp.gt.s32.totalorder %v6723_v13, %v7980_v6 }
0x130e   :  { %v7965_v12 = vpop.permute.xlu0 %3121 }
0x130f   :  { %9080 = vst [vmem:[#allocation10_spill] sm:$0xff] %v7965_v12  ;;  %v7974_v9 = vsel %vm9025_vm10, %v7965_v12, %v7767_v51  ;;  %v9090_v12 = vld [vmem:[#allocation20_spill] sm:$0xff] }
0x1310   :  { %5513 = vmatmul.mubr.msk.f32.gmra.mxu0 %vm891_vm3, %v7974_v9 }
0x1360   :  { %v7982_v2 = vpop.permute.xlu0 %3501 }
0x1361   :  { %v3518_v20 = vsel %vm3482_vm5, %v7982_v2, %v7795_v38 }
0x1364   :  { %v7984_v19 = vpop.permute.xlu1 %3499 }
0x1365   :  { %v3517_v51 = vsel %vm3481_vm0, %v7984_v19, %v7788_v37 }
0x1366   :  { %5526 = vmatprep.mubr.msk.f32.mxu1 %vm891_vm3, %v3517_v51  ;;  %v9087_v51 = vld [vmem:[#allocation3_spill] sm:$0xff] }
0x1367   :  { %5527 = vmatmul.mubr.msk.f32.vlgmr.msra.gmra.mxu1 %vm891_vm3, %v3518_v20 }
0x1368   :  { %v8002_v48 = vpop.permute.xlu1 %3123 }
0x1369   :  { %9081 = vst [vmem:[#allocation11_spill] sm:$0xff] %v8002_v48  ;;  %v8006_v47 = vpop.permute.xlu0 %3125  ;;  %v8013_v37 = vsel %vm9026_vm9, %v8002_v48, %v7812_v3 }
0x136a   :  { %9082 = vst [vmem:[#allocation14_spill] sm:$0xff] %v8006_v47  ;;  %5515 = vmatprep.mubr.msk.f32.mxu0 %vm891_vm3, %v8013_v37  ;;  %v8024_v38 = vsel %vm9024_vm11, %v8006_v47, %v7823_v29  ;;  %v8043_v29 = vld [vmem:[%s8961_s6] ss:$0 sm:$0xff] }
0x136b   :  { %5516 = vmatmul.mubr.msk.f32.gmra.mxu0 %vm891_vm3, %v8024_v38  ;;  %v536_v34 = vadd.f32 %v8043_v29, %v9085_v7 }
0x136d   :  { %v3572_v20 = vadd.f32 %v9087_v51, %v536_v34 }
0x13d0   :  { %v5514_v54 = vpop.f32.mrf.mxu0 }
0x13d1   :  { %v3309_v3 = vadd.f32 %v5514_v54, %v9083_v17  ;;  %v9088_v17 = vld [vmem:[#allocation4_spill] sm:$0xff] }
0x13d2   :  { %v3287_v42 = vpop.f32.mrf.mxu0 }
0x13d3   :  { %5938 = vtanh.f32 %v3309_v3  ;;  %v3308_v45 = vadd.f32 %v3287_v42, %v9084_v35  ;;  %v4991_v34 = vmul.f32 -1.442695, %v3309_v3 }
0x13d5   :  { %5940 = vtanh.f32 %v3308_v45  ;;  %v4990_v7 = vmul.f32 -1.442695, %v3308_v45 }
0x13e0   :  { %v5939_v58 = vpop.eup %5938 }
0x13e1   :  { %3396 = vrot.lane.b32.xlu0 %v5939_v58, %s6080_s29  ;;  %v9089_v58 = vld [vmem:[#allocation18_spill] sm:$0xff] }
0x13e2   :  { %v5941_v63 = vpop.eup %5940 }
0x13e3   :  { %3394 = vrot.lane.b32.xlu1 %v5941_v63, %s6080_s29 }
0x13e5   :  { %3531 = vrot.lane.b32.xlu0 %v7921_v41, %s6083_s18  ;;  %v531_v41 = vadd.f32 %v8043_v29, %v9086_v36 }
0x13e7   :  { %3529 = vrot.lane.b32.xlu1 %v7925_v53, %s6083_s18 }
0x13e9   :  { %3153 = vrot.lane.b32.xlu0 %v7929_v5, %s6083_s18  ;;  %v3571_v5 = vadd.f32 %v9088_v17, %v531_v41  ;;  %v3150_v17 = vpop.permute.xlu1 %3149 }
0x13ed   :  { %3155 = vrot.lane.b32.xlu0 %v7931_v32, %s6083_s18 }
0x1427   :  { %v5528_v53 = vpop.f32.mrf.mxu1 }
0x1428   :  { %v3691_v54 = vadd.f32 %v5528_v53, %v3572_v20  ;;  %v3152_v20 = vpop.permute.xlu0 %3151 }
0x1429   :  { %v3661_v42 = vpop.f32.mrf.mxu1 }
0x142a   :  { %5942 = vtanh.f32 %v3691_v54  ;;  %v3690_v32 = vadd.f32 %v3661_v42, %v3571_v5 }
0x142b   :  { %v5517_v35 = vpop.f32.mrf.mxu0 }
0x142c   :  { %v3311_v63 = vadd.f32 %v5517_v35, %v9089_v58  ;;  %5944 = vtanh.f32 %v3690_v32 }
0x142d   :  { %v3297_v47 = vpop.f32.mrf.mxu0 }
0x142e   :  { %v3310_v48 = vadd.f32 %v3297_v47, %v9090_v12  ;;  %5946 = vtanh.f32 %v3311_v63  ;;  %v8060_v12 = vsel %vm9025_vm10, %v3152_v20, %v7850_v44  ;;  %v8069_v47 = vsel %vm9027_vm15, %v3150_v17, %v7859_v55 }
0x142f   :  { %vm9028_vm10 = vcmp.gt.s32.totalorder %v6861_v11, %v7980_v6 }
0x1430   :  { %5948 = vtanh.f32 %v3310_v48 }
0x1431   :  { %5950 = vpow2.f32 %v4990_v7 }
0x1432   :  { %5952 = vpow2.f32 %v4991_v34 }
0x1437   :  { %v5943_v36 = vpop.eup %5942 }
0x1438   :  { %3776 = vrot.lane.b32.xlu1 %v5943_v36, %s6080_s29 }
0x1439   :  { %v5945_v51 = vpop.eup %5944 }
0x143b   :  { %v5947_v41 = vpop.eup %5946 }
0x143c   :  { %3774 = vrot.lane.b32.xlu1 %v5945_v51, %s6080_s29  ;;  %3400 = vrot.lane.b32.xlu0 %v5947_v41, %s6080_s29 }
0x143d   :  { %v5949_v53 = vpop.eup %5948 }
0x143e   :  { %v5951_v3 = vpop.eup %5950 }
0x143f   :  { %v3332_v45 = vadd.f32 1.0, %v5951_v3  ;;  %v5953_v5 = vpop.eup %5952 }
0x1440   :  { %3398 = vrot.lane.b32.xlu1 %v5949_v53, %s6080_s29  ;;  %3366 = vrot.lane.b32.xlu0 %v8060_v12, %s6081_s3  ;;  %v3333_v42 = vadd.f32 1.0, %v5953_v5  ;;  %v4992_v5 = vmul.f32 -1.442695, %v3310_v48 }
0x1441   :  { %5954 = vrcp.f32 %v3332_v45  ;;  %v5000_v45 = vmul.f32 -1.442695, %v3690_v32 }
0x1442   :  { %5956 = vrcp.f32 %v3333_v42 }
0x1444   :  { %3364 = vrot.lane.b32.xlu1 %v8069_v47, %s6081_s3 }
0x144e   :  { %v8073_v35 = vpop.eup %5954 }
0x144f   :  { %v8077_v55 = vpop.eup %5956 }
0x1453   :  { %v3397_v44 = vpop.permute.xlu0 %3396 }
0x1454   :  { %v3411_v51 = vmul.f32 %v8077_v55, %v3397_v44 }
0x1455   :  { %v3395_v58 = vpop.permute.xlu1 %3394 }
0x1456   :  { %v3410_v7 = vmul.f32 %v8073_v35, %v3395_v58 }
0x1457   :  { %v3532_v36 = vpop.permute.xlu0 %3531 }
0x1458   :  { %3424 = vrot.lane.b32.xlu1 %v3410_v7, %s6081_s3  ;;  %v3548_v53 = vsel %vm3482_vm5, %v3532_v36, %v7883_v56  ;;  %v5001_v56 = vmul.f32 -1.442695, %v3691_v54 }
0x1459   :  { %v3530_v34 = vpop.permute.xlu1 %3529 }
0x145a   :  { %v3547_v41 = vsel %vm3481_vm0, %v3530_v34, %v7874_v49  ;;  %5958 = vpow2.f32 %v5001_v56 }
0x145b   :  { %v3154_v20 = vpop.permute.xlu0 %3153  ;;  %3744 = vrot.lane.b32.xlu0 %v3547_v41, %s6081_s3  ;;  %5960 = vpow2.f32 %v5000_v45 }
0x145c   :  { %3426 = vrot.lane.b32.xlu1 %v3411_v51, %s6081_s3  ;;  %v8094_v17 = vsel %vm9026_vm9, %v3154_v20, %v7889_v1  ;;  %v4993_v1 = vmul.f32 -1.442695, %v3311_v63 }
0x145e   :  { %5962 = vpow2.f32 %v4993_v1 }
0x145f   :  { %3746 = vrot.lane.b32.xlu0 %v3548_v53, %s6081_s3  ;;  %v3156_v3 = vpop.permute.xlu0 %3155  ;;  %5964 = vpow2.f32 %v4992_v5 }
0x1460   :  { %3368 = vrot.lane.b32.xlu1 %v8094_v17, %s6081_s3  ;;  %v8103_v49 = vsel %vm9024_vm11, %v3156_v3, %v7899_v10  ;;  %vm9029_vm11 = vcmp.gt.s32.totalorder %v6863_v59, %v7980_v6 }
0x1464   :  { %3370 = vrot.lane.b32.xlu1 %v8103_v49, %s6081_s3 }
0x1467   :  { %v5959_v42 = vpop.eup %5958 }
0x1468   :  { %v3715_v44 = vadd.f32 1.0, %v5959_v42  ;;  %v5961_v58 = vpop.eup %5960 }
0x1469   :  { %v3714_v36 = vadd.f32 1.0, %v5961_v58 }
0x146a   :  { %5966 = vrcp.f32 %v3715_v44 }
0x146b   :  { %v5963_v7 = vpop.eup %5962  ;;  %5968 = vrcp.f32 %v3714_v36 }
0x146c   :  { %v5965_v34 = vpop.eup %5964  ;;  %v3335_v10 = vadd.f32 1.0, %v5963_v7 }
0x146d   :  { %v3334_v51 = vadd.f32 1.0, %v5965_v34 }
0x146e   :  { %5970 = vrcp.f32 %v3335_v10 }
0x146f   :  { %5972 = vrcp.f32 %v3334_v51 }
0x1477   :  { %v8107_v54 = vpop.eup %5966 }
0x1478   :  { %v8111_v48 = vpop.eup %5968 }
0x147b   :  { %v8114_v3 = vpop.eup %5970 }
0x147c   :  { %v8117_v56 = vpop.eup %5972 }
0x14aa   :  { %v3777_v32 = vpop.permute.xlu1 %3776 }
0x14ab   :  { %v3793_v63 = vmul.f32 %v8107_v54, %v3777_v32 }
0x14ad   :  { %3806 = vrot.lane.b32.xlu0 %v3793_v63, %s6081_s3 }
0x14ae   :  { %v3775_v41 = vpop.permute.xlu1 %3774  ;;  %v3401_v53 = vpop.permute.xlu0 %3400 }
0x14af   :  { %v3792_v20 = vmul.f32 %v8111_v48, %v3775_v41  ;;  %v3413_v1 = vmul.f32 %v8114_v3, %v3401_v53 }
0x14b1   :  { %3804 = vrot.lane.b32.xlu0 %v3792_v20, %s6081_s3 }
0x14b2   :  { %v3399_v45 = vpop.permute.xlu1 %3398  ;;  %v3367_v58 = vpop.permute.xlu0 %3366 }
0x14b3   :  { %v3412_v5 = vmul.f32 %v8117_v56, %v3399_v45  ;;  %v3381_v34 = vmul.f32 %v8077_v55, %v3367_v58 }
0x14b5   :  { %3428 = vrot.lane.b32.xlu1 %v3412_v5, %s6081_s3  ;;  %3430 = vrot.lane.b32.xlu0 %v3413_v1, %s6081_s3 }
0x14b6   :  { %v3365_v42 = vpop.permute.xlu1 %3364 }
0x14b7   :  { %v3380_v44 = vmul.f32 %v8073_v35, %v3365_v42 }
0x14ca   :  { %v3425_v7 = vpop.permute.xlu1 %3424 }
0x14cb   :  { %v8124_v36 = vadd.f32 %v3425_v7, %v3380_v44 }
0x14cd   :  { %5974 = vtanh.f32 %v8124_v36  ;;  %v3745_v41 = vpop.permute.xlu0 %3744 }
0x14ce   :  { %v3427_v10 = vpop.permute.xlu1 %3426  ;;  %v3762_v42 = vmul.f32 %v8111_v48, %v3745_v41 }
0x14cf   :  { %v8128_v51 = vadd.f32 %v3427_v10, %v3381_v34 }
0x14d1   :  { %5976 = vtanh.f32 %v8128_v51  ;;  %v3747_v20 = vpop.permute.xlu0 %3746 }
0x14d2   :  { %v3369_v53 = vpop.permute.xlu1 %3368  ;;  %v3763_v45 = vmul.f32 %v8107_v54, %v3747_v20 }
0x14d3   :  { %v3382_v34 = vmul.f32 %v8117_v56, %v3369_v53 }
0x14d6   :  { %v3371_v44 = vpop.permute.xlu1 %3370 }
0x14d7   :  { %v3383_v10 = vmul.f32 %v8114_v3, %v3371_v44 }
0x14da   :  { %v5975_v32 = vpop.eup %5974 }
0x14db   :  { %3460 = vrot.lane.b32.xlu1 %v5975_v32, %s6080_s29 }
0x14de   :  { %v5977_v63 = vpop.eup %5976 }
0x14df   :  { %3462 = vrot.lane.b32.xlu0 %v5977_v63, %s6080_s29 }
0x151f   :  { %v3807_v1 = vpop.permute.xlu0 %3806 }
0x1520   :  { %v3823_v5 = vadd.f32 %v3807_v1, %v3763_v45  ;;  %v872_v1 = vld [vmem:[%s8963_s2] sm:$0xff] }
0x1522   :  { %5978 = vtanh.f32 %v3823_v5  ;;  %v873_v5 = vld [vmem:[%s8963_s2 + $0x8] sm:$0xff] }
0x1523   :  { %v3805_v58 = vpop.permute.xlu0 %3804 }
0x1524   :  { %v3822_v7 = vadd.f32 %v3805_v58, %v3762_v42  ;;  %v3927_v42 = vld [vmem:[%s8964_s9 + $0x18] sm:$0xff] }
0x1525   :  { %5535 = vmatprep.subr.mxu0 %v3927_v42 }
0x1526   :  { %5980 = vtanh.f32 %v3822_v7  ;;  %5536 = vmatpush3.msra.mxu0 %v3927_v42 }
0x1527   :  { %v3429_v32 = vpop.permute.xlu1 %3428  ;;  %v3431_v63 = vpop.permute.xlu0 %3430 }
0x1528   :  { %v8137_v33 = vadd.f32 %v3429_v32, %v3382_v34  ;;  %v8139_v21 = vadd.f32 %v3431_v63, %v3383_v10  ;;  %v3926_v10 = vld [vmem:[%s8964_s9 + $0x10] sm:$0xff]  ;;  %v8166_v32 = vld [vmem:[%s8965_s10 + $0x18] sm:$0xff] }
0x1529   :  { %5537 = vmatprep.subr.mxu0 %v3926_v10  ;;  %5553 = vmatpush3.msra.mxu1 %v8166_v32  ;;  %v8179_v63 = vld [vmem:[%s8965_s10 + $0x10] sm:$0xff] }
0x152a   :  { %5982 = vtanh.f32 %v8137_v33  ;;  %5538 = vmatpush3.msra.mxu0 %v3926_v10  ;;  %5554 = vmatprep.subr.mxu1 %v9069_v14 }
0x152b   :  { %5984 = vtanh.f32 %v8139_v21  ;;  %5555 = vmatpush3.msra.mxu1 %v8179_v63 }
0x152c   :  { %5556 = vmatprep.subr.mxu1 %v9069_v14 }
0x152f   :  { %v5979_v41 = vpop.eup %5978 }
0x1530   :  { %3842 = vrot.lane.b32.xlu0 %v5979_v41, %s6080_s29  ;;  %v8186_v41 = vld [vmem:[%s8965_s10 + $0x8] sm:$0xff] }
0x1531   :  { %5557 = vmatpush3.msra.mxu1 %v8186_v41 }
0x1532   :  { %5558 = vmatprep.subr.mxu1 %v9069_v14 }
0x1533   :  { %v5981_v20 = vpop.eup %5980 }
0x1534   :  { %3840 = vrot.lane.b32.xlu1 %v5981_v20, %s6080_s29 }
0x1537   :  { %v5983_v53 = vpop.eup %5982 }
0x1538   :  { %v5985_v45 = vpop.eup %5984  ;;  %3464 = vrot.lane.b32.xlu1 %v5983_v53, %s6080_s29  ;;  %v8192_v53 = vld [vmem:[%s8965_s10] sm:$0xff] }
0x1539   :  { %3466 = vrot.lane.b32.xlu0 %v5985_v45, %s6080_s29  ;;  %5559 = vmatpush3.msra.mxu1 %v8192_v53 }
0x153a   :  { %5563 = vmatprep.subr.mxu1 %v9069_v14 }
0x153c   :  { %1166 = vperm.xlu1 %5633, %v872_v1  }
0x153d   :  { %1169 = vperm.xlu0 %5632, %v873_v5  }
0x154d   :  { %v3461_v44 = vpop.permute.xlu1 %3460 }
0x154e   :  { %v3476_v58 = vmul.f32 %v8073_v35, %v3461_v44  ;;  %v3925_v35 = vld [vmem:[%s8964_s9 + $0x8] sm:$0xff] }
0x154f   :  { %5539 = vmatprep.subr.mxu0 %v3925_v35 }
0x1550   :  { %3503 = vrot.lane.b32.xlu1 %v3476_v58, %s6081_s3  ;;  %5540 = vmatpush3.msra.mxu0 %v3925_v35  ;;  %v9091_v35 = vld [vmem:[#allocation26_spill] sm:$0xff] }
0x1551   :  { %v3463_v7 = vpop.permute.xlu0 %3462 }
0x1552   :  { %v3477_v34 = vmul.f32 %v8077_v55, %v3463_v7  ;;  %v3924_v55 = vld [vmem:[%s8964_s9] sm:$0xff] }
0x1553   :  { %5541 = vmatprep.subr.mxu0 %v3924_v55 }
0x1554   :  { %3505 = vrot.lane.b32.xlu0 %v3477_v34, %s6081_s3  ;;  %5542 = vmatpush3.msra.mxu0 %v3924_v55 }
0x1555   :  { %5574 = vmatprep.subr.mxu0 %v9069_v14 }
0x15a2   :  { %v3843_v20 = vpop.permute.xlu0 %3842 }
0x15a3   :  { %v3859_v45 = vmul.f32 %v8107_v54, %v3843_v20 }
0x15a5   :  { %3891 = vrot.lane.b32.xlu0 %v3859_v45, %s6081_s3  ;;  %v9092_v45 = vld [vmem:[#allocation27_spill] sm:$0xff] }
0x15a6   :  { %v3841_v1 = vpop.permute.xlu1 %3840 }
0x15a7   :  { %v3858_v5 = vmul.f32 %v8111_v48, %v3841_v1 }
0x15a9   :  { %3889 = vrot.lane.b32.xlu1 %v3858_v5, %s6081_s3 }
0x15aa   :  { %v3465_v42 = vpop.permute.xlu1 %3464 }
0x15ab   :  { %v3478_v44 = vmul.f32 %v8117_v56, %v3465_v42  ;;  %v3467_v58 = vpop.permute.xlu0 %3466 }
0x15ac   :  { %v3479_v7 = vmul.f32 %v8114_v3, %v3467_v58 }
0x15ad   :  { %3507 = vrot.lane.b32.xlu1 %v3478_v44, %s6081_s3 }
0x15ae   :  { %3509 = vrot.lane.b32.xlu0 %v3479_v7, %s6081_s3 }
0x15b7   :  { %v8206_v54 = vpop.permute.xlu1 %1166 }
0x15b8   :  { %v8208_v34 = vpop.permute.xlu0 %1169  ;;  %vm1183_vm9 = vcmp.gt.s32.totalorder %v8206_v54, %v9091_v35 }
0x15b9   :  { %vm1184_vm15 = vcmp.gt.s32.totalorder %v8208_v34, %v9091_v35 }
0x15c2   :  { %v8212_v48 = vpop.permute.xlu1 %3503 }
0x15c3   :  { %v3519_v56 = vsel %vm9029_vm11, %v8212_v48, %v7961_v40  ;;  %v6091_v40 = vmov -1e+30   ;;  %vm1568_vm11 = vcmp.gt.s32.totalorder %v8208_v34, %v6895_v27 }
0x15c4   :  { %5529 = vmatprep.mubr.msk.f32.mxu1 %vm891_vm3, %v3519_v56  ;;  %v1249_v55 = vsel %vm1183_vm9, 0.0, %v6091_v40  ;;  %v1250_v20 = vsel %vm1184_vm15, 0.0, %v6091_v40  ;;  %v1634_v7 = vsel %vm1568_vm11, 0.0, %v6091_v40  ;;  %vm1952_vm9 = vcmp.gt.s32.totalorder %v8208_v34, %v7124_v22  ;;  %v9094_v56 = vld [vmem:[#allocation32_spill] sm:$0xff] }
0x15c5   :  { %v1255_v1 = vsel %vm1159_vm2, %v9092_v45, %v1249_v55  ;;  %vm1951_vm2 = vcmp.gt.s32.totalorder %v8206_v54, %v7124_v22  ;;  %v9095_v55 = vld [vmem:[#allocation31_spill] sm:$0xff]  ;;  %vm3103_vm11 = vcmp.gt.s32.totalorder %v8206_v54, %v7773_v28  ;;  %vm3488_vm15 = vcmp.gt.s32.totalorder %v8208_v34, %v7980_v6 }
0x15c6   :  { %v8222_v3 = vpop.permute.xlu0 %3505  ;;  %v1261_v42 = vmax.f32 %v1255_v1, -1e+30  ;;  %v2017_v1 = vsel %vm1951_vm2, 0.0, %v6091_v40  ;;  %vm9099_vm2 = vcmp.gt.s32.totalorder %v6725_v16, %v7773_v28  ;;  %v3554_v31 = vsel %vm3488_vm15, 0.0, %v6091_v40 }
0x15c7   :  { %v3520_v10 = vsel %vm9028_vm10, %v8222_v3, %v7974_v9  ;;  %vm1567_vm10 = vcmp.gt.s32.totalorder %v8206_v54, %v6895_v27  ;;  %v9093_v9 = vld [vmem:[#allocation28_spill] sm:$0xff] }
0x15c8   :  { %5530 = vmatmul.mubr.msk.f32.gmra.mxu1 %vm891_vm3, %v3520_v10  ;;  %v1256_v5 = vsel %vm1160_vm4, %v9093_v9, %v1250_v20  ;;  %v1633_v44 = vsel %vm1567_vm10, 0.0, %v6091_v40  ;;  %v1640_v20 = vsel %vm1562_vm8, %v9095_v55, %v1634_v7  ;;  %vm2335_vm4 = vcmp.gt.s32.totalorder %v8206_v54, %v7339_v18 }
0x15c9   :  { %v1262_v58 = vmax.f32 %v1256_v5, -1e+30  ;;  %v1639_v10 = vsel %vm1561_vm7, %v9094_v56, %v1633_v44  ;;  %v2018_v5 = vsel %vm1952_vm9, 0.0, %v6091_v40  ;;  %vm2336_vm10 = vcmp.gt.s32.totalorder %v8208_v34, %v7339_v18 }
0x15ca   :  { %v1645_v45 = vmax.f32 %v1261_v42, %v1639_v10  ;;  %v2023_v44 = vsel %vm1945_vm13, %v7128_v23, %v2017_v1  ;;  %v2024_v42 = vsel %vm1946_vm14, %v7126_v43, %v2018_v5  ;;  %v2402_v10 = vsel %vm2336_vm10, 0.0, %v6091_v40 }
0x15cb   :  { %v1646_v9 = vmax.f32 %v1262_v58, %v1640_v20  ;;  %v2401_v58 = vsel %vm2335_vm4, 0.0, %v6091_v40  ;;  %vm2719_vm7 = vcmp.gt.s32.totalorder %v8206_v54, %v7553_v15  ;;  %vm2720_vm8 = vcmp.gt.s32.totalorder %v8208_v34, %v7553_v15 }
0x15cc   :  { %v2029_v7 = vmax.f32 %v1645_v45, %v2023_v44  ;;  %v2407_v23 = vsel %vm2329_vm12, %v7343_v39, %v2401_v58  ;;  %v2408_v43 = vsel %vm2330_vm6, %v7341_v24, %v2402_v10  ;;  %v2785_v20 = vsel %vm2719_vm7, 0.0, %v6091_v40 }
0x15cd   :  { %v2030_v56 = vmax.f32 %v1646_v9, %v2024_v42  ;;  %v2786_v1 = vsel %vm2720_vm8, 0.0, %v6091_v40  ;;  %vm3104_vm13 = vcmp.gt.s32.totalorder %v8208_v34, %v7773_v28  ;;  %vm9096_vm12 = vcmp.gt.s32.totalorder %v6725_v16, %v7553_v15 }
0x15ce   :  { %v2413_v55 = vmax.f32 %v2029_v7, %v2407_v23  ;;  %v2791_v39 = vsel %vm9096_vm12, %v7557_v4, %v2785_v20  ;;  %vm9097_vm6 = vcmp.gt.s32.totalorder %v6723_v13, %v7553_v15  ;;  %v3169_v5 = vsel %vm3103_vm11, 0.0, %v6091_v40 }
0x15cf   :  { %v2414_v45 = vmax.f32 %v2030_v56, %v2408_v43  ;;  %v2792_v24 = vsel %vm9097_vm6, %v7555_v46, %v2786_v1  ;;  %v3170_v42 = vsel %vm3104_vm13, 0.0, %v6091_v40  ;;  %vm3487_vm14 = vcmp.gt.s32.totalorder %v8206_v54, %v7980_v6 }
0x15d0   :  { %v2797_v9 = vmax.f32 %v2413_v55, %v2791_v39  ;;  %v9098_v7 = vmov 0   ;;  %v3175_v46 = vsel %vm9099_vm2, %v7777_v57, %v3169_v5  ;;  %vm9100_vm9 = vcmp.gt.s32.totalorder %v6723_v13, %v7773_v28  ;;  %v9102_v5 = vld [vmem:[#allocation5_spill] sm:$0xff] }
0x15d1   :  { %v2798_v44 = vmax.f32 %v2414_v45, %v2792_v24  ;;  %v8313_v4 = vsel %vm884_vm1, 7, %v9098_v7  ;;  %v3176_v58 = vsel %vm9100_vm9, %v7775_v0, %v3170_v42  ;;  %v3553_v10 = vsel %vm3487_vm14, 0.0, %v6091_v40 }
0x15d2   :  { %vm3872_vm4 = vcmp.gt.s32.totalorder %v8208_v34, %v8313_v4  ;;  %v3181_v56 = vmax.f32 %v2797_v9, %v3175_v46  ;;  %vm3871_vm1 = vcmp.gt.s32.totalorder %v8206_v54, %v8313_v4  ;;  %vm3866_vm10 = vcmp.gt.s32.totalorder %v6723_v13, %v8313_v4 }
0x15d3   :  { %v3182_v23 = vmax.f32 %v2798_v44, %v3176_v58  ;;  %v3878_v57 = vsel %vm3872_vm4, 0.0, %v6091_v40  ;;  %v3559_v0 = vsel %vm3481_vm0, %v7984_v19, %v3553_v10  ;;  %vm3865_vm7 = vcmp.gt.s32.totalorder %v6725_v16, %v8313_v4  ;;  %v9103_v58 = vld [vmem:[#allocation24_spill] sm:$0xff]  ;;  %v9104_v10 = vld [vmem:[#allocation25_spill] sm:$0xff] }
0x15d4   :  { %v3560_v34 = vsel %vm3482_vm5, %v7982_v2, %v3554_v31  ;;  %v3565_v54 = vmax.f32 %v3181_v56, %v3559_v0  ;;  %v3877_v20 = vsel %vm3871_vm1, 0.0, %v6091_v40  ;;  %vm3485_vm0 = vcmp.gt.s32.totalorder %v6867_v25, %v7980_v6 }
0x15d5   :  { %v3566_v1 = vmax.f32 %v3182_v23, %v3560_v34  ;;  %vm3486_vm5 = vcmp.gt.s32.totalorder %v6865_v60, %v7980_v6  ;;  %vm6092_vm8 = vmmov 0   ;;  %v556_v56 = vadd.f32 %v8043_v29, %v9103_v58 }
0x15d6   :  { %v551_v23 = vadd.f32 %v8043_v29, %v9104_v10  ;;  %vm9109_vm12 = vcmp.gt.s32.totalorder %v6863_v59, %v7980_v6  ;;  %vm9110_vm6 = vcmp.gt.s32.totalorder %v6861_v11, %v7980_v6  ;;  %vm9112_vm2 = vcmp.gt.s32.totalorder %v6863_v59, %v9091_v35 }
0x15d7   :  { %vm9113_vm1 = vcmp.gt.s32.totalorder %v6863_v59, %v6895_v27 }
0x1617   :  { %v3892_v43 = vpop.permute.xlu0 %3891 }
0x1618   :  { %v3908_v55 = vsel %vm3866_vm10, %v3892_v43, %v3878_v57  ;;  %v9105_v57 = vld [vmem:[#allocation7_spill] sm:$0xff] }
0x1619   :  { %v3914_v9 = vmax.f32 %v3566_v1, %v3908_v55  ;;  %v3576_v0 = vadd.f32 %v9105_v57, %v556_v56  ;;  %v8404_v1 = vld [vmem:[%s8966_s11] ss:$0 sm:$0xff] }
0x161b   :  { %v3890_v45 = vpop.permute.xlu1 %3889 }
0x161c   :  { %v3907_v39 = vsel %vm3865_vm7, %v3890_v45, %v3877_v20  ;;  %v9106_v20 = vld [vmem:[#allocation8_spill] sm:$0xff]  ;;  %vm9114_vm7 = vcmp.gt.s32.totalorder %v6863_v59, %v7124_v22 }
0x161d   :  { %v3913_v24 = vmax.f32 %v3565_v54, %v3907_v39  ;;  %v3575_v45 = vadd.f32 %v9106_v20, %v551_v23 }
0x161f   :  { %5543 = vmatprep.mubr.msk.f32.mxu0 %vm891_vm3, %v3913_v24  ;;  %v8346_v16 = vpop.permute.xlu1 %3507 }
0x1620   :  { %v3521_v13 = vsel %vm3485_vm0, %v8346_v16, %v8013_v37  ;;  %v8355_v2 = vpop.permute.xlu0 %3509  ;;  %5544 = vmatmul.mubr.msk.f32.vlgmr.msra.gmra.mxu0 %vm891_vm3, %v3914_v9  ;;  %v9101_v37 = vld [vmem:[#allocation22_spill] sm:$0xff] }
0x1621   :  { %v3522_v19 = vsel %vm3486_vm5, %v8355_v2, %v8024_v38  ;;  %5532 = vmatprep.mubr.msk.f32.mxu1 %vm891_vm3, %v3521_v13  ;;  %5575 = vmatpush3.msra.mxu0 %v8166_v32  ;;  %v546_v38 = vadd.f32 %v8043_v29, %v9101_v37 }
0x1622   :  { %5533 = vmatmul.mubr.msk.f32.gmra.mxu1 %vm891_vm3, %v3522_v19  ;;  %5576 = vmatprep.subr.mxu0 %v9069_v14 }
0x1623   :  { %5560 = vmatprep.mubr.msk.f32.mxu1 %vm6092_vm8, %v9069_v14  ;;  %5577 = vmatpush3.msra.mxu0 %v8179_v63  ;;  %v3574_v44 = vadd.f32 %v9102_v5, %v546_v38  ;;  %v8410_v38 = vld [vmem:[%s8967_s7] sm:$0xff] }
0x1624   :  { %5578 = vmatprep.subr.mxu0 %v9069_v14  ;;  %vm4143_vm11 = vcmp.gt.s32.totalorder %v8410_v38, 0  ;;  %vm4251_vm14 = vcmp.gt.s32.totalorder %v8410_v38, 1 }
0x1625   :  { %5579 = vmatpush3.msra.mxu0 %v8186_v41 }
0x1626   :  { %5561 = vmatmul.mubr.f32.vlgmr.msra.gmra.mxu1 %v9069_v14  ;;  %5580 = vmatprep.subr.mxu0 %v9069_v14 }
0x1627   :  { %5564 = vmatpush3.msra.mxu1 %v8166_v32  ;;  %5571 = vmatprep.mubr.msk.f32.mxu1 %vm6092_vm8, %v9069_v14 }
0x1628   :  { %5565 = vmatprep.subr.mxu1 %v9069_v14  ;;  %5581 = vmatpush3.msra.mxu0 %v8192_v53 }
0x1629   :  { %5566 = vmatpush3.msra.mxu1 %v8179_v63  ;;  %5596 = vmatprep.subr.mxu0 %v9069_v14 }
0x162a   :  { %5567 = vmatprep.subr.mxu1 %v9069_v14 }
0x162b   :  { %5568 = vmatpush3.msra.mxu1 %v8186_v41 }
0x162c   :  { %5569 = vmatprep.subr.mxu1 %v9069_v14 }
0x162d   :  { %5570 = vmatpush3.msra.mxu1 %v8192_v53 }
0x162e   :  { %5585 = vmatprep.subr.mxu1 %v9069_v14 }
0x1688   :  { %v5531_v42 = vpop.f32.mrf.mxu1 }
0x1689   :  { %v8389_v46 = vadd.f32 %v5531_v42, %v3574_v44  ;;  %v4144_v44 = vsel %vm4143_vm11, 1, %v9098_v7 }
0x168a   :  { %v3671_v31 = vpop.f32.mrf.mxu1 }
0x16e0   :  { %v8395_v43 = vpop.f32.mrf.mxu0 }
0x16e2   :  { %v5534_v34 = vpop.f32.mrf.mxu1  ;;  %v4019_v55 = vpop.f32.mrf.mxu0 }
0x16e3   :  { %v8398_v54 = vadd.f32 %v5534_v34, %v3576_v0  ;;  %v4020_v24 = vadd.f32 %v8404_v1, %v4019_v55  ;;  %v9107_v55 = vld [vmem:[#allocation23_spill] sm:$0xff] }
0x16e4   :  { %v3681_v39 = vpop.f32.mrf.mxu1  ;;  %v541_v20 = vadd.f32 %v8043_v29, %v9107_v55 }
0x16e5   :  { %v3694_v9 = vadd.f32 %v3681_v39, %v3575_v45  ;;  %v9108_v39 = vld [vmem:[#allocation6_spill] sm:$0xff] }
0x16e6   :  { %v4114_v13 = vpop.f32.mrf.mxu1 }
0x16e7   :  { %v4118_v19 = vadd.f32 %v4114_v13, %v4020_v24  ;;  %v3573_v24 = vadd.f32 %v9108_v39, %v541_v20 }
0x16e8   :  { %v5562_v37 = vpop.f32.mrf.mxu1 }
0x16e9   :  { %5986 = vtanh.f32 %v4118_v19  ;;  %v5013_v42 = vmul.f32 -1.442695, %v4118_v19  ;;  %v3692_v13 = vadd.f32 %v3671_v31, %v3573_v24  ;;  %v5004_v31 = vmul.f32 -1.442695, %v3694_v9 }
0x16eb   :  { %5988 = vpow2.f32 %v5013_v42 }
0x16f6   :  { %v5987_v5 = vpop.eup %5986 }
0x16f7   :  { %4128 = vrot.lane.b32.xlu1 %v5987_v5, %s6080_s29  ;;  %v5002_v5 = vmul.f32 -1.442695, %v3692_v13 }
0x16f8   :  { %v5989_v58 = vpop.eup %5988 }
0x16f9   :  { %v4122_v56 = vadd.f32 1.0, %v5989_v58 }
0x16fb   :  { %4146 = vperm.xlu1 %5633, %v4144_v44   ;;  %5990 = vrcp.f32 %v4122_v56 }
0x1708   :  { %v5991_v10 = vpop.eup %5990 }
0x1709   :  { %v4126_v0 = vmul.f32 0.0, %v5991_v10 }
0x1769   :  { %v4129_v23 = vpop.permute.xlu1 %4128 }
0x176a   :  { %v4131_v57 = vmul.f32 %v5991_v10, %v4129_v23 }
0x176c   :  { %4133 = vrot.lane.b32.xlu0 %v4131_v57, %s6081_s3 }
0x1776   :  { %v8430_v44 = vpop.permute.xlu1 %4146 }
0x1777   :  { %vm4148_vm13 = vcmp.eq.s32.totalorder %v8430_v44, 1 }
0x17de   :  { %v4134_v34 = vpop.permute.xlu0 %4133 }
0x17df   :  { %v8418_v45 = vadd.f32 %v4134_v34, %v4126_v0 }
0x17e1   :  { %5992 = vtanh.f32 %v8418_v45 }
0x17e2   :  { %5994 = vtanh.f32 %v3692_v13 }
0x17e3   :  { %5996 = vtanh.f32 %v3694_v9 }
0x17e4   :  { %5998 = vpow2.f32 %v5002_v5 }
0x17e5   :  { %6000 = vtanh.f32 %v8389_v46 }
0x17e6   :  { %6002 = vpow2.f32 %v5004_v31  ;;  %v5005_v31 = vmul.f32 -1.442695, %v8398_v54 }
0x17e7   :  { %6004 = vtanh.f32 %v8398_v54 }
0x17ee   :  { %v5993_v19 = vpop.eup %5992 }
0x17ef   :  { %4139 = vrot.lane.b32.xlu0 %v5993_v19, %s6080_s29  ;;  %v5995_v37 = vpop.eup %5994 }
0x17f0   :  { %v5997_v29 = vpop.eup %5996 }
0x17f3   :  { %3533 = vrot.lane.b32.xlu0 %v8124_v36, %s6083_s18 }
0x17f7   :  { %3778 = vrot.lane.b32.xlu0 %v5995_v37, %s6080_s29 }
0x17fb   :  { %3537 = vrot.lane.b32.xlu0 %v8137_v33, %s6083_s18  ;;  %v5999_v33 = vpop.eup %5998 }
0x17fc   :  { %v3716_v9 = vadd.f32 1.0, %v5999_v33  ;;  %v6001_v56 = vpop.eup %6000 }
0x17fe   :  { %6006 = vrcp.f32 %v3716_v9 }
0x17ff   :  { %3782 = vrot.lane.b32.xlu0 %v5997_v29, %s6080_s29  ;;  %v5003_v29 = vmul.f32 -1.442695, %v8389_v46 }
0x1861   :  { %v4140_v42 = vpop.permute.xlu0 %4139 }
0x1862   :  { %v4142_v58 = vmul.f32 %v5991_v10, %v4140_v42  ;;  %v6003_v10 = vpop.eup %6002 }
0x1863   :  { %v3718_v57 = vadd.f32 1.0, %v6003_v10  ;;  %v6005_v0 = vpop.eup %6004 }
0x1864   :  { %v8435_v36 = vsel %vm4148_vm13, %v4142_v58, 0.0  ;;  %v8451_v55 = vpop.eup %6006  ;;  %v4025_v58 = vadd.f32 %v8395_v43, %v8404_v1 }
0x1865   :  { %4152 = vrot.lane.b32.xlu1 %v8435_v36, %s6081_s3  ;;  %v3534_v23 = vpop.permute.xlu0 %3533  ;;  %6008 = vrcp.f32 %v3718_v57 }
0x1866   :  { %6010 = vpow2.f32 %v5003_v29 }
0x1867   :  { %6012 = vpow2.f32 %v5005_v31 }
0x1869   :  { %3535 = vrot.lane.b32.xlu1 %v8128_v51, %s6083_s18  ;;  %v3779_v34 = vpop.permute.xlu0 %3778  ;;  %v3549_v51 = vsel %vm9109_vm12, %v3534_v23, %v8069_v47 }
0x186a   :  { %v3794_v39 = vmul.f32 %v8451_v55, %v3779_v34 }
0x186d   :  { %3780 = vrot.lane.b32.xlu1 %v6001_v56, %s6080_s29  ;;  %v3538_v20 = vpop.permute.xlu0 %3537 }
0x1871   :  { %3539 = vrot.lane.b32.xlu1 %v8139_v21, %s6083_s18  ;;  %v3551_v21 = vsel %vm3485_vm0, %v3538_v20, %v8094_v17  ;;  %v3783_v24 = vpop.permute.xlu0 %3782 }
0x1872   :  { %v8460_v13 = vpop.eup %6008 }
0x1873   :  { %v3796_v47 = vmul.f32 %v8460_v13, %v3783_v24  ;;  %v6011_v56 = vpop.eup %6010 }
0x1874   :  { %v3717_v57 = vadd.f32 1.0, %v6011_v56  ;;  %v6013_v34 = vpop.eup %6012 }
0x1875   :  { %3784 = vrot.lane.b32.xlu1 %v6005_v0, %s6080_s29  ;;  %v3719_v46 = vadd.f32 1.0, %v6013_v34 }
0x1879   :  { %3748 = vrot.lane.b32.xlu1 %v3549_v51, %s6081_s3 }
0x187d   :  { %3808 = vrot.lane.b32.xlu1 %v3794_v39, %s6081_s3 }
0x1881   :  { %3752 = vrot.lane.b32.xlu1 %v3551_v21, %s6081_s3 }
0x1885   :  { %3812 = vrot.lane.b32.xlu1 %v3796_v47, %s6081_s3 }
0x18d7   :  { %v4153_v19 = vpop.permute.xlu1 %4152 }
0x18d8   :  { %5572 = vmatmul.mubr.msk.f32.vlgmr.msra.gmra.mxu1 %vm891_vm3, %v4153_v19 }
0x18d9   :  { %5586 = vmatpush3.msra.mxu1 %v8166_v32  ;;  %5593 = vmatprep.mubr.msk.f32.mxu1 %vm6092_vm8, %v9069_v14 }
0x18da   :  { %5587 = vmatprep.subr.mxu1 %v9069_v14 }
0x18db   :  { %5588 = vmatpush3.msra.mxu1 %v8179_v63  ;;  %v3536_v17 = vpop.permute.xlu1 %3535 }
0x18dc   :  { %5589 = vmatprep.subr.mxu1 %v9069_v14  ;;  %v3550_v43 = vsel %vm9110_vm6, %v3536_v17, %v8060_v12  ;;  %vm9116_vm6 = vcmp.gt.s32.totalorder %v6863_v59, %v7553_v15 }
0x18dd   :  { %5590 = vmatpush3.msra.mxu1 %v8186_v41 }
0x18de   :  { %5591 = vmatprep.subr.mxu1 %v9069_v14 }
0x18df   :  { %5592 = vmatpush3.msra.mxu1 %v8192_v53  ;;  %v3781_v37 = vpop.permute.xlu1 %3780 }
0x18e0   :  { %5607 = vmatprep.subr.mxu1 %v9069_v14 }
0x18e3   :  { %v3540_v5 = vpop.permute.xlu1 %3539 }
0x18e4   :  { %v3552_v31 = vsel %vm3486_vm5, %v3540_v5, %v8103_v49  ;;  %v874_v49 = vld [vmem:[%s8963_s2 + $0x10] sm:$0xff]  ;;  %v876_v5 = vld [vmem:[%s8963_s2 + $0x20] sm:$0xff] }
0x18e7   :  { %v3785_v42 = vpop.permute.xlu1 %3784 }
0x18eb   :  { %v3749_v10 = vpop.permute.xlu1 %3748 }
0x18ec   :  { %v3764_v54 = vmul.f32 %v8451_v55, %v3749_v10 }
0x18ef   :  { %v3809_v0 = vpop.permute.xlu1 %3808 }
0x18f0   :  { %v3824_v39 = vadd.f32 %v3809_v0, %v3764_v54 }
0x18f3   :  { %v3753_v51 = vpop.permute.xlu1 %3752 }
0x18f4   :  { %v3766_v24 = vmul.f32 %v8460_v13, %v3753_v51 }
0x18f7   :  { %v3813_v21 = vpop.permute.xlu1 %3812 }
0x18f8   :  { %v3826_v29 = vadd.f32 %v3813_v21, %v3766_v24 }
0x1998   :  { %v4222_v33 = vpop.f32.mrf.mxu1 }
0x1999   :  { %v4226_v9 = vadd.f32 %v4222_v33, %v4025_v58  ;;  %v4252_v33 = vsel %vm4251_vm14, 1, %v9098_v7 }
0x199a   :  { %v5573_v23 = vpop.f32.mrf.mxu1 }
0x199b   :  { %6014 = vtanh.f32 %v4226_v9 }
0x199c   :  { %6016 = vrcp.f32 %v3717_v57 }
0x199d   :  { %6018 = vrcp.f32 %v3719_v46 }
0x199e   :  { %6020 = vtanh.f32 %v3824_v39 }
0x199f   :  { %6022 = vtanh.f32 %v3826_v29 }
0x19a8   :  { %v6015_v20 = vpop.eup %6014 }
0x19a9   :  { %4236 = vrot.lane.b32.xlu0 %v6015_v20, %s6080_s29  ;;  %v8487_v47 = vpop.eup %6016 }
0x19aa   :  { %v3795_v19 = vmul.f32 %v8487_v47, %v3781_v37  ;;  %v8496_v12 = vpop.eup %6018 }
0x19ab   :  { %v3797_v17 = vmul.f32 %v8496_v12, %v3785_v42  ;;  %v6021_v58 = vpop.eup %6020  ;;  %v5015_v42 = vmul.f32 -1.442695, %v4226_v9 }
0x19ac   :  { %v6023_v37 = vpop.eup %6022 }
0x19ad   :  { %3750 = vrot.lane.b32.xlu0 %v3550_v43, %s6081_s3  ;;  %6024 = vpow2.f32 %v5015_v42  ;;  %v8536_v42 = vsel %vm4148_vm13, %v8418_v45, 0.0  ;;  %vm9115_vm13 = vcmp.gt.s32.totalorder %v6863_v59, %v7339_v18 }
0x19b1   :  { %3810 = vrot.lane.b32.xlu0 %v3795_v19, %s6081_s3 }
0x19b5   :  { %3754 = vrot.lane.b32.xlu0 %v3552_v31, %s6081_s3 }
0x19b9   :  { %3814 = vrot.lane.b32.xlu0 %v3797_v17, %s6081_s3 }
0x19ba   :  { %v6025_v56 = vpop.eup %6024 }
0x19bb   :  { %v4230_v10 = vadd.f32 1.0, %v6025_v56 }
0x19bd   :  { %3844 = vrot.lane.b32.xlu0 %v6021_v58, %s6080_s29  ;;  %6026 = vrcp.f32 %v4230_v10 }
0x19c1   :  { %3848 = vrot.lane.b32.xlu0 %v6023_v37, %s6080_s29 }
0x19c5   :  { %4254 = vperm.xlu0 %5632, %v4252_v33   ;;  %v9111_v33 = vld [vmem:[#allocation30_spill] sm:$0xff] }
0x19c9   :  { %1172 = vperm.xlu0 %5632, %v874_v49  }
0x19ca   :  { %v8510_v23 = vpop.eup %6026 }
0x19cb   :  { %v4234_v56 = vmul.f32 %v8510_v23, %v8536_v42 }
0x19cd   :  { %1178 = vperm.xlu0 %5632, %v876_v5  }
0x1a1b   :  { %v4237_v57 = vpop.permute.xlu0 %4236 }
0x1a1c   :  { %v4239_v0 = vmul.f32 %v8510_v23, %v4237_v57 }
0x1a1e   :  { %4241 = vrot.lane.b32.xlu1 %v4239_v0, %s6081_s3 }
0x1a1f   :  { %v3751_v34 = vpop.permute.xlu0 %3750 }
0x1a20   :  { %v3765_v46 = vmul.f32 %v8487_v47, %v3751_v34 }
0x1a23   :  { %v3811_v51 = vpop.permute.xlu0 %3810 }
0x1a24   :  { %v3825_v20 = vadd.f32 %v3811_v51, %v3765_v46 }
0x1a26   :  { %6028 = vtanh.f32 %v3825_v20 }
0x1a27   :  { %v3755_v54 = vpop.permute.xlu0 %3754 }
0x1a28   :  { %v3767_v9 = vmul.f32 %v8496_v12, %v3755_v54 }
0x1a2b   :  { %v3815_v39 = vpop.permute.xlu0 %3814 }
0x1a2c   :  { %v3827_v43 = vadd.f32 %v3815_v39, %v3767_v9 }
0x1a2e   :  { %6030 = vtanh.f32 %v3827_v43 }
0x1a2f   :  { %v3845_v21 = vpop.permute.xlu0 %3844 }
0x1a30   :  { %v3860_v24 = vmul.f32 %v8451_v55, %v3845_v21 }
0x1a32   :  { %3893 = vrot.lane.b32.xlu0 %v3860_v24, %s6081_s3 }
0x1a33   :  { %v6029_v19 = vpop.eup %6028  ;;  %v3849_v29 = vpop.permute.xlu0 %3848 }
0x1a34   :  { %v3862_v31 = vmul.f32 %v8460_v13, %v3849_v29  ;;  %3846 = vrot.lane.b32.xlu1 %v6029_v19, %s6080_s29 }
0x1a36   :  { %3897 = vrot.lane.b32.xlu0 %v3862_v31, %s6081_s3 }
0x1a3b   :  { %v6031_v17 = vpop.eup %6030 }
0x1a3c   :  { %3850 = vrot.lane.b32.xlu1 %v6031_v17, %s6080_s29 }
0x1a40   :  { %v8522_v58 = vpop.permute.xlu0 %4254 }
0x1a44   :  { %v1173_v37 = vpop.permute.xlu0 %1172 }
0x1a45   :  { %vm1185_vm15 = vcmp.gt.s32.totalorder %v1173_v37, %v9091_v35  ;;  %vm1569_vm9 = vcmp.gt.s32.totalorder %v1173_v37, %v6895_v27  ;;  %vm1953_vm4 = vcmp.gt.s32.totalorder %v1173_v37, %v7124_v22  ;;  %vm2337_vm10 = vcmp.gt.s32.totalorder %v1173_v37, %v7339_v18 }
0x1a46   :  { %v1251_v55 = vsel %vm1185_vm15, 0.0, %v6091_v40  ;;  %v1635_v5 = vsel %vm1569_vm9, 0.0, %v6091_v40  ;;  %v2019_v34 = vsel %vm1953_vm4, 0.0, %v6091_v40  ;;  %v2403_v51 = vsel %vm2337_vm10, 0.0, %v6091_v40 }
0x1a47   :  { %v1257_v49 = vsel %vm9112_vm2, %v9111_v33, %v1251_v55  ;;  %v1641_v10 = vsel %vm9113_vm1, %v7096_v61, %v1635_v5  ;;  %v2025_v45 = vsel %vm9114_vm7, %v7311_v52, %v2019_v34  ;;  %vm2721_vm11 = vcmp.gt.s32.totalorder %v1173_v37, %v7553_v15 }
0x1a48   :  { %v1263_v13 = vmax.f32 %v1257_v49, -1e+30  ;;  %v2409_v61 = vsel %vm9115_vm13, %v7525_v62, %v2403_v51  ;;  %v2787_v54 = vsel %vm2721_vm11, 0.0, %v6091_v40  ;;  %vm3105_vm12 = vcmp.gt.s32.totalorder %v1173_v37, %v7773_v28  ;;  %v8571_v21 = vpop.permute.xlu0 %1178 }
0x1a49   :  { %v2793_v52 = vsel %vm9116_vm6, %v7745_v30, %v2787_v54  ;;  %v3171_v39 = vsel %vm3105_vm12, 0.0, %v6091_v40  ;;  %vm3489_vm14 = vcmp.gt.s32.totalorder %v1173_v37, %v7980_v6  ;;  %vm9117_vm15 = vcmp.gt.s32.totalorder %v6863_v59, %v7773_v28  ;;  %v875_v30 = vld [vmem:[%s8963_s2 + $0x18] sm:$0xff] }
0x1a4a   :  { %v1647_v0 = vmax.f32 %v1263_v13, %v1641_v10  ;;  %v3177_v62 = vsel %vm9117_vm15, %v7952_v8, %v3171_v39  ;;  %v3555_v19 = vsel %vm3489_vm14, 0.0, %v6091_v40  ;;  %vm3873_vm2 = vcmp.gt.s32.totalorder %v1173_v37, %v8313_v4  ;;  %v877_v37 = vld [vmem:[%s8963_s2 + $0x28] sm:$0xff] }
0x1a4b   :  { %vm9118_vm9 = vcmp.gt.s32.totalorder %v6863_v59, %v7980_v6  ;;  %vm3867_vm4 = vcmp.gt.s32.totalorder %v6863_v59, %v8313_v4  ;;  %v3879_v31 = vsel %vm3873_vm2, 0.0, %v6091_v40  ;;  %vm1187_vm1 = vcmp.gt.s32.totalorder %v8571_v21, %v9091_v35 }
0x1a4c   :  { %v2031_v44 = vmax.f32 %v1647_v0, %v2025_v45  ;;  %v3561_v29 = vsel %vm9118_vm9, %v8212_v48, %v3555_v19  ;;  %v1253_v5 = vsel %vm1187_vm1, 0.0, %v6091_v40  ;;  %vm9120_vm10 = vcmp.gt.s32.totalorder %v6867_v25, %v9091_v35 }
0x1a4d   :  { %vm1571_vm7 = vcmp.gt.s32.totalorder %v8571_v21, %v6895_v27  ;;  %vm4256_vm11 = vcmp.eq.s32.totalorder %v8522_v58, 1  ;;  %vm1955_vm13 = vcmp.gt.s32.totalorder %v8571_v21, %v7124_v22  ;;  %vm9121_vm12 = vcmp.gt.s32.totalorder %v6867_v25, %v6895_v27 }
0x1a4e   :  { %v2415_v20 = vmax.f32 %v2031_v44, %v2409_v61  ;;  %v1637_v0 = vsel %vm1571_vm7, 0.0, %v6091_v40  ;;  %v2021_v44 = vsel %vm1955_vm13, 0.0, %v6091_v40  ;;  %vm2339_vm6 = vcmp.gt.s32.totalorder %v8571_v21, %v7339_v18 }
0x1a4f   :  { %vm9122_vm14 = vcmp.gt.s32.totalorder %v6867_v25, %v7124_v22  ;;  %v2405_v61 = vsel %vm2339_vm6, 0.0, %v6091_v40  ;;  %vm2723_vm15 = vcmp.gt.s32.totalorder %v8571_v21, %v7553_v15  ;;  %vm3107_vm2 = vcmp.gt.s32.totalorder %v8571_v21, %v7773_v28 }
0x1a50   :  { %v2799_v9 = vmax.f32 %v2415_v20, %v2793_v52  ;;  %v2027_v51 = vsel %vm9122_vm14, %v7367_v26, %v2021_v44  ;;  %v9123_v20 = vld [vmem:[#allocation40_spill] sm:$0xff]  ;;  %vm9124_vm9 = vcmp.gt.s32.totalorder %v6867_v25, %v7339_v18  ;;  %v2789_v52 = vsel %vm2723_vm15, 0.0, %v6091_v40  ;;  %v9137_v44 = vld [vmem:[#allocation33_spill] sm:$0xff] }
0x1a51   :  { %v2411_v54 = vsel %vm9124_vm9, %v9123_v20, %v2405_v61  ;;  %vm9128_vm6 = vcmp.gt.s32.totalorder %v6861_v11, %v9091_v35  ;;  %vm9130_vm14 = vcmp.gt.s32.totalorder %v6867_v25, %v7773_v28  ;;  %vm3875_vm15 = vcmp.gt.s32.totalorder %v8571_v21, %v8313_v4 }
0x1a52   :  { %v3183_v24 = vmax.f32 %v2799_v9, %v3177_v62  ;;  %v3173_v9 = vsel %vm3107_vm2, 0.0, %v6091_v40  ;;  %vm9132_vm9 = vcmp.gt.s32.totalorder %v6861_v11, %v6895_v27 }
0x1a54   :  { %v3567_v8 = vmax.f32 %v3183_v24, %v3561_v29  ;;  %v9125_v24 = vld [vmem:[#allocation42_spill] sm:$0xff] }
0x1a90   :  { %v4242_v57 = vpop.permute.xlu1 %4241 }
0x1a91   :  { %v8545_v46 = vadd.f32 %v4242_v57, %v4234_v56  ;;  %v9119_v56 = vld [vmem:[#allocation34_spill] sm:$0xff] }
0x1a92   :  { %v1259_v10 = vsel %vm9120_vm10, %v9119_v56, %v1253_v5  ;;  %v9133_v56 = vld [vmem:[#allocation37_spill] sm:$0xff] }
0x1a93   :  { %6032 = vtanh.f32 %v8545_v46 }
0x1aa0   :  { %v6033_v43 = vpop.eup %6032 }
0x1aa1   :  { %4247 = vrot.lane.b32.xlu1 %v6033_v43, %s6080_s29 }
0x1aa4   :  { %v3894_v17 = vpop.permute.xlu0 %3893 }
0x1aa5   :  { %v3909_v55 = vsel %vm3867_vm4, %v3894_v17, %v3879_v31  ;;  %1175 = vperm.xlu1 %5633, %v875_v30   ;;  %vm3491_vm4 = vcmp.gt.s32.totalorder %v8571_v21, %v7980_v6  ;;  %v9127_v30 = vld [vmem:[#allocation29_spill] sm:$0xff]  ;;  %v9129_v31 = vld [vmem:[#allocation11_spill] sm:$0xff] }
0x1aa6   :  { %v3915_v33 = vmax.f32 %v3567_v8, %v3909_v55  ;;  %v3847_v49 = vpop.permute.xlu1 %3846  ;;  %v3179_v17 = vsel %vm9130_vm14, %v9129_v31, %v3173_v9  ;;  %v3557_v55 = vsel %vm3491_vm4, 0.0, %v6091_v40  ;;  %vm9134_vm4 = vcmp.gt.s32.totalorder %v6861_v11, %v7124_v22  ;;  %v9139_v9 = vld [vmem:[#allocation36_spill] sm:$0xff] }
0x1aa7   :  { %v3861_v48 = vmul.f32 %v8487_v47, %v3847_v49  ;;  %vm3868_vm14 = vcmp.gt.s32.totalorder %v6861_v11, %v8313_v4 }
0x1aa8   :  { %5546 = vmatprep.mubr.msk.f32.mxu0 %vm891_vm3, %v3915_v33  ;;  %v3898_v31 = vpop.permute.xlu0 %3897 }
0x1aa9   :  { %1181 = vperm.xlu1 %5633, %v877_v37  }
0x1aad   :  { %3895 = vrot.lane.b32.xlu1 %v3861_v48, %s6081_s3  ;;  %v9131_v48 = vld [vmem:[#allocation35_spill] sm:$0xff] }
0x1aae   :  { %v3851_v13 = vpop.permute.xlu1 %3850 }
0x1aaf   :  { %v3863_v59 = vmul.f32 %v8496_v12, %v3851_v13  ;;  %v1265_v12 = vmax.f32 %v1259_v10, -1e+30 }
0x1ab1   :  { %3899 = vrot.lane.b32.xlu1 %v3863_v59, %s6081_s3 }
0x1b13   :  { %v4248_v47 = vpop.permute.xlu1 %4247 }
0x1b14   :  { %v8604_v57 = vmul.f32 %v8510_v23, %v4248_v47  ;;  %v1643_v23 = vsel %vm9121_vm12, %v7152_v50, %v1637_v0  ;;  %vm9126_vm12 = vcmp.gt.s32.totalorder %v6867_v25, %v7553_v15  ;;  %v9135_v47 = vld [vmem:[#allocation39_spill] sm:$0xff] }
0x1b15   :  { %v1649_v45 = vmax.f32 %v1265_v12, %v1643_v23  ;;  %v2795_v19 = vsel %vm9126_vm12, %v9125_v24, %v2789_v52 }
0x1b16   :  { %v8612_v34 = vsel %vm4256_vm11, %v8604_v57, %v8435_v36 }
0x1b17   :  { %4261 = vrot.lane.b32.xlu0 %v8612_v34, %s6081_s3  ;;  %v2033_v50 = vmax.f32 %v1649_v45, %v2027_v51 }
0x1b19   :  { %v2417_v39 = vmax.f32 %v2033_v50, %v2411_v54 }
0x1b1b   :  { %v2801_v59 = vmax.f32 %v2417_v39, %v2795_v19 }
0x1b20   :  { %v8642_v26 = vpop.permute.xlu1 %1175 }
0x1b21   :  { %vm1186_vm1 = vcmp.gt.s32.totalorder %v8642_v26, %v9091_v35  ;;  %vm1570_vm10 = vcmp.gt.s32.totalorder %v8642_v26, %v6895_v27  ;;  %vm1954_vm7 = vcmp.gt.s32.totalorder %v8642_v26, %v7124_v22  ;;  %vm2338_vm13 = vcmp.gt.s32.totalorder %v8642_v26, %v7339_v18 }
0x1b22   :  { %v1252_v62 = vsel %vm1186_vm1, 0.0, %v6091_v40  ;;  %v1636_v43 = vsel %vm1570_vm10, 0.0, %v6091_v40  ;;  %v2020_v8 = vsel %vm1954_vm7, 0.0, %v6091_v40  ;;  %v2404_v49 = vsel %vm2338_vm13, 0.0, %v6091_v40 }
0x1b23   :  { %v1258_v29 = vsel %vm9128_vm6, %v9127_v30, %v1252_v62  ;;  %v1642_v13 = vsel %vm9132_vm9, %v9131_v48, %v1636_v43  ;;  %vm2722_vm1 = vcmp.gt.s32.totalorder %v8642_v26, %v7553_v15  ;;  %v2026_v10 = vsel %vm9134_vm4, %v9133_v56, %v2020_v8  ;;  %v9141_v62 = vld [vmem:[#allocation9_spill] sm:$0xff] }
0x1b24   :  { %v8668_v33 = vpop.permute.xlu1 %1181  ;;  %v1264_v37 = vmax.f32 %v1258_v29, -1e+30  ;;  %vm3106_vm10 = vcmp.gt.s32.totalorder %v8642_v26, %v7773_v28  ;;  %vm3869_vm7 = vcmp.gt.s32.totalorder %v6867_v25, %v8313_v4  ;;  %vm9136_vm13 = vcmp.gt.s32.totalorder %v6861_v11, %v7339_v18 }
0x1b25   :  { %vm1188_vm2 = vcmp.gt.s32.totalorder %v8668_v33, %v9091_v35  ;;  %v2410_v12 = vsel %vm9136_vm13, %v9135_v47, %v2404_v49  ;;  %vm1572_vm12 = vcmp.gt.s32.totalorder %v8668_v33, %v6895_v27  ;;  %vm1956_vm6 = vcmp.gt.s32.totalorder %v8668_v33, %v7124_v22 }
0x1b26   :  { %v1648_v5 = vmax.f32 %v1264_v37, %v1642_v13  ;;  %v1254_v0 = vsel %vm1188_vm2, 0.0, %v6091_v40  ;;  %v2788_v45 = vsel %vm2722_vm1, 0.0, %v6091_v40  ;;  %vm9138_vm9 = vcmp.gt.s32.totalorder %v6865_v60, %v9091_v35 }
0x1b27   :  { %v1260_v51 = vsel %vm9138_vm9, %v9137_v44, %v1254_v0  ;;  %v1638_v61 = vsel %vm1572_vm12, 0.0, %v6091_v40  ;;  %v3172_v50 = vsel %vm3106_vm10, 0.0, %v6091_v40  ;;  %vm3490_vm2 = vcmp.gt.s32.totalorder %v8642_v26, %v7980_v6  ;;  %v9150_v0 = vld [vmem:[#allocation43_spill] sm:$0xff] }
0x1b28   :  { %v2032_v23 = vmax.f32 %v1648_v5, %v2026_v10  ;;  %v1266_v20 = vmax.f32 %v1260_v51, -1e+30  ;;  %v2022_v54 = vsel %vm1956_vm6, 0.0, %v6091_v40  ;;  %vm9140_vm1 = vcmp.gt.s32.totalorder %v6865_v60, %v6895_v27  ;;  %v9143_v27 = vld [vmem:[#allocation38_spill] sm:$0xff]  ;;  %v3896_v49 = vpop.permute.xlu1 %3895  ;;  %v9147_v5 = vld [vmem:[#allocation41_spill] sm:$0xff] }
0x1b29   :  { %v1644_v39 = vsel %vm9140_vm1, %v9139_v9, %v1638_v61  ;;  %vm2340_vm4 = vcmp.gt.s32.totalorder %v8668_v33, %v7339_v18  ;;  %vm2724_vm13 = vcmp.gt.s32.totalorder %v8668_v33, %v7553_v15  ;;  %v3185_v35 = vmax.f32 %v2801_v59, %v3179_v17  ;;  %v9145_v17 = vld [vmem:[#allocation10_spill] sm:$0xff] }
0x1b2a   :  { %v2416_v52 = vmax.f32 %v2032_v23, %v2410_v12  ;;  %vm9142_vm10 = vcmp.gt.s32.totalorder %v6861_v11, %v7553_v15  ;;  %v1650_v24 = vmax.f32 %v1266_v20, %v1644_v39  ;;  %v2406_v19 = vsel %vm2340_vm4, 0.0, %v6091_v40  ;;  %v9152_v61 = vld [vmem:[#allocation14_spill] sm:$0xff] }
0x1b2b   :  { %v2794_v43 = vsel %vm9142_vm10, %v9141_v62, %v2788_v45  ;;  %v3556_v29 = vsel %vm3490_vm2, 0.0, %v6091_v40  ;;  %vm9144_vm12 = vcmp.gt.s32.totalorder %v6865_v60, %v7124_v22  ;;  %vm3108_vm6 = vcmp.gt.s32.totalorder %v8668_v33, %v7773_v28 }
0x1b2c   :  { %v2800_v30 = vmax.f32 %v2416_v52, %v2794_v43  ;;  %v2028_v8 = vsel %vm9144_vm12, %v9143_v27, %v2022_v54  ;;  %vm9146_vm9 = vcmp.gt.s32.totalorder %v6861_v11, %v7773_v28  ;;  %vm3874_vm1 = vcmp.gt.s32.totalorder %v8642_v26, %v8313_v4  ;;  %v3900_v20 = vpop.permute.xlu1 %3899 }
0x1b2d   :  { %v3178_v37 = vsel %vm9146_vm9, %v9145_v17, %v3172_v50  ;;  %v2034_v48 = vmax.f32 %v1650_v24, %v2028_v8  ;;  %v2790_v13 = vsel %vm2724_vm13, 0.0, %v6091_v40  ;;  %v3563_v22 = vsel %vm3485_vm0, %v8346_v16, %v3557_v55 }
0x1b2e   :  { %v3184_v59 = vmax.f32 %v2800_v30, %v3178_v37  ;;  %vm9148_vm2 = vcmp.gt.s32.totalorder %v6865_v60, %v7339_v18  ;;  %vm3492_vm4 = vcmp.gt.s32.totalorder %v8668_v33, %v7980_v6  ;;  %v3881_v26 = vsel %vm3875_vm15, 0.0, %v6091_v40 }
0x1b2f   :  { %v2412_v56 = vsel %vm9148_vm2, %v9147_v5, %v2406_v19  ;;  %vm9149_vm13 = vcmp.gt.s32.totalorder %v6861_v11, %v7980_v6  ;;  %v3174_v55 = vsel %vm3108_vm6, 0.0, %v6091_v40  ;;  %v3911_v18 = vsel %vm3869_vm7, %v3898_v31, %v3881_v26 }
0x1b30   :  { %v3562_v10 = vsel %vm9149_vm13, %v8222_v3, %v3556_v29  ;;  %v2418_v16 = vmax.f32 %v2034_v48, %v2412_v56  ;;  %v3880_v12 = vsel %vm3874_vm1, 0.0, %v6091_v40  ;;  %vm9151_vm0 = vcmp.gt.s32.totalorder %v6865_v60, %v7553_v15 }
0x1b31   :  { %v3568_v47 = vmax.f32 %v3184_v59, %v3562_v10  ;;  %v2796_v21 = vsel %vm9151_vm0, %v9150_v0, %v2790_v13  ;;  %v3569_v23 = vmax.f32 %v3185_v35, %v3563_v22  ;;  %v3910_v3 = vsel %vm3868_vm14, %v3896_v49, %v3880_v12  ;;  %v6076_v22 = vld [vmem:[%s8965_s10 + $0x10] sm:$0xff]  ;;  %v6078_v59 = vld [vmem:[%s8965_s10] sm:$0xff] }
0x1b32   :  { %v2802_v45 = vmax.f32 %v2418_v16, %v2796_v21  ;;  %v3558_v44 = vsel %vm3492_vm4, 0.0, %v6091_v40  ;;  %vm9153_vm15 = vcmp.gt.s32.totalorder %v6865_v60, %v7773_v28  ;;  %vm3876_vm7 = vcmp.gt.s32.totalorder %v8668_v33, %v8313_v4 }
0x1b33   :  { %v3916_v51 = vmax.f32 %v3568_v47, %v3910_v3  ;;  %v3180_v25 = vsel %vm9153_vm15, %v9152_v61, %v3174_v55  ;;  %v3917_v50 = vmax.f32 %v3569_v23, %v3911_v18  ;;  %v3564_v11 = vsel %vm3486_vm5, %v8355_v2, %v3558_v44 }
0x1b34   :  { %v3186_v15 = vmax.f32 %v2802_v45, %v3180_v25  ;;  %vm3870_vm14 = vcmp.gt.s32.totalorder %v6865_v60, %v8313_v4  ;;  %v3882_v28 = vsel %vm3876_vm7, 0.0, %v6091_v40  ;;  %vm4360_vm5 = vcmp.gt.s32.totalorder %v8410_v38, 2 }
0x1b35   :  { %5547 = vmatmul.mubr.msk.f32.gmra.mxu0 %vm891_vm3, %v3916_v51  ;;  %v3912_v52 = vsel %vm3870_vm14, %v3900_v20, %v3882_v28  ;;  %v4258_v29 = vsel %vm4256_vm11, %v8545_v46, %v8536_v42  ;;  %v6075_v46 = vld [vmem:[%s8965_s10 + $0x18] sm:$0xff]  ;;  %vm4578_vm6 = vcmp.gt.s32.totalorder %v8410_v38, 4  ;;  %vm4687_vm1 = vcmp.gt.s32.totalorder %v8410_v38, 5 }
0x1b36   :  { %v3570_v54 = vmax.f32 %v3186_v15, %v3564_v11  ;;  %5549 = vmatprep.mubr.msk.f32.mxu0 %vm891_vm3, %v3917_v50  ;;  %vm4770_vm2 = vcmask 31744   ;;  %vm4808_vm4 = vcmask 7168  }
0x1b38   :  { %v3918_v33 = vmax.f32 %v3570_v54, %v3912_v52 }
0x1b3a   :  { %5550 = vmatmul.mubr.msk.f32.gmra.mxu0 %vm891_vm3, %v3918_v33 }
0x1b3b   :  { %5582 = vmatprep.mubr.msk.f32.mxu0 %vm6092_vm8, %v9069_v14 }
0x1b89   :  { %v4262_v9 = vpop.permute.xlu0 %4261 }
0x1b8a   :  { %5583 = vmatmul.mubr.msk.f32.vlgmr.msra.gmra.mxu0 %vm891_vm3, %v4262_v9  ;;  %v4579_v9 = vsel %vm4578_vm6, 1, %v9098_v7 }
0x1b8b   :  { %5597 = vmatpush3.msra.mxu0 %v8166_v32  ;;  %5604 = vmatprep.mubr.msk.f32.mxu0 %vm6092_vm8, %v9069_v14 }
0x1b8c   :  { %5598 = vmatprep.subr.mxu0 %v9069_v14 }
0x1b8d   :  { %5599 = vmatpush3.msra.mxu0 %v8179_v63 }
0x1b8e   :  { %5600 = vmatprep.subr.mxu0 %v9069_v14 }
0x1b8f   :  { %5601 = vmatpush3.msra.mxu0 %v8186_v41  ;;  %v4361_v41 = vsel %vm4360_vm5, 1, %v9098_v7 }
0x1b90   :  { %5602 = vmatprep.subr.mxu0 %v9069_v14 }
0x1b91   :  { %5603 = vmatpush3.msra.mxu0 %v8192_v53 }
0x1bf5   :  { %v5548_v60 = vpop.f32.mrf.mxu0 }
0x1bf6   :  { %v4035_v5 = vadd.f32 %v5548_v60, %v8404_v1 }
0x1bf7   :  { %v4029_v6 = vpop.f32.mrf.mxu0 }
0x1bf8   :  { %v4030_v4 = vadd.f32 %v8404_v1, %v4029_v6 }
0x1bfa   :  { %v8796_v40 = vpop.f32.mrf.mxu0 }
0x1bfc   :  { %v8798_v32 = vpop.f32.mrf.mxu0 }
0x1bfd   :  { %v4040_v11 = vadd.f32 %v8404_v1, %v8798_v32 }
0x1c4a   :  { %v4331_v2 = vpop.f32.mrf.mxu0 }
0x1c4b   :  { %v4335_v39 = vadd.f32 %v4331_v2, %v4030_v4 }
0x1c4c   :  { %v5584_v35 = vpop.f32.mrf.mxu0 }
0x1c4d   :  { %6034 = vtanh.f32 %v4335_v39  ;;  %v5017_v53 = vmul.f32 -1.442695, %v4335_v39 }
0x1c4f   :  { %6036 = vpow2.f32 %v5017_v53 }
0x1c5a   :  { %v6035_v63 = vpop.eup %6034 }
0x1c5b   :  { %4345 = vrot.lane.b32.xlu1 %v6035_v63, %s6080_s29 }
0x1c5c   :  { %v6037_v62 = vpop.eup %6036 }
0x1c5d   :  { %v4339_v43 = vadd.f32 1.0, %v6037_v62 }
0x1c5f   :  { %4363 = vperm.xlu1 %5633, %v4361_v41   ;;  %6038 = vrcp.f32 %v4339_v43 }
0x1c6c   :  { %v6039_v24 = vpop.eup %6038 }
0x1c6d   :  { %v4343_v27 = vmul.f32 %v6039_v24, %v4258_v29 }
0x1ccd   :  { %v4346_v19 = vpop.permute.xlu1 %4345 }
0x1cce   :  { %v4348_v30 = vmul.f32 %v6039_v24, %v4346_v19 }
0x1cd0   :  { %4350 = vrot.lane.b32.xlu0 %v4348_v30, %s6081_s3 }
0x1cda   :  { %v8810_v37 = vpop.permute.xlu1 %4363 }
0x1cdb   :  { %vm4365_vm10 = vcmp.eq.s32.totalorder %v8810_v37, 1  ;;  %v4752_v37 = vld [vmem:[%s8969_s8 + $0x8] sm:$0xff] }
0x1d42   :  { %v4351_v8 = vpop.permute.xlu0 %4350 }
0x1d43   :  { %v4353_v31 = vadd.f32 %v4351_v8, %v4343_v27  ;;  %v4045_v27 = vadd.f32 %v8796_v40, %v8404_v1 }
0x1d45   :  { %6040 = vtanh.f32 %v4353_v31  ;;  %v4367_v23 = vsel %vm4365_vm10, %v4353_v31, %v4258_v29 }
0x1d52   :  { %v6041_v17 = vpop.eup %6040 }
0x1d53   :  { %4356 = vrot.lane.b32.xlu0 %v6041_v17, %s6080_s29 }
0x1dc5   :  { %v4357_v49 = vpop.permute.xlu0 %4356 }
0x1dc6   :  { %v8812_v48 = vmul.f32 %v6039_v24, %v4357_v49 }
0x1dc8   :  { %v4366_v13 = vsel %vm4365_vm10, %v8812_v48, %v8612_v34  ;;  %v6077_v34 = vld [vmem:[%s8965_s10 + $0x8] sm:$0xff] }
0x1dc9   :  { %4370 = vrot.lane.b32.xlu1 %v4366_v13, %s6081_s3 }
0x1e3b   :  { %v4371_v42 = vpop.permute.xlu1 %4370 }
0x1e3c   :  { %5594 = vmatmul.mubr.msk.f32.vlgmr.msra.gmra.mxu1 %vm891_vm3, %v4371_v42  ;;  %v5024_v42 = vld [vmem:[%s8968_s12] ss:$0 sm:$0xff] }
0x1e3d   :  { %5608 = vmatpush3.msra.mxu1 %v6075_v46  ;;  %5615 = vmatprep.mubr.msk.f32.mxu1 %vm6092_vm8, %v9069_v14  ;;  %vm4469_vm8 = vcmp.gt.s32.totalorder %v8410_v38, 3 }
0x1e3e   :  { %5609 = vmatprep.subr.mxu1 %v9069_v14  ;;  %v4470_v55 = vsel %vm4469_vm8, 1, %v9098_v7 }
0x1e3f   :  { %5610 = vmatpush3.msra.mxu1 %v6076_v22 }
0x1e40   :  { %5611 = vmatprep.subr.mxu1 %v9069_v14 }
0x1e41   :  { %5612 = vmatpush3.msra.mxu1 %v6077_v34 }
0x1e42   :  { %5613 = vmatprep.subr.mxu1 %v9069_v14 }
0x1e43   :  { %5614 = vmatpush3.msra.mxu1 %v6078_v59 }
0x1efc   :  { %v4440_v56 = vpop.f32.mrf.mxu1 }
0x1efd   :  { %v4444_v26 = vadd.f32 %v4440_v56, %v4035_v5 }
0x1efe   :  { %v5595_v10 = vpop.f32.mrf.mxu1 }
0x1eff   :  { %6042 = vtanh.f32 %v4444_v26  ;;  %v5019_v14 = vmul.f32 -1.442695, %v4444_v26 }
0x1f01   :  { %6044 = vpow2.f32 %v5019_v14 }
0x1f0c   :  { %v6043_v16 = vpop.eup %6042 }
0x1f0d   :  { %4454 = vrot.lane.b32.xlu0 %v6043_v16, %s6080_s29 }
0x1f0e   :  { %v6045_v18 = vpop.eup %6044 }
0x1f0f   :  { %v4448_v47 = vadd.f32 1.0, %v6045_v18 }
0x1f11   :  { %4472 = vperm.xlu0 %5632, %v4470_v55   ;;  %6046 = vrcp.f32 %v4448_v47 }
0x1f1e   :  { %v6047_v12 = vpop.eup %6046 }
0x1f1f   :  { %v4452_v3 = vmul.f32 %v6047_v12, %v4367_v23 }
0x1f7f   :  { %v4455_v0 = vpop.permute.xlu0 %4454 }
0x1f80   :  { %v4457_v21 = vmul.f32 %v6047_v12, %v4455_v0 }
0x1f82   :  { %4459 = vrot.lane.b32.xlu1 %v4457_v21, %s6081_s3 }
0x1f8c   :  { %v8846_v61 = vpop.permute.xlu0 %4472 }
0x1f8d   :  { %vm4474_vm12 = vcmp.eq.s32.totalorder %v8846_v61, 1 }
0x1ff4   :  { %v4460_v45 = vpop.permute.xlu1 %4459 }
0x1ff5   :  { %v4462_v44 = vadd.f32 %v4460_v45, %v4452_v3 }
0x1ff7   :  { %6048 = vtanh.f32 %v4462_v44  ;;  %v4476_v35 = vsel %vm4474_vm12, %v4462_v44, %v4367_v23 }
0x2004   :  { %v6049_v51 = vpop.eup %6048 }
0x2005   :  { %4465 = vrot.lane.b32.xlu1 %v6049_v51, %s6080_s29 }
0x2077   :  { %v4466_v25 = vpop.permute.xlu1 %4465 }
0x2078   :  { %v8848_v50 = vmul.f32 %v6047_v12, %v4466_v25 }
0x207a   :  { %v4475_v15 = vsel %vm4474_vm12, %v8848_v50, %v4366_v13  ;;  %v4688_v13 = vsel %vm4687_vm1, 1, %v9098_v7  ;;  %v4259_v7 = vsel %vm4256_vm11, %v8604_v57, 0.0  ;;  %v4477_v26 = vsel %vm4474_vm12, %v8848_v50, 0.0 }
0x207b   :  { %4479 = vrot.lane.b32.xlu0 %v4475_v15, %s6081_s3  ;;  %v4368_v57 = vsel %vm4365_vm10, %v8812_v48, 0.0  ;;  %v5025_v48 = vld [vmem:[%s8970_s13] ss:$0 sm:$0xff] }
0x207c   :  { %v4765_v50 = vmul.f32 %v5025_v48, %v4752_v37 }
0x20ed   :  { %v4480_v20 = vpop.permute.xlu0 %4479 }
0x20ee   :  { %5605 = vmatmul.mubr.msk.f32.vlgmr.msra.gmra.mxu0 %vm891_vm3, %v4480_v20 }
0x21ae   :  { %v4549_v54 = vpop.f32.mrf.mxu0 }
0x21af   :  { %v4553_v28 = vadd.f32 %v4549_v54, %v4040_v11  ;;  %v4774_v11 = vsel %vm4770_vm2, %v4765_v50, 0.0 }
0x21b0   :  { %v5606_v52 = vpop.f32.mrf.mxu0 }
0x21b1   :  { %6050 = vtanh.f32 %v4553_v28  ;;  %v5021_v60 = vmul.f32 -1.442695, %v4553_v28  ;;  %v20_v52 = vstv %s8971_s14 }
0x21b2   :  { %21 = vst [vmem:[#allocation2] sm:$0x1] %v20_v52 }
0x21b3   :  { %6052 = vpow2.f32 %v5021_v60  ;;  %v4751_v60 = vld [vmem:[%s8969_s8] sm:$0xff] }
0x21be   :  { %v6051_v33 = vpop.eup %6050 }
0x21bf   :  { %4563 = vrot.lane.b32.xlu1 %v6051_v33, %s6080_s29 }
0x21c0   :  { %v6053_v6 = vpop.eup %6052 }
0x21c1   :  { %v4557_v4 = vadd.f32 1.0, %v6053_v6 }
0x21c3   :  { %4581 = vperm.xlu1 %5633, %v4579_v9   ;;  %6054 = vrcp.f32 %v4557_v4 }
0x21d0   :  { %v6055_v2 = vpop.eup %6054 }
0x21d1   :  { %v4561_v63 = vmul.f32 %v6055_v2, %v4476_v35 }
0x2231   :  { %v4564_v39 = vpop.permute.xlu1 %4563 }
0x2232   :  { %v4566_v32 = vmul.f32 %v6055_v2, %v4564_v39  ;;  %v4753_v39 = vld [vmem:[%s8969_s8 + $0x10] sm:$0xff] }
0x2234   :  { %4568 = vrot.lane.b32.xlu0 %v4566_v32, %s6081_s3 }
0x223e   :  { %v4582_v43 = vpop.permute.xlu1 %4581 }
0x223f   :  { %vm4583_vm9 = vcmp.eq.s32.totalorder %v4582_v43, 1 }
0x22a6   :  { %v4569_v41 = vpop.permute.xlu0 %4568 }
0x22a7   :  { %v4571_v53 = vadd.f32 %v4569_v41, %v4561_v63  ;;  %v4766_v63 = vmul.f32 %v5025_v48, %v4753_v39  ;;  %v4755_v41 = vld [vmem:[%s8969_s8 + $0x20] sm:$0xff] }
0x22a9   :  { %6056 = vtanh.f32 %v4571_v53  ;;  %v4585_v16 = vsel %vm4583_vm9, %v4571_v53, %v4476_v35  ;;  %v4777_v53 = vsel %vm4770_vm2, %v4766_v63, 0.0 }
0x22b6   :  { %v6057_v62 = vpop.eup %6056 }
0x22b7   :  { %4574 = vrot.lane.b32.xlu0 %v6057_v62, %s6080_s29  ;;  %v4768_v62 = vmul.f32 %v5025_v48, %v4755_v41 }
0x22b9   :  { %v4783_v43 = vsel %vm4770_vm2, %v4768_v62, 0.0 }
0x2329   :  { %v4575_v24 = vpop.permute.xlu0 %4574 }
0x232a   :  { %v4577_v19 = vmul.f32 %v6055_v2, %v4575_v24  ;;  %v4764_v2 = vmul.f32 %v5025_v48, %v4751_v60  ;;  %v4756_v24 = vld [vmem:[%s8969_s8 + $0x28] sm:$0xff] }
0x232c   :  { %v4584_v30 = vsel %vm4583_vm9, %v4577_v19, %v4475_v15  ;;  %v4586_v0 = vsel %vm4583_vm9, %v4577_v19, 0.0  ;;  %v4754_v15 = vld [vmem:[%s8969_s8 + $0x18] sm:$0xff]  ;;  %v4771_v35 = vsel %vm4770_vm2, %v4764_v2, 0.0  ;;  %v4769_v19 = vmul.f32 %v5025_v48, %v4756_v24 }
0x232d   :  { %4588 = vrot.lane.b32.xlu1 %v4584_v30, %s6081_s3  ;;  %v4767_v54 = vmul.f32 %v5025_v48, %v4754_v15 }
0x232f   :  { %v4780_v28 = vsel %vm4770_vm2, %v4767_v54, 0.0 }
0x239f   :  { %v4589_v29 = vpop.permute.xlu1 %4588 }
0x23a0   :  { %5616 = vmatmul.mubr.msk.f32.vlgmr.msra.gmra.mxu1 %vm891_vm3, %v4589_v29 }
0x2460   :  { %v4658_v8 = vpop.f32.mrf.mxu1 }
0x2461   :  { %v4662_v31 = vadd.f32 %v4658_v8, %v4045_v27  ;;  %v4786_v27 = vsel %vm4770_vm2, %v4769_v19, 0.0 }
0x2462   :  { %v5617_v17 = vpop.f32.mrf.mxu1 }
0x2463   :  { %6058 = vtanh.f32 %v4662_v31  ;;  %v5023_v46 = vmul.f32 -1.442695, %v4662_v31 }
0x2465   :  { %6060 = vpow2.f32 %v5023_v46 }
0x2470   :  { %v6059_v49 = vpop.eup %6058 }
0x2471   :  { %4672 = vrot.lane.b32.xlu0 %v6059_v49, %s6080_s29  ;;  %v5026_v49 = vld [vmem:[#allocation2] ss:$0 sm:$0xff] }
0x2472   :  { %v6061_v1 = vpop.eup %6060 }
0x2473   :  { %v4666_v40 = vadd.f32 1.0, %v6061_v1 }
0x2475   :  { %4690 = vperm.xlu0 %5632, %v4688_v13   ;;  %6062 = vrcp.f32 %v4666_v40 }
0x2479   :  { %4700 = vrot.lane.b32.xlu0 %v5024_v42, %s6083_s18 }
0x2482   :  { %v6063_v22 = vpop.eup %6062 }
0x2483   :  { %v4670_v55 = vmul.f32 %v6063_v22, %v4585_v16 }
0x24e3   :  { %v4673_v34 = vpop.permute.xlu0 %4672 }
0x24e4   :  { %v4675_v38 = vmul.f32 %v6063_v22, %v4673_v34 }
0x24e6   :  { %4677 = vrot.lane.b32.xlu1 %v4675_v38, %s6081_s3 }
0x24f0   :  { %v4691_v59 = vpop.permute.xlu0 %4690 }
0x24f1   :  { %vm4692_vm11 = vcmp.eq.s32.totalorder %v4691_v59, 1 }
0x24f4   :  { %v4701_v5 = vpop.permute.xlu0 %4700 }
0x24f5   :  { %v4704_v56 = vmul.f32 %v4701_v5, %v4259_v7  ;;  %v4706_v10 = vmul.f32 %v4701_v5, %v4477_v26  ;;  %v4703_v58 = vmul.f32 %v4701_v5, %v8435_v36  ;;  %v4705_v12 = vmul.f32 %v4701_v5, %v4368_v57 }
0x24f6   :  { %v4707_v21 = vmul.f32 %v4701_v5, %v4586_v0 }
0x24f7   :  { %4717 = vrot.lane.b32.xlu0 %v4704_v56, %s6081_s3 }
0x24fb   :  { %4721 = vrot.lane.b32.xlu0 %v4706_v10, %s6081_s3 }
0x2558   :  { %v4678_v14 = vpop.permute.xlu1 %4677 }
0x2559   :  { %v4680_v18 = vadd.f32 %v4678_v14, %v4670_v55 }
0x255b   :  { %6064 = vtanh.f32 %v4680_v18 }
0x2568   :  { %v6065_v47 = vpop.eup %6064 }
0x2569   :  { %4683 = vrot.lane.b32.xlu1 %v6065_v47, %s6080_s29  ;;  %v4718_v23 = vpop.permute.xlu0 %4717 }
0x256a   :  { %v4736_v9 = vsel %vm891_vm3, %v4718_v23, 0.0 }
0x256d   :  { %4715 = vrot.lane.b32.xlu1 %v4703_v58, %s6081_s3  ;;  %v4722_v25 = vpop.permute.xlu0 %4721 }
0x256e   :  { %v4742_v20 = vsel %vm891_vm3, %v4722_v25, 0.0 }
0x2571   :  { %4719 = vrot.lane.b32.xlu1 %v4705_v12, %s6081_s3 }
0x2575   :  { %4723 = vrot.lane.b32.xlu1 %v4707_v21, %s6081_s3 }
0x25db   :  { %v4684_v3 = vpop.permute.xlu1 %4683 }
0x25dc   :  { %v4686_v45 = vmul.f32 %v6063_v22, %v4684_v3 }
0x25de   :  { %v4693_v44 = vsel %vm4692_vm11, %v4686_v45, 0.0 }
0x25df   :  { %v4708_v36 = vmul.f32 %v4701_v5, %v4693_v44  ;;  %v4716_v51 = vpop.permute.xlu1 %4715 }
0x25e0   :  { %v4733_v61 = vsel %vm891_vm3, %v4716_v51, 0.0 }
0x25e1   :  { %4725 = vrot.lane.b32.xlu0 %v4708_v36, %s6081_s3  ;;  %4734 = vadd.xlane.f32.xlu1 %v4733_v61 }
0x25e3   :  { %v4720_v33 = vpop.permute.xlu1 %4719 }
0x25e4   :  { %v4739_v6 = vsel %vm891_vm3, %v4720_v33, 0.0 }
0x25e5   :  { %4743 = vadd.xlane.f32.xlu1 %v4742_v20 }
0x25e7   :  { %v4724_v4 = vpop.permute.xlu1 %4723 }
0x25e8   :  { %v4745_v32 = vsel %vm891_vm3, %v4724_v4, 0.0 }
0x25e9   :  { %4775 = vadd.xlane.f32.xlu1 %v4774_v11 }
0x25ed   :  { %4781 = vadd.xlane.f32.xlu1 %v4780_v28 }
0x2600   :  { %4737 = vadd.xlane.f32.xlu0 %v4736_v9 }
0x2604   :  { %4740 = vadd.xlane.f32.xlu0 %v4739_v6 }
0x2608   :  { %4746 = vadd.xlane.f32.xlu0 %v4745_v32 }
0x260c   :  { %4772 = vadd.xlane.f32.xlu0 %v4771_v35 }
0x2610   :  { %4778 = vadd.xlane.f32.xlu0 %v4777_v53 }
0x2614   :  { %4784 = vadd.xlane.f32.xlu0 %v4783_v43 }
0x2653   :  { %v4726_v30 = vpop.permute.xlu0 %4725 }
0x2654   :  { %v4748_v29 = vsel %vm891_vm3, %v4726_v30, 0.0 }
0x2655   :  { %4749 = vadd.xlane.f32.xlu1 %v4748_v29 }
0x2659   :  { %4787 = vadd.xlane.f32.xlu1 %v4786_v27 }
0x266a   :  { %v4735_v8 = vpop.xlane.xlu1 %4734 }
0x266e   :  { %v4744_v31 = vpop.xlane.xlu1 %4743 }
0x2672   :  { %v4776_v17 = vpop.xlane.xlu1 %4775 }
0x2676   :  { %v4782_v13 = vpop.xlane.xlu1 %4781 }
0x2677   :  { %v4792_v42 = vadd.f32 %v4782_v13, %v4744_v31 }
0x2679   :  { %v4805_v46 = vadd.f32 %v5026_v49, %v4792_v42 }
0x267b   :  { %4812 = vst.msk [vmem:[%s8972_s15 + $0x18] sm:$0xff] %vm4808_vm4, %v4805_v46 }
0x2689   :  { %v4738_v1 = vpop.xlane.xlu0 %4737 }
0x268a   :  { %v4790_v40 = vadd.f32 %v4776_v17, %v4738_v1 }
0x268c   :  { %v4803_v22 = vadd.f32 %v5026_v49, %v4790_v40 }
0x268d   :  { %v4741_v34 = vpop.xlane.xlu0 %4740 }
0x268e   :  { %4810 = vst.msk [vmem:[%s8972_s15 + $0x8] sm:$0xff] %vm4808_vm4, %v4803_v22 }
0x2691   :  { %v4747_v38 = vpop.xlane.xlu0 %4746 }
0x2695   :  { %v4773_v59 = vpop.xlane.xlu0 %4772 }
0x2696   :  { %v4789_v7 = vadd.f32 %v4773_v59, %v4735_v8 }
0x2698   :  { %v4802_v5 = vadd.f32 %v5026_v49, %v4789_v7 }
0x2699   :  { %v4779_v56 = vpop.xlane.xlu0 %4778 }
0x269a   :  { %4809 = vst.msk [vmem:[%s8972_s15] sm:$0xff] %vm4808_vm4, %v4802_v5  ;;  %v4791_v26 = vadd.f32 %v4779_v56, %v4741_v34 }
0x269c   :  { %v4804_v10 = vadd.f32 %v5026_v49, %v4791_v26 }
0x269d   :  { %v4785_v16 = vpop.xlane.xlu0 %4784 }
0x269e   :  { %4811 = vst.msk [vmem:[%s8972_s15 + $0x10] sm:$0xff] %vm4808_vm4, %v4804_v10  ;;  %v4793_v55 = vadd.f32 %v4785_v16, %v4747_v38 }
0x26a0   :  { %v4806_v14 = vadd.f32 %v5026_v49, %v4793_v55 }
0x26a2   :  { %4813 = vst.msk [vmem:[%s8972_s15 + $0x20] sm:$0xff] %vm4808_vm4, %v4806_v14 }
0x26de   :  { %v4750_v18 = vpop.xlane.xlu1 %4749 }
0x26e2   :  { %v4788_v47 = vpop.xlane.xlu1 %4787 }
0x26e3   :  { %v4794_v58 = vadd.f32 %v4788_v47, %v4750_v18 }
0x26e5   :  { %v4807_v57 = vadd.f32 %v5026_v49, %v4794_v58 }
0x26e7   :  { %4814 = vst.msk [vmem:[%s8972_s15 + $0x28] sm:$0xff] %vm4808_vm4, %v4807_v57 }

</bundles_post_ra>
